<compile_context>
chip_gen: v7x
topology: tpu7x:2x2x1
jax: 0.10.0
libtpu: 0.0.40
codegen_flags: <defaults>
</compile_context>

<pallas_src>
import functools

import numpy as np
import jax
import jax.numpy as jnp
from jax.experimental import pallas as pl
from jax.experimental.pallas import tpu as pltpu


# ----------------------------- the fused kernel ------------------------------

def _cnn_forward_kernel(xp_ref, t1_ref, b1_ref, t2_ref, b2_ref,
                        f1_ref, fb1_ref, w2f_ref, b2f_ref, out_ref):
    """Whole CNNMnist forward for one batch tile, entirely in VMEM.

    xp_ref  : (2, 14, BT, 28*Ci)  input image rows split by parity:
              xp[p, k, b, w*Ci+ci] = x[b, 2k+p, w, ci]
    t1_ref  : (2, 5, 28*Ci, 120)  conv1 width-folded Toeplitz weights,
              t1[s, ky, w*Ci+ci, wp*10+co]
    b1_ref  : (1, 120)            conv1 bias tiled over wp
    t2_ref  : (2, 5, 120, 80)     conv2 width-folded Toeplitz weights
    b2_ref  : (1, 80)             conv2 bias tiled over wp2
    f1_ref  : (4, 80, 50)         fc1 weight split by pooled row h4
    fb1_ref : (1, 50)             fc1 bias
    w2f_ref : (50, 128)           fc2 weight, zero-padded to 128 lanes
    b2f_ref : (1, 128)            fc2 bias, zero-padded
    out_ref : (BT, 128)           padded logits
    """
    bt = xp_ref.shape[2]
    f32 = jnp.float32

    # ---------------- conv1 (5x5) + 2x2 maxpool + relu ----------------------
    # rows of every intermediate: (r = H pool tap, hp = pooled row, b)
    m1 = None
    for s in (0, 1):                      # W pool tap (folded into t1)
        acc = None
        for dy in range(5):               # conv kernel row
            parts = []
            for r in (0, 1):              # H pool tap
                st = r + dy               # input row offset = 2*hp + st
                parts.append(xp_ref[st % 2, st // 2: st // 2 + 12])  # (12,bt,28*Ci)
            lhs = jnp.concatenate(parts, axis=0)        # (24, bt, 28*Ci)
            lhs = lhs.reshape(24 * bt, xp_ref.shape[3])
            c = jnp.dot(lhs, t1_ref[s, dy], preferred_element_type=f32)  # (24bt,120)
            acc = c if acc is None else acc + c
        m1 = acc if m1 is None else jnp.maximum(m1, acc)
    a1 = jnp.maximum(m1[:12 * bt], m1[12 * bt:]) + b1_ref[...]   # max over H taps
    a1 = jnp.maximum(a1, 0.0)             # (12*bt, 120)  rows=(hp,b), cols=(wp,c)
    a1 = a1.reshape(12, bt, 120)

    # ------- conv2 + Dropout2d(eval: identity) + 2x2 maxpool + relu ---------
    # TODO(synk): train-mode Dropout2d / the batch_norm=True (BatchNorm2d)
    # variant are not implemented; default eval-mode Dropout2d == identity.
    m2 = None
    for s in (0, 1):
        acc = None
        for dy in range(5):
            rows = [a1[r + dy + 2 * k] for r in (0, 1) for k in range(4)]
            lhs = jnp.concatenate(rows, axis=0)                    # (8*bt, 120)
            c = jnp.dot(lhs, t2_ref[s, dy], preferred_element_type=f32)  # (8bt,80)
            acc = c if acc is None else acc + c
        m2 = acc if m2 is None else jnp.maximum(m2, acc)
    a2 = jnp.maximum(m2[:4 * bt], m2[4 * bt:]) + b2_ref[...]
    a2 = jnp.maximum(a2, 0.0)             # (4*bt, 80)  rows=(hp2,b), cols=(wp2,c)
    a2 = a2.reshape(4, bt, 80)

    # -------- fc1 + relu + dropout(eval: identity) + fc2 --------------------
    h = None
    for h4 in range(4):
        c = jnp.dot(a2[h4], f1_ref[h4], preferred_element_type=f32)  # (bt, 50)
        h = c if h is None else h + c
    h = jnp.maximum(h + fb1_ref[...], 0.0)
    out_ref[...] = (jnp.dot(h, w2f_ref[...], preferred_element_type=f32)
                    + b2f_ref[...]).astype(out_ref.dtype)


# ----------------------------- parameters ------------------------------------

def _uniform(key, shape, fan_in):
    bound = 1.0 / (fan_in ** 0.5)
    return jax.random.uniform(key, shape, jnp.float32, -bound, bound)


def init_params(key, num_channels=1, num_classes=10):
    """PyTorch-style (Cout,Cin,kh,kw) / (out,in) parameter tensors."""
    ks = jax.random.split(key, 8)
    return dict(
        conv1_w=_uniform(ks[0], (10, num_channels, 5, 5), num_channels * 25),
        conv1_b=_uniform(ks[1], (10,), num_channels * 25),
        conv2_w=_uniform(ks[2], (20, 10, 5, 5), 10 * 25),
        conv2_b=_uniform(ks[3], (20,), 10 * 25),
        fc1_w=_uniform(ks[4], (50, 320), 320),
        fc1_b=_uniform(ks[5], (50,), 320),
        fc2_w=_uniform(ks[6], (num_classes, 50), 50),
        fc2_b=_uniform(ks[7], (num_classes,), 50),
    )


def prepare_params(p):
    """One-time weight-layout prep (width-folded Toeplitz matrices, fc splits).

    Runs once on the host; nothing here is on the per-call path.
    """
    w1 = np.asarray(p["conv1_w"], np.float32)   # (10, Ci, 5, 5)
    b1 = np.asarray(p["conv1_b"], np.float32)
    w2 = np.asarray(p["conv2_w"], np.float32)   # (20, 10, 5, 5)
    b2 = np.asarray(p["conv2_b"], np.float32)
    f1 = np.asarray(p["fc1_w"], np.float32)     # (50, 320)
    fb1 = np.asarray(p["fc1_b"], np.float32)
    f2 = np.asarray(p["fc2_w"], np.float32)     # (NC, 50)
    fb2 = np.asarray(p["fc2_b"], np.float32)
    ci_n = w1.shape[1]
    nc = f2.shape[0]

    # conv1: T1[s, ky, w*Ci+ci, wp*10+co] = w1[co, ci, ky, w - (2*wp + s)]
    t1 = np.zeros((2, 5, 28 * ci_n, 12 * 10), np.float32)
    for s in range(2):
        for ky in range(5):
            for wp in range(12):
                for kx in range(5):
                    w = 2 * wp + s + kx
                    for ci in range(ci_n):
                        t1[s, ky, w * ci_n + ci, wp * 10:(wp + 1) * 10] = w1[:, ci, ky, kx]
    b1w = np.tile(b1, 12)[None, :]                               # (1, 120)

    # conv2: T2[s, ky, w*10+ci, wp*20+co] = w2[co, ci, ky, w - (2*wp + s)]
    t2 = np.zeros((2, 5, 12 * 10, 4 * 20), np.float32)
    for s in range(2):
        for ky in range(5):
            for wp in range(4):
                for kx in range(5):
                    w = 2 * wp + s + kx
                    for ci in range(10):
                        t2[s, ky, w * 10 + ci, wp * 20:(wp + 1) * 20] = w2[:, ci, ky, kx]
    b2w = np.tile(b2, 4)[None, :]                                # (1, 80)

    # fc1 split by pooled row h4; columns of a2 are (wp2, co), fc1 input index
    # is the PyTorch NCHW flatten co*16 + h4*4 + wp2.
    f1s = np.zeros((4, 80, 50), np.float32)
    for h4 in range(4):
        for wp in range(4):
            for co in range(20):
                f1s[h4, wp * 20 + co, :] = f1[:, co * 16 + h4 * 4 + wp]

    # fc2 padded to 128 output lanes -> unmasked full-lane store in the kernel.
    f2p = np.zeros((50, 128), np.float32)
    f2p[:, :nc] = f2.T
    fb2p = np.zeros((1, 128), np.float32)
    fb2p[0, :nc] = fb2

    return dict(
        t1=jnp.asarray(t1), b1w=jnp.asarray(b1w),
        t2=jnp.asarray(t2), b2w=jnp.asarray(b2w),
        f1=jnp.asarray(f1s), fb1=jnp.asarray(fb1[None, :]),
        f2p=jnp.asarray(f2p), fb2p=jnp.asarray(fb2p),
    )


# ----------------------------- model forward ---------------------------------

@functools.partial(jax.jit, static_argnames=("num_classes", "bt"))
def model_forward(x_nchw, pp, num_classes=10, bt=8):
    """x_nchw: (B, Ci, 28, 28) like PyTorch; returns logits (B, num_classes)."""
    B, ci_n, H, W = x_nchw.shape
    assert H == 28 and W == 28, "CNNMnist (fc1=Linear(320,50)) implies 28x28 input"
    bp = ((B + bt - 1) // bt) * bt
    nb = bp // bt
    wc = W * ci_n

    # Per-call glue: NCHW -> wide NHWC rows, pad batch, split rows by parity so
    # every in-kernel H gather is a contiguous leading-dim slice.
    xw = jnp.transpose(x_nchw, (0, 2, 3, 1)).reshape(B, H, wc)
    if bp != B:
        xw = jnp.pad(xw, ((0, bp - B), (0, 0), (0, 0)))
    xp = jnp.transpose(xw.reshape(bp, 14, 2, wc), (2, 1, 0, 3))   # (2,14,bp,wc)

    out = pl.pallas_call(
        _cnn_forward_kernel,
        out_shape=jax.ShapeDtypeStruct((bp, 128), jnp.float32),
        grid_spec=pltpu.PrefetchScalarGridSpec(
            num_scalar_prefetch=0,
            grid=(nb,),
            in_specs=[
                pl.BlockSpec((2, 14, bt, wc), lambda i: (0, 0, i, 0)),
                pl.BlockSpec(pp["t1"].shape, lambda i: (0, 0, 0, 0)),
                pl.BlockSpec((1, 120), lambda i: (0, 0)),
                pl.BlockSpec(pp["t2"].shape, lambda i: (0, 0, 0, 0)),
                pl.BlockSpec((1, 80), lambda i: (0, 0)),
                pl.BlockSpec((4, 80, 50), lambda i: (0, 0, 0)),
                pl.BlockSpec((1, 50), lambda i: (0, 0)),
                pl.BlockSpec((50, 128), lambda i: (0, 0)),
                pl.BlockSpec((1, 128), lambda i: (0, 0)),
            ],
            out_specs=pl.BlockSpec((bt, 128), lambda i: (i, 0)),
        ),
        compiler_params=pltpu.CompilerParams(
            dimension_semantics=("parallel",)),   # shards batch tiles across TCs
    )(xp, pp["t1"], pp["b1w"], pp["t2"], pp["b2w"],
      pp["f1"], pp["fb1"], pp["f2p"], pp["fb2p"])
    return out[:B, :num_classes]


# ----------------------------- pure-JAX reference -----------------------------

def reference_forward(x_nchw, p):
    dn = ("NCHW", "OIHW", "NCHW")
    y = jax.lax.conv_general_dilated(x_nchw, p["conv1_w"], (1, 1), "VALID",
                                     dimension_numbers=dn)
    y = y + p["conv1_b"].reshape(1, -1, 1, 1)
    y = jax.lax.reduce_window(y, -jnp.inf, jax.lax.max,
                              (1, 1, 2, 2), (1, 1, 2, 2), "VALID")
    y = jnp.maximum(y, 0.0)
    y = jax.lax.conv_general_dilated(y, p["conv2_w"], (1, 1), "VALID",
                                     dimension_numbers=dn)
    y = y + p["conv2_b"].reshape(1, -1, 1, 1)
    # conv2_norm = nn.Dropout2d() (batch_norm=False default): identity in eval.
    y = jax.lax.reduce_window(y, -jnp.inf, jax.lax.max,
                              (1, 1, 2, 2), (1, 1, 2, 2), "VALID")
    y = jnp.maximum(y, 0.0)
    feat = y.reshape(y.shape[0], -1)                 # NCHW flatten (view(B,-1))
    h = jnp.maximum(feat @ p["fc1_w"].T + p["fc1_b"], 0.0)
    return h @ p["fc2_w"].T + p["fc2_b"]


# ----------------------------- main -------------------------------------------

if __name__ == "__main__":
    key = jax.random.PRNGKey(0)
    k_params, k_x = jax.random.split(key)
    params = init_params(k_params, num_channels=1, num_classes=10)
    prepped = prepare_params(params)

    # fc1 = Linear(320, 50) implies 20*4*4 features, i.e. 28x28 MNIST input.
    x = jax.random.normal(k_x, (2, 1, 28, 28), jnp.float32)

    out = jax.block_until_ready(model_forward(x, prepped, num_classes=10))
    assert out.shape == (2, 10), out.shape
    assert bool(jnp.all(jnp.isfinite(out)))

    ref = reference_forward(x, params)
    max_err = float(jnp.max(jnp.abs(out - ref)))
    assert max_err < 1e-3, f"mismatch vs reference: {max_err}"

    print("KERNEL_OK")
</pallas_src>

<mosaic_0001>
module attributes {stable_mosaic.version = 11 : i64} {
  func.func @_cnn_forward_kernel(%arg0: i32, %arg1: memref<2x14x8x28xf32, #tpu.memory_space<vmem>>, %arg2: memref<2x5x28x120xf32, #tpu.memory_space<vmem>>, %arg3: memref<1x120xf32, #tpu.memory_space<vmem>>, %arg4: memref<2x5x120x80xf32, #tpu.memory_space<vmem>>, %arg5: memref<1x80xf32, #tpu.memory_space<vmem>>, %arg6: memref<4x80x50xf32, #tpu.memory_space<vmem>>, %arg7: memref<1x50xf32, #tpu.memory_space<vmem>>, %arg8: memref<50x128xf32, #tpu.memory_space<vmem>>, %arg9: memref<1x128xf32, #tpu.memory_space<vmem>>, %arg10: memref<8x128xf32, #tpu.memory_space<vmem>>) attributes {dimension_semantics = [#tpu.dimension_semantics<parallel>], iteration_bounds = array<i64: 1>, scalar_prefetch = 0 : i64, scratch_operands = 0 : i64, tpu.core_type = #tpu.core_type<tc>, window_params = [{transform_indices = @transform_0, window_bounds = array<i64: 2, 14, 8, 28>}, {pipeline_mode = #tpu.pipeline_mode<synchronous>, transform_indices = @transform_1, window_bounds = array<i64: 2, 5, 28, 120>}, {pipeline_mode = #tpu.pipeline_mode<synchronous>, transform_indices = @transform_2, window_bounds = array<i64: 1, 120>}, {pipeline_mode = #tpu.pipeline_mode<synchronous>, transform_indices = @transform_3, window_bounds = array<i64: 2, 5, 120, 80>}, {pipeline_mode = #tpu.pipeline_mode<synchronous>, transform_indices = @transform_4, window_bounds = array<i64: 1, 80>}, {pipeline_mode = #tpu.pipeline_mode<synchronous>, transform_indices = @transform_5, window_bounds = array<i64: 4, 80, 50>}, {pipeline_mode = #tpu.pipeline_mode<synchronous>, transform_indices = @transform_6, window_bounds = array<i64: 1, 50>}, {pipeline_mode = #tpu.pipeline_mode<synchronous>, transform_indices = @transform_7, window_bounds = array<i64: 50, 128>}, {pipeline_mode = #tpu.pipeline_mode<synchronous>, transform_indices = @transform_8, window_bounds = array<i64: 1, 128>}, {transform_indices = @transform_9, window_bounds = array<i64: 8, 128>}]} {
    %c0 = arith.constant 0 : index
    %c0_0 = arith.constant 0 : index
    %c0_1 = arith.constant 0 : index
    %c0_2 = arith.constant 0 : index
    %0 = vector.load %arg1[%c0, %c0_0, %c0_1, %c0_2] : memref<2x14x8x28xf32, #tpu.memory_space<vmem>>, vector<1x12x8x28xf32>
    %1 = vector.shape_cast %0 : vector<1x12x8x28xf32> to vector<12x8x28xf32>
    %c1 = arith.constant 1 : index
    %c0_3 = arith.constant 0 : index
    %c0_4 = arith.constant 0 : index
    %c0_5 = arith.constant 0 : index
    %2 = vector.load %arg1[%c1, %c0_3, %c0_4, %c0_5] : memref<2x14x8x28xf32, #tpu.memory_space<vmem>>, vector<1x12x8x28xf32>
    %3 = vector.shape_cast %2 : vector<1x12x8x28xf32> to vector<12x8x28xf32>
    %4 = tpu.concatenate %1, %3 in 0 : vector<12x8x28xf32>, vector<12x8x28xf32> -> vector<24x8x28xf32>
    %5 = vector.shape_cast %4 : vector<24x8x28xf32> to vector<192x28xf32>
    %c0_6 = arith.constant 0 : index
    %c0_7 = arith.constant 0 : index
    %c0_8 = arith.constant 0 : index
    %c0_9 = arith.constant 0 : index
    %6 = vector.load %arg2[%c0_6, %c0_7, %c0_8, %c0_9] : memref<2x5x28x120xf32, #tpu.memory_space<vmem>>, vector<1x1x28x120xf32>
    %7 = vector.shape_cast %6 : vector<1x1x28x120xf32> to vector<28x120xf32>
    %cst = arith.constant dense<0.000000e+00> : vector<192x120xf32>
    %8 = tpu.matmul %5, %7, %cst {dimension_numbers = #tpu.dot_dimension_numbers<[1], [0], [0], [1], [0, 0, 1, 1], [], []>} : vector<192x28xf32>, vector<28x120xf32>, vector<192x120xf32> -> vector<192x120xf32>
    %c1_10 = arith.constant 1 : index
    %c0_11 = arith.constant 0 : index
    %c0_12 = arith.constant 0 : index
    %c0_13 = arith.constant 0 : index
    %9 = vector.load %arg1[%c1_10, %c0_11, %c0_12, %c0_13] : memref<2x14x8x28xf32, #tpu.memory_space<vmem>>, vector<1x12x8x28xf32>
    %10 = vector.shape_cast %9 : vector<1x12x8x28xf32> to vector<12x8x28xf32>
    %c0_14 = arith.constant 0 : index
    %c1_15 = arith.constant 1 : index
    %c0_16 = arith.constant 0 : index
    %c0_17 = arith.constant 0 : index
    %11 = vector.load %arg1[%c0_14, %c1_15, %c0_16, %c0_17] : memref<2x14x8x28xf32, #tpu.memory_space<vmem>>, vector<1x12x8x28xf32>
    %12 = vector.shape_cast %11 : vector<1x12x8x28xf32> to vector<12x8x28xf32>
    %13 = tpu.concatenate %10, %12 in 0 : vector<12x8x28xf32>, vector<12x8x28xf32> -> vector<24x8x28xf32>
    %14 = vector.shape_cast %13 : vector<24x8x28xf32> to vector<192x28xf32>
    %c0_18 = arith.constant 0 : index
    %c1_19 = arith.constant 1 : index
    %c0_20 = arith.constant 0 : index
    %c0_21 = arith.constant 0 : index
    %15 = vector.load %arg2[%c0_18, %c1_19, %c0_20, %c0_21] : memref<2x5x28x120xf32, #tpu.memory_space<vmem>>, vector<1x1x28x120xf32>
    %16 = vector.shape_cast %15 : vector<1x1x28x120xf32> to vector<28x120xf32>
    %cst_22 = arith.constant dense<0.000000e+00> : vector<192x120xf32>
    %17 = tpu.matmul %14, %16, %cst_22 {dimension_numbers = #tpu.dot_dimension_numbers<[1], [0], [0], [1], [0, 0, 1, 1], [], []>} : vector<192x28xf32>, vector<28x120xf32>, vector<192x120xf32> -> vector<192x120xf32>
    %18 = arith.addf %8, %17 : vector<192x120xf32>
    %c0_23 = arith.constant 0 : index
    %c1_24 = arith.constant 1 : index
    %c0_25 = arith.constant 0 : index
    %c0_26 = arith.constant 0 : index
    %19 = vector.load %arg1[%c0_23, %c1_24, %c0_25, %c0_26] : memref<2x14x8x28xf32, #tpu.memory_space<vmem>>, vector<1x12x8x28xf32>
    %20 = vector.shape_cast %19 : vector<1x12x8x28xf32> to vector<12x8x28xf32>
    %c1_27 = arith.constant 1 : index
    %c1_28 = arith.constant 1 : index
    %c0_29 = arith.constant 0 : index
    %c0_30 = arith.constant 0 : index
    %21 = vector.load %arg1[%c1_27, %c1_28, %c0_29, %c0_30] : memref<2x14x8x28xf32, #tpu.memory_space<vmem>>, vector<1x12x8x28xf32>
    %22 = vector.shape_cast %21 : vector<1x12x8x28xf32> to vector<12x8x28xf32>
    %23 = tpu.concatenate %20, %22 in 0 : vector<12x8x28xf32>, vector<12x8x28xf32> -> vector<24x8x28xf32>
    %24 = vector.shape_cast %23 : vector<24x8x28xf32> to vector<192x28xf32>
    %c0_31 = arith.constant 0 : index
    %c2 = arith.constant 2 : index
    %c0_32 = arith.constant 0 : index
    %c0_33 = arith.constant 0 : index
    %25 = vector.load %arg2[%c0_31, %c2, %c0_32, %c0_33] : memref<2x5x28x120xf32, #tpu.memory_space<vmem>>, vector<1x1x28x120xf32>
    %26 = vector.shape_cast %25 : vector<1x1x28x120xf32> to vector<28x120xf32>
    %cst_34 = arith.constant dense<0.000000e+00> : vector<192x120xf32>
    %27 = tpu.matmul %24, %26, %cst_34 {dimension_numbers = #tpu.dot_dimension_numbers<[1], [0], [0], [1], [0, 0, 1, 1], [], []>} : vector<192x28xf32>, vector<28x120xf32>, vector<192x120xf32> -> vector<192x120xf32>
    %28 = arith.addf %18, %27 : vector<192x120xf32>
    %c1_35 = arith.constant 1 : index
    %c1_36 = arith.constant 1 : index
    %c0_37 = arith.constant 0 : index
    %c0_38 = arith.constant 0 : index
    %29 = vector.load %arg1[%c1_35, %c1_36, %c0_37, %c0_38] : memref<2x14x8x28xf32, #tpu.memory_space<vmem>>, vector<1x12x8x28xf32>
    %30 = vector.shape_cast %29 : vector<1x12x8x28xf32> to vector<12x8x28xf32>
    %c0_39 = arith.constant 0 : index
    %c2_40 = arith.constant 2 : index
    %c0_41 = arith.constant 0 : index
    %c0_42 = arith.constant 0 : index
    %31 = vector.load %arg1[%c0_39, %c2_40, %c0_41, %c0_42] : memref<2x14x8x28xf32, #tpu.memory_space<vmem>>, vector<1x12x8x28xf32>
    %32 = vector.shape_cast %31 : vector<1x12x8x28xf32> to vector<12x8x28xf32>
    %33 = tpu.concatenate %30, %32 in 0 : vector<12x8x28xf32>, vector<12x8x28xf32> -> vector<24x8x28xf32>
    %34 = vector.shape_cast %33 : vector<24x8x28xf32> to vector<192x28xf32>
    %c0_43 = arith.constant 0 : index
    %c3 = arith.constant 3 : index
    %c0_44 = arith.constant 0 : index
    %c0_45 = arith.constant 0 : index
    %35 = vector.load %arg2[%c0_43, %c3, %c0_44, %c0_45] : memref<2x5x28x120xf32, #tpu.memory_space<vmem>>, vector<1x1x28x120xf32>
    %36 = vector.shape_cast %35 : vector<1x1x28x120xf32> to vector<28x120xf32>
    %cst_46 = arith.constant dense<0.000000e+00> : vector<192x120xf32>
    %37 = tpu.matmul %34, %36, %cst_46 {dimension_numbers = #tpu.dot_dimension_numbers<[1], [0], [0], [1], [0, 0, 1, 1], [], []>} : vector<192x28xf32>, vector<28x120xf32>, vector<192x120xf32> -> vector<192x120xf32>
    %38 = arith.addf %28, %37 : vector<192x120xf32>
    %c0_47 = arith.constant 0 : index
    %c2_48 = arith.constant 2 : index
    %c0_49 = arith.constant 0 : index
    %c0_50 = arith.constant 0 : index
    %39 = vector.load %arg1[%c0_47, %c2_48, %c0_49, %c0_50] : memref<2x14x8x28xf32, #tpu.memory_space<vmem>>, vector<1x12x8x28xf32>
    %40 = vector.shape_cast %39 : vector<1x12x8x28xf32> to vector<12x8x28xf32>
    %c1_51 = arith.constant 1 : index
    %c2_52 = arith.constant 2 : index
    %c0_53 = arith.constant 0 : index
    %c0_54 = arith.constant 0 : index
    %41 = vector.load %arg1[%c1_51, %c2_52, %c0_53, %c0_54] : memref<2x14x8x28xf32, #tpu.memory_space<vmem>>, vector<1x12x8x28xf32>
    %42 = vector.shape_cast %41 : vector<1x12x8x28xf32> to vector<12x8x28xf32>
    %43 = tpu.concatenate %40, %42 in 0 : vector<12x8x28xf32>, vector<12x8x28xf32> -> vector<24x8x28xf32>
    %44 = vector.shape_cast %43 : vector<24x8x28xf32> to vector<192x28xf32>
    %c0_55 = arith.constant 0 : index
    %c4 = arith.constant 4 : index
    %c0_56 = arith.constant 0 : index
    %c0_57 = arith.constant 0 : index
    %45 = vector.load %arg2[%c0_55, %c4, %c0_56, %c0_57] : memref<2x5x28x120xf32, #tpu.memory_space<vmem>>, vector<1x1x28x120xf32>
    %46 = vector.shape_cast %45 : vector<1x1x28x120xf32> to vector<28x120xf32>
    %cst_58 = arith.constant dense<0.000000e+00> : vector<192x120xf32>
    %47 = tpu.matmul %44, %46, %cst_58 {dimension_numbers = #tpu.dot_dimension_numbers<[1], [0], [0], [1], [0, 0, 1, 1], [], []>} : vector<192x28xf32>, vector<28x120xf32>, vector<192x120xf32> -> vector<192x120xf32>
    %48 = arith.addf %38, %47 : vector<192x120xf32>
    %c0_59 = arith.constant 0 : index
    %c0_60 = arith.constant 0 : index
    %c0_61 = arith.constant 0 : index
    %c0_62 = arith.constant 0 : index
    %49 = vector.load %arg1[%c0_59, %c0_60, %c0_61, %c0_62] : memref<2x14x8x28xf32, #tpu.memory_space<vmem>>, vector<1x12x8x28xf32>
    %50 = vector.shape_cast %49 : vector<1x12x8x28xf32> to vector<12x8x28xf32>
    %c1_63 = arith.constant 1 : index
    %c0_64 = arith.constant 0 : index
    %c0_65 = arith.constant 0 : index
    %c0_66 = arith.constant 0 : index
    %51 = vector.load %arg1[%c1_63, %c0_64, %c0_65, %c0_66] : memref<2x14x8x28xf32, #tpu.memory_space<vmem>>, vector<1x12x8x28xf32>
    %52 = vector.shape_cast %51 : vector<1x12x8x28xf32> to vector<12x8x28xf32>
    %53 = tpu.concatenate %50, %52 in 0 : vector<12x8x28xf32>, vector<12x8x28xf32> -> vector<24x8x28xf32>
    %54 = vector.shape_cast %53 : vector<24x8x28xf32> to vector<192x28xf32>
    %c1_67 = arith.constant 1 : index
    %c0_68 = arith.constant 0 : index
    %c0_69 = arith.constant 0 : index
    %c0_70 = arith.constant 0 : index
    %55 = vector.load %arg2[%c1_67, %c0_68, %c0_69, %c0_70] : memref<2x5x28x120xf32, #tpu.memory_space<vmem>>, vector<1x1x28x120xf32>
    %56 = vector.shape_cast %55 : vector<1x1x28x120xf32> to vector<28x120xf32>
    %cst_71 = arith.constant dense<0.000000e+00> : vector<192x120xf32>
    %57 = tpu.matmul %54, %56, %cst_71 {dimension_numbers = #tpu.dot_dimension_numbers<[1], [0], [0], [1], [0, 0, 1, 1], [], []>} : vector<192x28xf32>, vector<28x120xf32>, vector<192x120xf32> -> vector<192x120xf32>
    %c1_72 = arith.constant 1 : index
    %c0_73 = arith.constant 0 : index
    %c0_74 = arith.constant 0 : index
    %c0_75 = arith.constant 0 : index
    %58 = vector.load %arg1[%c1_72, %c0_73, %c0_74, %c0_75] : memref<2x14x8x28xf32, #tpu.memory_space<vmem>>, vector<1x12x8x28xf32>
    %59 = vector.shape_cast %58 : vector<1x12x8x28xf32> to vector<12x8x28xf32>
    %c0_76 = arith.constant 0 : index
    %c1_77 = arith.constant 1 : index
    %c0_78 = arith.constant 0 : index
    %c0_79 = arith.constant 0 : index
    %60 = vector.load %arg1[%c0_76, %c1_77, %c0_78, %c0_79] : memref<2x14x8x28xf32, #tpu.memory_space<vmem>>, vector<1x12x8x28xf32>
    %61 = vector.shape_cast %60 : vector<1x12x8x28xf32> to vector<12x8x28xf32>
    %62 = tpu.concatenate %59, %61 in 0 : vector<12x8x28xf32>, vector<12x8x28xf32> -> vector<24x8x28xf32>
    %63 = vector.shape_cast %62 : vector<24x8x28xf32> to vector<192x28xf32>
    %c1_80 = arith.constant 1 : index
    %c1_81 = arith.constant 1 : index
    %c0_82 = arith.constant 0 : index
    %c0_83 = arith.constant 0 : index
    %64 = vector.load %arg2[%c1_80, %c1_81, %c0_82, %c0_83] : memref<2x5x28x120xf32, #tpu.memory_space<vmem>>, vector<1x1x28x120xf32>
    %65 = vector.shape_cast %64 : vector<1x1x28x120xf32> to vector<28x120xf32>
    %cst_84 = arith.constant dense<0.000000e+00> : vector<192x120xf32>
    %66 = tpu.matmul %63, %65, %cst_84 {dimension_numbers = #tpu.dot_dimension_numbers<[1], [0], [0], [1], [0, 0, 1, 1], [], []>} : vector<192x28xf32>, vector<28x120xf32>, vector<192x120xf32> -> vector<192x120xf32>
    %67 = arith.addf %57, %66 : vector<192x120xf32>
    %c0_85 = arith.constant 0 : index
    %c1_86 = arith.constant 1 : index
    %c0_87 = arith.constant 0 : index
    %c0_88 = arith.constant 0 : index
    %68 = vector.load %arg1[%c0_85, %c1_86, %c0_87, %c0_88] : memref<2x14x8x28xf32, #tpu.memory_space<vmem>>, vector<1x12x8x28xf32>
    %69 = vector.shape_cast %68 : vector<1x12x8x28xf32> to vector<12x8x28xf32>
    %c1_89 = arith.constant 1 : index
    %c1_90 = arith.constant 1 : index
    %c0_91 = arith.constant 0 : index
    %c0_92 = arith.constant 0 : index
    %70 = vector.load %arg1[%c1_89, %c1_90, %c0_91, %c0_92] : memref<2x14x8x28xf32, #tpu.memory_space<vmem>>, vector<1x12x8x28xf32>
    %71 = vector.shape_cast %70 : vector<1x12x8x28xf32> to vector<12x8x28xf32>
    %72 = tpu.concatenate %69, %71 in 0 : vector<12x8x28xf32>, vector<12x8x28xf32> -> vector<24x8x28xf32>
    %73 = vector.shape_cast %72 : vector<24x8x28xf32> to vector<192x28xf32>
    %c1_93 = arith.constant 1 : index
    %c2_94 = arith.constant 2 : index
    %c0_95 = arith.constant 0 : index
    %c0_96 = arith.constant 0 : index
    %74 = vector.load %arg2[%c1_93, %c2_94, %c0_95, %c0_96] : memref<2x5x28x120xf32, #tpu.memory_space<vmem>>, vector<1x1x28x120xf32>
    %75 = vector.shape_cast %74 : vector<1x1x28x120xf32> to vector<28x120xf32>
    %cst_97 = arith.constant dense<0.000000e+00> : vector<192x120xf32>
    %76 = tpu.matmul %73, %75, %cst_97 {dimension_numbers = #tpu.dot_dimension_numbers<[1], [0], [0], [1], [0, 0, 1, 1], [], []>} : vector<192x28xf32>, vector<28x120xf32>, vector<192x120xf32> -> vector<192x120xf32>
    %77 = arith.addf %67, %76 : vector<192x120xf32>
    %c1_98 = arith.constant 1 : index
    %c1_99 = arith.constant 1 : index
    %c0_100 = arith.constant 0 : index
    %c0_101 = arith.constant 0 : index
    %78 = vector.load %arg1[%c1_98, %c1_99, %c0_100, %c0_101] : memref<2x14x8x28xf32, #tpu.memory_space<vmem>>, vector<1x12x8x28xf32>
    %79 = vector.shape_cast %78 : vector<1x12x8x28xf32> to vector<12x8x28xf32>
    %c0_102 = arith.constant 0 : index
    %c2_103 = arith.constant 2 : index
    %c0_104 = arith.constant 0 : index
    %c0_105 = arith.constant 0 : index
    %80 = vector.load %arg1[%c0_102, %c2_103, %c0_104, %c0_105] : memref<2x14x8x28xf32, #tpu.memory_space<vmem>>, vector<1x12x8x28xf32>
    %81 = vector.shape_cast %80 : vector<1x12x8x28xf32> to vector<12x8x28xf32>
    %82 = tpu.concatenate %79, %81 in 0 : vector<12x8x28xf32>, vector<12x8x28xf32> -> vector<24x8x28xf32>
    %83 = vector.shape_cast %82 : vector<24x8x28xf32> to vector<192x28xf32>
    %c1_106 = arith.constant 1 : index
    %c3_107 = arith.constant 3 : index
    %c0_108 = arith.constant 0 : index
    %c0_109 = arith.constant 0 : index
    %84 = vector.load %arg2[%c1_106, %c3_107, %c0_108, %c0_109] : memref<2x5x28x120xf32, #tpu.memory_space<vmem>>, vector<1x1x28x120xf32>
    %85 = vector.shape_cast %84 : vector<1x1x28x120xf32> to vector<28x120xf32>
    %cst_110 = arith.constant dense<0.000000e+00> : vector<192x120xf32>
    %86 = tpu.matmul %83, %85, %cst_110 {dimension_numbers = #tpu.dot_dimension_numbers<[1], [0], [0], [1], [0, 0, 1, 1], [], []>} : vector<192x28xf32>, vector<28x120xf32>, vector<192x120xf32> -> vector<192x120xf32>
    %87 = arith.addf %77, %86 : vector<192x120xf32>
    %c0_111 = arith.constant 0 : index
    %c2_112 = arith.constant 2 : index
    %c0_113 = arith.constant 0 : index
    %c0_114 = arith.constant 0 : index
    %88 = vector.load %arg1[%c0_111, %c2_112, %c0_113, %c0_114] : memref<2x14x8x28xf32, #tpu.memory_space<vmem>>, vector<1x12x8x28xf32>
    %89 = vector.shape_cast %88 : vector<1x12x8x28xf32> to vector<12x8x28xf32>
    %c1_115 = arith.constant 1 : index
    %c2_116 = arith.constant 2 : index
    %c0_117 = arith.constant 0 : index
    %c0_118 = arith.constant 0 : index
    %90 = vector.load %arg1[%c1_115, %c2_116, %c0_117, %c0_118] : memref<2x14x8x28xf32, #tpu.memory_space<vmem>>, vector<1x12x8x28xf32>
    %91 = vector.shape_cast %90 : vector<1x12x8x28xf32> to vector<12x8x28xf32>
    %92 = tpu.concatenate %89, %91 in 0 : vector<12x8x28xf32>, vector<12x8x28xf32> -> vector<24x8x28xf32>
    %93 = vector.shape_cast %92 : vector<24x8x28xf32> to vector<192x28xf32>
    %c1_119 = arith.constant 1 : index
    %c4_120 = arith.constant 4 : index
    %c0_121 = arith.constant 0 : index
    %c0_122 = arith.constant 0 : index
    %94 = vector.load %arg2[%c1_119, %c4_120, %c0_121, %c0_122] : memref<2x5x28x120xf32, #tpu.memory_space<vmem>>, vector<1x1x28x120xf32>
    %95 = vector.shape_cast %94 : vector<1x1x28x120xf32> to vector<28x120xf32>
    %cst_123 = arith.constant dense<0.000000e+00> : vector<192x120xf32>
    %96 = tpu.matmul %93, %95, %cst_123 {dimension_numbers = #tpu.dot_dimension_numbers<[1], [0], [0], [1], [0, 0, 1, 1], [], []>} : vector<192x28xf32>, vector<28x120xf32>, vector<192x120xf32> -> vector<192x120xf32>
    %97 = arith.addf %87, %96 : vector<192x120xf32>
    %98 = arith.maximumf %48, %97 : vector<192x120xf32>
    %99 = vector.extract_strided_slice %98 {offsets = [0, 0], sizes = [96, 120], strides = [1, 1]} : vector<192x120xf32> to vector<96x120xf32>
    %100 = vector.extract_strided_slice %98 {offsets = [96, 0], sizes = [96, 120], strides = [1, 1]} : vector<192x120xf32> to vector<96x120xf32>
    %101 = arith.maximumf %99, %100 : vector<96x120xf32>
    %c0_124 = arith.constant 0 : index
    %c0_125 = arith.constant 0 : index
    %102 = vector.load %arg3[%c0_124, %c0_125] : memref<1x120xf32, #tpu.memory_space<vmem>>, vector<1x120xf32>
    %103 = vector.broadcast %102 : vector<1x120xf32> to vector<96x120xf32>
    %104 = arith.addf %101, %103 : vector<96x120xf32>
    %cst_126 = arith.constant 0.000000e+00 : f32
    %105 = vector.broadcast %cst_126 : f32 to vector<96x120xf32>
    %106 = arith.maximumf %104, %105 : vector<96x120xf32>
    %107 = vector.shape_cast %106 : vector<96x120xf32> to vector<12x8x120xf32>
    %108 = vector.extract_strided_slice %107 {offsets = [0, 0, 0], sizes = [1, 8, 120], strides = [1, 1, 1]} : vector<12x8x120xf32> to vector<1x8x120xf32>
    %109 = vector.shape_cast %108 : vector<1x8x120xf32> to vector<8x120xf32>
    %110 = vector.extract_strided_slice %107 {offsets = [2, 0, 0], sizes = [1, 8, 120], strides = [1, 1, 1]} : vector<12x8x120xf32> to vector<1x8x120xf32>
    %111 = vector.shape_cast %110 : vector<1x8x120xf32> to vector<8x120xf32>
    %112 = vector.extract_strided_slice %107 {offsets = [4, 0, 0], sizes = [1, 8, 120], strides = [1, 1, 1]} : vector<12x8x120xf32> to vector<1x8x120xf32>
    %113 = vector.shape_cast %112 : vector<1x8x120xf32> to vector<8x120xf32>
    %114 = vector.extract_strided_slice %107 {offsets = [6, 0, 0], sizes = [1, 8, 120], strides = [1, 1, 1]} : vector<12x8x120xf32> to vector<1x8x120xf32>
    %115 = vector.shape_cast %114 : vector<1x8x120xf32> to vector<8x120xf32>
    %116 = vector.extract_strided_slice %107 {offsets = [1, 0, 0], sizes = [1, 8, 120], strides = [1, 1, 1]} : vector<12x8x120xf32> to vector<1x8x120xf32>
    %117 = vector.shape_cast %116 : vector<1x8x120xf32> to vector<8x120xf32>
    %118 = vector.extract_strided_slice %107 {offsets = [3, 0, 0], sizes = [1, 8, 120], strides = [1, 1, 1]} : vector<12x8x120xf32> to vector<1x8x120xf32>
    %119 = vector.shape_cast %118 : vector<1x8x120xf32> to vector<8x120xf32>
    %120 = vector.extract_strided_slice %107 {offsets = [5, 0, 0], sizes = [1, 8, 120], strides = [1, 1, 1]} : vector<12x8x120xf32> to vector<1x8x120xf32>
    %121 = vector.shape_cast %120 : vector<1x8x120xf32> to vector<8x120xf32>
    %122 = vector.extract_strided_slice %107 {offsets = [7, 0, 0], sizes = [1, 8, 120], strides = [1, 1, 1]} : vector<12x8x120xf32> to vector<1x8x120xf32>
    %123 = vector.shape_cast %122 : vector<1x8x120xf32> to vector<8x120xf32>
    %124 = tpu.concatenate %109, %111, %113, %115, %117, %119, %121, %123 in 0 : vector<8x120xf32>, vector<8x120xf32>, vector<8x120xf32>, vector<8x120xf32>, vector<8x120xf32>, vector<8x120xf32>, vector<8x120xf32>, vector<8x120xf32> -> vector<64x120xf32>
    %c0_127 = arith.constant 0 : index
    %c0_128 = arith.constant 0 : index
    %c0_129 = arith.constant 0 : index
    %c0_130 = arith.constant 0 : index
    %125 = vector.load %arg4[%c0_127, %c0_128, %c0_129, %c0_130] : memref<2x5x120x80xf32, #tpu.memory_space<vmem>>, vector<1x1x120x80xf32>
    %126 = vector.shape_cast %125 : vector<1x1x120x80xf32> to vector<120x80xf32>
    %cst_131 = arith.constant dense<0.000000e+00> : vector<64x80xf32>
    %127 = tpu.matmul %124, %126, %cst_131 {dimension_numbers = #tpu.dot_dimension_numbers<[1], [0], [0], [1], [0, 0, 1, 1], [], []>} : vector<64x120xf32>, vector<120x80xf32>, vector<64x80xf32> -> vector<64x80xf32>
    %128 = vector.extract_strided_slice %107 {offsets = [1, 0, 0], sizes = [1, 8, 120], strides = [1, 1, 1]} : vector<12x8x120xf32> to vector<1x8x120xf32>
    %129 = vector.shape_cast %128 : vector<1x8x120xf32> to vector<8x120xf32>
    %130 = vector.extract_strided_slice %107 {offsets = [3, 0, 0], sizes = [1, 8, 120], strides = [1, 1, 1]} : vector<12x8x120xf32> to vector<1x8x120xf32>
    %131 = vector.shape_cast %130 : vector<1x8x120xf32> to vector<8x120xf32>
    %132 = vector.extract_strided_slice %107 {offsets = [5, 0, 0], sizes = [1, 8, 120], strides = [1, 1, 1]} : vector<12x8x120xf32> to vector<1x8x120xf32>
    %133 = vector.shape_cast %132 : vector<1x8x120xf32> to vector<8x120xf32>
    %134 = vector.extract_strided_slice %107 {offsets = [7, 0, 0], sizes = [1, 8, 120], strides = [1, 1, 1]} : vector<12x8x120xf32> to vector<1x8x120xf32>
    %135 = vector.shape_cast %134 : vector<1x8x120xf32> to vector<8x120xf32>
    %136 = vector.extract_strided_slice %107 {offsets = [2, 0, 0], sizes = [1, 8, 120], strides = [1, 1, 1]} : vector<12x8x120xf32> to vector<1x8x120xf32>
    %137 = vector.shape_cast %136 : vector<1x8x120xf32> to vector<8x120xf32>
    %138 = vector.extract_strided_slice %107 {offsets = [4, 0, 0], sizes = [1, 8, 120], strides = [1, 1, 1]} : vector<12x8x120xf32> to vector<1x8x120xf32>
    %139 = vector.shape_cast %138 : vector<1x8x120xf32> to vector<8x120xf32>
    %140 = vector.extract_strided_slice %107 {offsets = [6, 0, 0], sizes = [1, 8, 120], strides = [1, 1, 1]} : vector<12x8x120xf32> to vector<1x8x120xf32>
    %141 = vector.shape_cast %140 : vector<1x8x120xf32> to vector<8x120xf32>
    %142 = vector.extract_strided_slice %107 {offsets = [8, 0, 0], sizes = [1, 8, 120], strides = [1, 1, 1]} : vector<12x8x120xf32> to vector<1x8x120xf32>
    %143 = vector.shape_cast %142 : vector<1x8x120xf32> to vector<8x120xf32>
    %144 = tpu.concatenate %129, %131, %133, %135, %137, %139, %141, %143 in 0 : vector<8x120xf32>, vector<8x120xf32>, vector<8x120xf32>, vector<8x120xf32>, vector<8x120xf32>, vector<8x120xf32>, vector<8x120xf32>, vector<8x120xf32> -> vector<64x120xf32>
    %c0_132 = arith.constant 0 : index
    %c1_133 = arith.constant 1 : index
    %c0_134 = arith.constant 0 : index
    %c0_135 = arith.constant 0 : index
    %145 = vector.load %arg4[%c0_132, %c1_133, %c0_134, %c0_135] : memref<2x5x120x80xf32, #tpu.memory_space<vmem>>, vector<1x1x120x80xf32>
    %146 = vector.shape_cast %145 : vector<1x1x120x80xf32> to vector<120x80xf32>
    %cst_136 = arith.constant dense<0.000000e+00> : vector<64x80xf32>
    %147 = tpu.matmul %144, %146, %cst_136 {dimension_numbers = #tpu.dot_dimension_numbers<[1], [0], [0], [1], [0, 0, 1, 1], [], []>} : vector<64x120xf32>, vector<120x80xf32>, vector<64x80xf32> -> vector<64x80xf32>
    %148 = arith.addf %127, %147 : vector<64x80xf32>
    %149 = vector.extract_strided_slice %107 {offsets = [2, 0, 0], sizes = [1, 8, 120], strides = [1, 1, 1]} : vector<12x8x120xf32> to vector<1x8x120xf32>
    %150 = vector.shape_cast %149 : vector<1x8x120xf32> to vector<8x120xf32>
    %151 = vector.extract_strided_slice %107 {offsets = [4, 0, 0], sizes = [1, 8, 120], strides = [1, 1, 1]} : vector<12x8x120xf32> to vector<1x8x120xf32>
    %152 = vector.shape_cast %151 : vector<1x8x120xf32> to vector<8x120xf32>
    %153 = vector.extract_strided_slice %107 {offsets = [6, 0, 0], sizes = [1, 8, 120], strides = [1, 1, 1]} : vector<12x8x120xf32> to vector<1x8x120xf32>
    %154 = vector.shape_cast %153 : vector<1x8x120xf32> to vector<8x120xf32>
    %155 = vector.extract_strided_slice %107 {offsets = [8, 0, 0], sizes = [1, 8, 120], strides = [1, 1, 1]} : vector<12x8x120xf32> to vector<1x8x120xf32>
    %156 = vector.shape_cast %155 : vector<1x8x120xf32> to vector<8x120xf32>
    %157 = vector.extract_strided_slice %107 {offsets = [3, 0, 0], sizes = [1, 8, 120], strides = [1, 1, 1]} : vector<12x8x120xf32> to vector<1x8x120xf32>
    %158 = vector.shape_cast %157 : vector<1x8x120xf32> to vector<8x120xf32>
    %159 = vector.extract_strided_slice %107 {offsets = [5, 0, 0], sizes = [1, 8, 120], strides = [1, 1, 1]} : vector<12x8x120xf32> to vector<1x8x120xf32>
    %160 = vector.shape_cast %159 : vector<1x8x120xf32> to vector<8x120xf32>
    %161 = vector.extract_strided_slice %107 {offsets = [7, 0, 0], sizes = [1, 8, 120], strides = [1, 1, 1]} : vector<12x8x120xf32> to vector<1x8x120xf32>
    %162 = vector.shape_cast %161 : vector<1x8x120xf32> to vector<8x120xf32>
    %163 = vector.extract_strided_slice %107 {offsets = [9, 0, 0], sizes = [1, 8, 120], strides = [1, 1, 1]} : vector<12x8x120xf32> to vector<1x8x120xf32>
    %164 = vector.shape_cast %163 : vector<1x8x120xf32> to vector<8x120xf32>
    %165 = tpu.concatenate %150, %152, %154, %156, %158, %160, %162, %164 in 0 : vector<8x120xf32>, vector<8x120xf32>, vector<8x120xf32>, vector<8x120xf32>, vector<8x120xf32>, vector<8x120xf32>, vector<8x120xf32>, vector<8x120xf32> -> vector<64x120xf32>
    %c0_137 = arith.constant 0 : index
    %c2_138 = arith.constant 2 : index
    %c0_139 = arith.constant 0 : index
    %c0_140 = arith.constant 0 : index
    %166 = vector.load %arg4[%c0_137, %c2_138, %c0_139, %c0_140] : memref<2x5x120x80xf32, #tpu.memory_space<vmem>>, vector<1x1x120x80xf32>
    %167 = vector.shape_cast %166 : vector<1x1x120x80xf32> to vector<120x80xf32>
    %cst_141 = arith.constant dense<0.000000e+00> : vector<64x80xf32>
    %168 = tpu.matmul %165, %167, %cst_141 {dimension_numbers = #tpu.dot_dimension_numbers<[1], [0], [0], [1], [0, 0, 1, 1], [], []>} : vector<64x120xf32>, vector<120x80xf32>, vector<64x80xf32> -> vector<64x80xf32>
    %169 = arith.addf %148, %168 : vector<64x80xf32>
    %170 = vector.extract_strided_slice %107 {offsets = [3, 0, 0], sizes = [1, 8, 120], strides = [1, 1, 1]} : vector<12x8x120xf32> to vector<1x8x120xf32>
    %171 = vector.shape_cast %170 : vector<1x8x120xf32> to vector<8x120xf32>
    %172 = vector.extract_strided_slice %107 {offsets = [5, 0, 0], sizes = [1, 8, 120], strides = [1, 1, 1]} : vector<12x8x120xf32> to vector<1x8x120xf32>
    %173 = vector.shape_cast %172 : vector<1x8x120xf32> to vector<8x120xf32>
    %174 = vector.extract_strided_slice %107 {offsets = [7, 0, 0], sizes = [1, 8, 120], strides = [1, 1, 1]} : vector<12x8x120xf32> to vector<1x8x120xf32>
    %175 = vector.shape_cast %174 : vector<1x8x120xf32> to vector<8x120xf32>
    %176 = vector.extract_strided_slice %107 {offsets = [9, 0, 0], sizes = [1, 8, 120], strides = [1, 1, 1]} : vector<12x8x120xf32> to vector<1x8x120xf32>
    %177 = vector.shape_cast %176 : vector<1x8x120xf32> to vector<8x120xf32>
    %178 = vector.extract_strided_slice %107 {offsets = [4, 0, 0], sizes = [1, 8, 120], strides = [1, 1, 1]} : vector<12x8x120xf32> to vector<1x8x120xf32>
    %179 = vector.shape_cast %178 : vector<1x8x120xf32> to vector<8x120xf32>
    %180 = vector.extract_strided_slice %107 {offsets = [6, 0, 0], sizes = [1, 8, 120], strides = [1, 1, 1]} : vector<12x8x120xf32> to vector<1x8x120xf32>
    %181 = vector.shape_cast %180 : vector<1x8x120xf32> to vector<8x120xf32>
    %182 = vector.extract_strided_slice %107 {offsets = [8, 0, 0], sizes = [1, 8, 120], strides = [1, 1, 1]} : vector<12x8x120xf32> to vector<1x8x120xf32>
    %183 = vector.shape_cast %182 : vector<1x8x120xf32> to vector<8x120xf32>
    %184 = vector.extract_strided_slice %107 {offsets = [10, 0, 0], sizes = [1, 8, 120], strides = [1, 1, 1]} : vector<12x8x120xf32> to vector<1x8x120xf32>
    %185 = vector.shape_cast %184 : vector<1x8x120xf32> to vector<8x120xf32>
    %186 = tpu.concatenate %171, %173, %175, %177, %179, %181, %183, %185 in 0 : vector<8x120xf32>, vector<8x120xf32>, vector<8x120xf32>, vector<8x120xf32>, vector<8x120xf32>, vector<8x120xf32>, vector<8x120xf32>, vector<8x120xf32> -> vector<64x120xf32>
    %c0_142 = arith.constant 0 : index
    %c3_143 = arith.constant 3 : index
    %c0_144 = arith.constant 0 : index
    %c0_145 = arith.constant 0 : index
    %187 = vector.load %arg4[%c0_142, %c3_143, %c0_144, %c0_145] : memref<2x5x120x80xf32, #tpu.memory_space<vmem>>, vector<1x1x120x80xf32>
    %188 = vector.shape_cast %187 : vector<1x1x120x80xf32> to vector<120x80xf32>
    %cst_146 = arith.constant dense<0.000000e+00> : vector<64x80xf32>
    %189 = tpu.matmul %186, %188, %cst_146 {dimension_numbers = #tpu.dot_dimension_numbers<[1], [0], [0], [1], [0, 0, 1, 1], [], []>} : vector<64x120xf32>, vector<120x80xf32>, vector<64x80xf32> -> vector<64x80xf32>
    %190 = arith.addf %169, %189 : vector<64x80xf32>
    %191 = vector.extract_strided_slice %107 {offsets = [4, 0, 0], sizes = [1, 8, 120], strides = [1, 1, 1]} : vector<12x8x120xf32> to vector<1x8x120xf32>
    %192 = vector.shape_cast %191 : vector<1x8x120xf32> to vector<8x120xf32>
    %193 = vector.extract_strided_slice %107 {offsets = [6, 0, 0], sizes = [1, 8, 120], strides = [1, 1, 1]} : vector<12x8x120xf32> to vector<1x8x120xf32>
    %194 = vector.shape_cast %193 : vector<1x8x120xf32> to vector<8x120xf32>
    %195 = vector.extract_strided_slice %107 {offsets = [8, 0, 0], sizes = [1, 8, 120], strides = [1, 1, 1]} : vector<12x8x120xf32> to vector<1x8x120xf32>
    %196 = vector.shape_cast %195 : vector<1x8x120xf32> to vector<8x120xf32>
    %197 = vector.extract_strided_slice %107 {offsets = [10, 0, 0], sizes = [1, 8, 120], strides = [1, 1, 1]} : vector<12x8x120xf32> to vector<1x8x120xf32>
    %198 = vector.shape_cast %197 : vector<1x8x120xf32> to vector<8x120xf32>
    %199 = vector.extract_strided_slice %107 {offsets = [5, 0, 0], sizes = [1, 8, 120], strides = [1, 1, 1]} : vector<12x8x120xf32> to vector<1x8x120xf32>
    %200 = vector.shape_cast %199 : vector<1x8x120xf32> to vector<8x120xf32>
    %201 = vector.extract_strided_slice %107 {offsets = [7, 0, 0], sizes = [1, 8, 120], strides = [1, 1, 1]} : vector<12x8x120xf32> to vector<1x8x120xf32>
    %202 = vector.shape_cast %201 : vector<1x8x120xf32> to vector<8x120xf32>
    %203 = vector.extract_strided_slice %107 {offsets = [9, 0, 0], sizes = [1, 8, 120], strides = [1, 1, 1]} : vector<12x8x120xf32> to vector<1x8x120xf32>
    %204 = vector.shape_cast %203 : vector<1x8x120xf32> to vector<8x120xf32>
    %205 = vector.extract_strided_slice %107 {offsets = [11, 0, 0], sizes = [1, 8, 120], strides = [1, 1, 1]} : vector<12x8x120xf32> to vector<1x8x120xf32>
    %206 = vector.shape_cast %205 : vector<1x8x120xf32> to vector<8x120xf32>
    %207 = tpu.concatenate %192, %194, %196, %198, %200, %202, %204, %206 in 0 : vector<8x120xf32>, vector<8x120xf32>, vector<8x120xf32>, vector<8x120xf32>, vector<8x120xf32>, vector<8x120xf32>, vector<8x120xf32>, vector<8x120xf32> -> vector<64x120xf32>
    %c0_147 = arith.constant 0 : index
    %c4_148 = arith.constant 4 : index
    %c0_149 = arith.constant 0 : index
    %c0_150 = arith.constant 0 : index
    %208 = vector.load %arg4[%c0_147, %c4_148, %c0_149, %c0_150] : memref<2x5x120x80xf32, #tpu.memory_space<vmem>>, vector<1x1x120x80xf32>
    %209 = vector.shape_cast %208 : vector<1x1x120x80xf32> to vector<120x80xf32>
    %cst_151 = arith.constant dense<0.000000e+00> : vector<64x80xf32>
    %210 = tpu.matmul %207, %209, %cst_151 {dimension_numbers = #tpu.dot_dimension_numbers<[1], [0], [0], [1], [0, 0, 1, 1], [], []>} : vector<64x120xf32>, vector<120x80xf32>, vector<64x80xf32> -> vector<64x80xf32>
    %211 = arith.addf %190, %210 : vector<64x80xf32>
    %212 = vector.extract_strided_slice %107 {offsets = [0, 0, 0], sizes = [1, 8, 120], strides = [1, 1, 1]} : vector<12x8x120xf32> to vector<1x8x120xf32>
    %213 = vector.shape_cast %212 : vector<1x8x120xf32> to vector<8x120xf32>
    %214 = vector.extract_strided_slice %107 {offsets = [2, 0, 0], sizes = [1, 8, 120], strides = [1, 1, 1]} : vector<12x8x120xf32> to vector<1x8x120xf32>
    %215 = vector.shape_cast %214 : vector<1x8x120xf32> to vector<8x120xf32>
    %216 = vector.extract_strided_slice %107 {offsets = [4, 0, 0], sizes = [1, 8, 120], strides = [1, 1, 1]} : vector<12x8x120xf32> to vector<1x8x120xf32>
    %217 = vector.shape_cast %216 : vector<1x8x120xf32> to vector<8x120xf32>
    %218 = vector.extract_strided_slice %107 {offsets = [6, 0, 0], sizes = [1, 8, 120], strides = [1, 1, 1]} : vector<12x8x120xf32> to vector<1x8x120xf32>
    %219 = vector.shape_cast %218 : vector<1x8x120xf32> to vector<8x120xf32>
    %220 = vector.extract_strided_slice %107 {offsets = [1, 0, 0], sizes = [1, 8, 120], strides = [1, 1, 1]} : vector<12x8x120xf32> to vector<1x8x120xf32>
    %221 = vector.shape_cast %220 : vector<1x8x120xf32> to vector<8x120xf32>
    %222 = vector.extract_strided_slice %107 {offsets = [3, 0, 0], sizes = [1, 8, 120], strides = [1, 1, 1]} : vector<12x8x120xf32> to vector<1x8x120xf32>
    %223 = vector.shape_cast %222 : vector<1x8x120xf32> to vector<8x120xf32>
    %224 = vector.extract_strided_slice %107 {offsets = [5, 0, 0], sizes = [1, 8, 120], strides = [1, 1, 1]} : vector<12x8x120xf32> to vector<1x8x120xf32>
    %225 = vector.shape_cast %224 : vector<1x8x120xf32> to vector<8x120xf32>
    %226 = vector.extract_strided_slice %107 {offsets = [7, 0, 0], sizes = [1, 8, 120], strides = [1, 1, 1]} : vector<12x8x120xf32> to vector<1x8x120xf32>
    %227 = vector.shape_cast %226 : vector<1x8x120xf32> to vector<8x120xf32>
    %228 = tpu.concatenate %213, %215, %217, %219, %221, %223, %225, %227 in 0 : vector<8x120xf32>, vector<8x120xf32>, vector<8x120xf32>, vector<8x120xf32>, vector<8x120xf32>, vector<8x120xf32>, vector<8x120xf32>, vector<8x120xf32> -> vector<64x120xf32>
    %c1_152 = arith.constant 1 : index
    %c0_153 = arith.constant 0 : index
    %c0_154 = arith.constant 0 : index
    %c0_155 = arith.constant 0 : index
    %229 = vector.load %arg4[%c1_152, %c0_153, %c0_154, %c0_155] : memref<2x5x120x80xf32, #tpu.memory_space<vmem>>, vector<1x1x120x80xf32>
    %230 = vector.shape_cast %229 : vector<1x1x120x80xf32> to vector<120x80xf32>
    %cst_156 = arith.constant dense<0.000000e+00> : vector<64x80xf32>
    %231 = tpu.matmul %228, %230, %cst_156 {dimension_numbers = #tpu.dot_dimension_numbers<[1], [0], [0], [1], [0, 0, 1, 1], [], []>} : vector<64x120xf32>, vector<120x80xf32>, vector<64x80xf32> -> vector<64x80xf32>
    %232 = vector.extract_strided_slice %107 {offsets = [1, 0, 0], sizes = [1, 8, 120], strides = [1, 1, 1]} : vector<12x8x120xf32> to vector<1x8x120xf32>
    %233 = vector.shape_cast %232 : vector<1x8x120xf32> to vector<8x120xf32>
    %234 = vector.extract_strided_slice %107 {offsets = [3, 0, 0], sizes = [1, 8, 120], strides = [1, 1, 1]} : vector<12x8x120xf32> to vector<1x8x120xf32>
    %235 = vector.shape_cast %234 : vector<1x8x120xf32> to vector<8x120xf32>
    %236 = vector.extract_strided_slice %107 {offsets = [5, 0, 0], sizes = [1, 8, 120], strides = [1, 1, 1]} : vector<12x8x120xf32> to vector<1x8x120xf32>
    %237 = vector.shape_cast %236 : vector<1x8x120xf32> to vector<8x120xf32>
    %238 = vector.extract_strided_slice %107 {offsets = [7, 0, 0], sizes = [1, 8, 120], strides = [1, 1, 1]} : vector<12x8x120xf32> to vector<1x8x120xf32>
    %239 = vector.shape_cast %238 : vector<1x8x120xf32> to vector<8x120xf32>
    %240 = vector.extract_strided_slice %107 {offsets = [2, 0, 0], sizes = [1, 8, 120], strides = [1, 1, 1]} : vector<12x8x120xf32> to vector<1x8x120xf32>
    %241 = vector.shape_cast %240 : vector<1x8x120xf32> to vector<8x120xf32>
    %242 = vector.extract_strided_slice %107 {offsets = [4, 0, 0], sizes = [1, 8, 120], strides = [1, 1, 1]} : vector<12x8x120xf32> to vector<1x8x120xf32>
    %243 = vector.shape_cast %242 : vector<1x8x120xf32> to vector<8x120xf32>
    %244 = vector.extract_strided_slice %107 {offsets = [6, 0, 0], sizes = [1, 8, 120], strides = [1, 1, 1]} : vector<12x8x120xf32> to vector<1x8x120xf32>
    %245 = vector.shape_cast %244 : vector<1x8x120xf32> to vector<8x120xf32>
    %246 = vector.extract_strided_slice %107 {offsets = [8, 0, 0], sizes = [1, 8, 120], strides = [1, 1, 1]} : vector<12x8x120xf32> to vector<1x8x120xf32>
    %247 = vector.shape_cast %246 : vector<1x8x120xf32> to vector<8x120xf32>
    %248 = tpu.concatenate %233, %235, %237, %239, %241, %243, %245, %247 in 0 : vector<8x120xf32>, vector<8x120xf32>, vector<8x120xf32>, vector<8x120xf32>, vector<8x120xf32>, vector<8x120xf32>, vector<8x120xf32>, vector<8x120xf32> -> vector<64x120xf32>
    %c1_157 = arith.constant 1 : index
    %c1_158 = arith.constant 1 : index
    %c0_159 = arith.constant 0 : index
    %c0_160 = arith.constant 0 : index
    %249 = vector.load %arg4[%c1_157, %c1_158, %c0_159, %c0_160] : memref<2x5x120x80xf32, #tpu.memory_space<vmem>>, vector<1x1x120x80xf32>
    %250 = vector.shape_cast %249 : vector<1x1x120x80xf32> to vector<120x80xf32>
    %cst_161 = arith.constant dense<0.000000e+00> : vector<64x80xf32>
    %251 = tpu.matmul %248, %250, %cst_161 {dimension_numbers = #tpu.dot_dimension_numbers<[1], [0], [0], [1], [0, 0, 1, 1], [], []>} : vector<64x120xf32>, vector<120x80xf32>, vector<64x80xf32> -> vector<64x80xf32>
    %252 = arith.addf %231, %251 : vector<64x80xf32>
    %253 = vector.extract_strided_slice %107 {offsets = [2, 0, 0], sizes = [1, 8, 120], strides = [1, 1, 1]} : vector<12x8x120xf32> to vector<1x8x120xf32>
    %254 = vector.shape_cast %253 : vector<1x8x120xf32> to vector<8x120xf32>
    %255 = vector.extract_strided_slice %107 {offsets = [4, 0, 0], sizes = [1, 8, 120], strides = [1, 1, 1]} : vector<12x8x120xf32> to vector<1x8x120xf32>
    %256 = vector.shape_cast %255 : vector<1x8x120xf32> to vector<8x120xf32>
    %257 = vector.extract_strided_slice %107 {offsets = [6, 0, 0], sizes = [1, 8, 120], strides = [1, 1, 1]} : vector<12x8x120xf32> to vector<1x8x120xf32>
    %258 = vector.shape_cast %257 : vector<1x8x120xf32> to vector<8x120xf32>
    %259 = vector.extract_strided_slice %107 {offsets = [8, 0, 0], sizes = [1, 8, 120], strides = [1, 1, 1]} : vector<12x8x120xf32> to vector<1x8x120xf32>
    %260 = vector.shape_cast %259 : vector<1x8x120xf32> to vector<8x120xf32>
    %261 = vector.extract_strided_slice %107 {offsets = [3, 0, 0], sizes = [1, 8, 120], strides = [1, 1, 1]} : vector<12x8x120xf32> to vector<1x8x120xf32>
    %262 = vector.shape_cast %261 : vector<1x8x120xf32> to vector<8x120xf32>
    %263 = vector.extract_strided_slice %107 {offsets = [5, 0, 0], sizes = [1, 8, 120], strides = [1, 1, 1]} : vector<12x8x120xf32> to vector<1x8x120xf32>
    %264 = vector.shape_cast %263 : vector<1x8x120xf32> to vector<8x120xf32>
    %265 = vector.extract_strided_slice %107 {offsets = [7, 0, 0], sizes = [1, 8, 120], strides = [1, 1, 1]} : vector<12x8x120xf32> to vector<1x8x120xf32>
    %266 = vector.shape_cast %265 : vector<1x8x120xf32> to vector<8x120xf32>
    %267 = vector.extract_strided_slice %107 {offsets = [9, 0, 0], sizes = [1, 8, 120], strides = [1, 1, 1]} : vector<12x8x120xf32> to vector<1x8x120xf32>
    %268 = vector.shape_cast %267 : vector<1x8x120xf32> to vector<8x120xf32>
    %269 = tpu.concatenate %254, %256, %258, %260, %262, %264, %266, %268 in 0 : vector<8x120xf32>, vector<8x120xf32>, vector<8x120xf32>, vector<8x120xf32>, vector<8x120xf32>, vector<8x120xf32>, vector<8x120xf32>, vector<8x120xf32> -> vector<64x120xf32>
    %c1_162 = arith.constant 1 : index
    %c2_163 = arith.constant 2 : index
    %c0_164 = arith.constant 0 : index
    %c0_165 = arith.constant 0 : index
    %270 = vector.load %arg4[%c1_162, %c2_163, %c0_164, %c0_165] : memref<2x5x120x80xf32, #tpu.memory_space<vmem>>, vector<1x1x120x80xf32>
    %271 = vector.shape_cast %270 : vector<1x1x120x80xf32> to vector<120x80xf32>
    %cst_166 = arith.constant dense<0.000000e+00> : vector<64x80xf32>
    %272 = tpu.matmul %269, %271, %cst_166 {dimension_numbers = #tpu.dot_dimension_numbers<[1], [0], [0], [1], [0, 0, 1, 1], [], []>} : vector<64x120xf32>, vector<120x80xf32>, vector<64x80xf32> -> vector<64x80xf32>
    %273 = arith.addf %252, %272 : vector<64x80xf32>
    %274 = vector.extract_strided_slice %107 {offsets = [3, 0, 0], sizes = [1, 8, 120], strides = [1, 1, 1]} : vector<12x8x120xf32> to vector<1x8x120xf32>
    %275 = vector.shape_cast %274 : vector<1x8x120xf32> to vector<8x120xf32>
    %276 = vector.extract_strided_slice %107 {offsets = [5, 0, 0], sizes = [1, 8, 120], strides = [1, 1, 1]} : vector<12x8x120xf32> to vector<1x8x120xf32>
    %277 = vector.shape_cast %276 : vector<1x8x120xf32> to vector<8x120xf32>
    %278 = vector.extract_strided_slice %107 {offsets = [7, 0, 0], sizes = [1, 8, 120], strides = [1, 1, 1]} : vector<12x8x120xf32> to vector<1x8x120xf32>
    %279 = vector.shape_cast %278 : vector<1x8x120xf32> to vector<8x120xf32>
    %280 = vector.extract_strided_slice %107 {offsets = [9, 0, 0], sizes = [1, 8, 120], strides = [1, 1, 1]} : vector<12x8x120xf32> to vector<1x8x120xf32>
    %281 = vector.shape_cast %280 : vector<1x8x120xf32> to vector<8x120xf32>
    %282 = vector.extract_strided_slice %107 {offsets = [4, 0, 0], sizes = [1, 8, 120], strides = [1, 1, 1]} : vector<12x8x120xf32> to vector<1x8x120xf32>
    %283 = vector.shape_cast %282 : vector<1x8x120xf32> to vector<8x120xf32>
    %284 = vector.extract_strided_slice %107 {offsets = [6, 0, 0], sizes = [1, 8, 120], strides = [1, 1, 1]} : vector<12x8x120xf32> to vector<1x8x120xf32>
    %285 = vector.shape_cast %284 : vector<1x8x120xf32> to vector<8x120xf32>
    %286 = vector.extract_strided_slice %107 {offsets = [8, 0, 0], sizes = [1, 8, 120], strides = [1, 1, 1]} : vector<12x8x120xf32> to vector<1x8x120xf32>
    %287 = vector.shape_cast %286 : vector<1x8x120xf32> to vector<8x120xf32>
    %288 = vector.extract_strided_slice %107 {offsets = [10, 0, 0], sizes = [1, 8, 120], strides = [1, 1, 1]} : vector<12x8x120xf32> to vector<1x8x120xf32>
    %289 = vector.shape_cast %288 : vector<1x8x120xf32> to vector<8x120xf32>
    %290 = tpu.concatenate %275, %277, %279, %281, %283, %285, %287, %289 in 0 : vector<8x120xf32>, vector<8x120xf32>, vector<8x120xf32>, vector<8x120xf32>, vector<8x120xf32>, vector<8x120xf32>, vector<8x120xf32>, vector<8x120xf32> -> vector<64x120xf32>
    %c1_167 = arith.constant 1 : index
    %c3_168 = arith.constant 3 : index
    %c0_169 = arith.constant 0 : index
    %c0_170 = arith.constant 0 : index
    %291 = vector.load %arg4[%c1_167, %c3_168, %c0_169, %c0_170] : memref<2x5x120x80xf32, #tpu.memory_space<vmem>>, vector<1x1x120x80xf32>
    %292 = vector.shape_cast %291 : vector<1x1x120x80xf32> to vector<120x80xf32>
    %cst_171 = arith.constant dense<0.000000e+00> : vector<64x80xf32>
    %293 = tpu.matmul %290, %292, %cst_171 {dimension_numbers = #tpu.dot_dimension_numbers<[1], [0], [0], [1], [0, 0, 1, 1], [], []>} : vector<64x120xf32>, vector<120x80xf32>, vector<64x80xf32> -> vector<64x80xf32>
    %294 = arith.addf %273, %293 : vector<64x80xf32>
    %295 = vector.extract_strided_slice %107 {offsets = [4, 0, 0], sizes = [1, 8, 120], strides = [1, 1, 1]} : vector<12x8x120xf32> to vector<1x8x120xf32>
    %296 = vector.shape_cast %295 : vector<1x8x120xf32> to vector<8x120xf32>
    %297 = vector.extract_strided_slice %107 {offsets = [6, 0, 0], sizes = [1, 8, 120], strides = [1, 1, 1]} : vector<12x8x120xf32> to vector<1x8x120xf32>
    %298 = vector.shape_cast %297 : vector<1x8x120xf32> to vector<8x120xf32>
    %299 = vector.extract_strided_slice %107 {offsets = [8, 0, 0], sizes = [1, 8, 120], strides = [1, 1, 1]} : vector<12x8x120xf32> to vector<1x8x120xf32>
    %300 = vector.shape_cast %299 : vector<1x8x120xf32> to vector<8x120xf32>
    %301 = vector.extract_strided_slice %107 {offsets = [10, 0, 0], sizes = [1, 8, 120], strides = [1, 1, 1]} : vector<12x8x120xf32> to vector<1x8x120xf32>
    %302 = vector.shape_cast %301 : vector<1x8x120xf32> to vector<8x120xf32>
    %303 = vector.extract_strided_slice %107 {offsets = [5, 0, 0], sizes = [1, 8, 120], strides = [1, 1, 1]} : vector<12x8x120xf32> to vector<1x8x120xf32>
    %304 = vector.shape_cast %303 : vector<1x8x120xf32> to vector<8x120xf32>
    %305 = vector.extract_strided_slice %107 {offsets = [7, 0, 0], sizes = [1, 8, 120], strides = [1, 1, 1]} : vector<12x8x120xf32> to vector<1x8x120xf32>
    %306 = vector.shape_cast %305 : vector<1x8x120xf32> to vector<8x120xf32>
    %307 = vector.extract_strided_slice %107 {offsets = [9, 0, 0], sizes = [1, 8, 120], strides = [1, 1, 1]} : vector<12x8x120xf32> to vector<1x8x120xf32>
    %308 = vector.shape_cast %307 : vector<1x8x120xf32> to vector<8x120xf32>
    %309 = vector.extract_strided_slice %107 {offsets = [11, 0, 0], sizes = [1, 8, 120], strides = [1, 1, 1]} : vector<12x8x120xf32> to vector<1x8x120xf32>
    %310 = vector.shape_cast %309 : vector<1x8x120xf32> to vector<8x120xf32>
    %311 = tpu.concatenate %296, %298, %300, %302, %304, %306, %308, %310 in 0 : vector<8x120xf32>, vector<8x120xf32>, vector<8x120xf32>, vector<8x120xf32>, vector<8x120xf32>, vector<8x120xf32>, vector<8x120xf32>, vector<8x120xf32> -> vector<64x120xf32>
    %c1_172 = arith.constant 1 : index
    %c4_173 = arith.constant 4 : index
    %c0_174 = arith.constant 0 : index
    %c0_175 = arith.constant 0 : index
    %312 = vector.load %arg4[%c1_172, %c4_173, %c0_174, %c0_175] : memref<2x5x120x80xf32, #tpu.memory_space<vmem>>, vector<1x1x120x80xf32>
    %313 = vector.shape_cast %312 : vector<1x1x120x80xf32> to vector<120x80xf32>
    %cst_176 = arith.constant dense<0.000000e+00> : vector<64x80xf32>
    %314 = tpu.matmul %311, %313, %cst_176 {dimension_numbers = #tpu.dot_dimension_numbers<[1], [0], [0], [1], [0, 0, 1, 1], [], []>} : vector<64x120xf32>, vector<120x80xf32>, vector<64x80xf32> -> vector<64x80xf32>
    %315 = arith.addf %294, %314 : vector<64x80xf32>
    %316 = arith.maximumf %211, %315 : vector<64x80xf32>
    %317 = vector.extract_strided_slice %316 {offsets = [0, 0], sizes = [32, 80], strides = [1, 1]} : vector<64x80xf32> to vector<32x80xf32>
    %318 = vector.extract_strided_slice %316 {offsets = [32, 0], sizes = [32, 80], strides = [1, 1]} : vector<64x80xf32> to vector<32x80xf32>
    %319 = arith.maximumf %317, %318 : vector<32x80xf32>
    %c0_177 = arith.constant 0 : index
    %c0_178 = arith.constant 0 : index
    %320 = vector.load %arg5[%c0_177, %c0_178] : memref<1x80xf32, #tpu.memory_space<vmem>>, vector<1x80xf32>
    %321 = vector.broadcast %320 : vector<1x80xf32> to vector<32x80xf32>
    %322 = arith.addf %319, %321 : vector<32x80xf32>
    %cst_179 = arith.constant 0.000000e+00 : f32
    %323 = vector.broadcast %cst_179 : f32 to vector<32x80xf32>
    %324 = arith.maximumf %322, %323 : vector<32x80xf32>
    %325 = vector.shape_cast %324 : vector<32x80xf32> to vector<4x8x80xf32>
    %326 = vector.extract_strided_slice %325 {offsets = [0, 0, 0], sizes = [1, 8, 80], strides = [1, 1, 1]} : vector<4x8x80xf32> to vector<1x8x80xf32>
    %327 = vector.shape_cast %326 : vector<1x8x80xf32> to vector<8x80xf32>
    %c0_180 = arith.constant 0 : index
    %c0_181 = arith.constant 0 : index
    %c0_182 = arith.constant 0 : index
    %328 = vector.load %arg6[%c0_180, %c0_181, %c0_182] : memref<4x80x50xf32, #tpu.memory_space<vmem>>, vector<1x80x50xf32>
    %329 = vector.shape_cast %328 : vector<1x80x50xf32> to vector<80x50xf32>
    %cst_183 = arith.constant dense<0.000000e+00> : vector<8x50xf32>
    %330 = tpu.matmul %327, %329, %cst_183 {dimension_numbers = #tpu.dot_dimension_numbers<[1], [0], [0], [1], [0, 0, 1, 1], [], []>} : vector<8x80xf32>, vector<80x50xf32>, vector<8x50xf32> -> vector<8x50xf32>
    %331 = vector.extract_strided_slice %325 {offsets = [1, 0, 0], sizes = [1, 8, 80], strides = [1, 1, 1]} : vector<4x8x80xf32> to vector<1x8x80xf32>
    %332 = vector.shape_cast %331 : vector<1x8x80xf32> to vector<8x80xf32>
    %c1_184 = arith.constant 1 : index
    %c0_185 = arith.constant 0 : index
    %c0_186 = arith.constant 0 : index
    %333 = vector.load %arg6[%c1_184, %c0_185, %c0_186] : memref<4x80x50xf32, #tpu.memory_space<vmem>>, vector<1x80x50xf32>
    %334 = vector.shape_cast %333 : vector<1x80x50xf32> to vector<80x50xf32>
    %cst_187 = arith.constant dense<0.000000e+00> : vector<8x50xf32>
    %335 = tpu.matmul %332, %334, %cst_187 {dimension_numbers = #tpu.dot_dimension_numbers<[1], [0], [0], [1], [0, 0, 1, 1], [], []>} : vector<8x80xf32>, vector<80x50xf32>, vector<8x50xf32> -> vector<8x50xf32>
    %336 = arith.addf %330, %335 : vector<8x50xf32>
    %337 = vector.extract_strided_slice %325 {offsets = [2, 0, 0], sizes = [1, 8, 80], strides = [1, 1, 1]} : vector<4x8x80xf32> to vector<1x8x80xf32>
    %338 = vector.shape_cast %337 : vector<1x8x80xf32> to vector<8x80xf32>
    %c2_188 = arith.constant 2 : index
    %c0_189 = arith.constant 0 : index
    %c0_190 = arith.constant 0 : index
    %339 = vector.load %arg6[%c2_188, %c0_189, %c0_190] : memref<4x80x50xf32, #tpu.memory_space<vmem>>, vector<1x80x50xf32>
    %340 = vector.shape_cast %339 : vector<1x80x50xf32> to vector<80x50xf32>
    %cst_191 = arith.constant dense<0.000000e+00> : vector<8x50xf32>
    %341 = tpu.matmul %338, %340, %cst_191 {dimension_numbers = #tpu.dot_dimension_numbers<[1], [0], [0], [1], [0, 0, 1, 1], [], []>} : vector<8x80xf32>, vector<80x50xf32>, vector<8x50xf32> -> vector<8x50xf32>
    %342 = arith.addf %336, %341 : vector<8x50xf32>
    %343 = vector.extract_strided_slice %325 {offsets = [3, 0, 0], sizes = [1, 8, 80], strides = [1, 1, 1]} : vector<4x8x80xf32> to vector<1x8x80xf32>
    %344 = vector.shape_cast %343 : vector<1x8x80xf32> to vector<8x80xf32>
    %c3_192 = arith.constant 3 : index
    %c0_193 = arith.constant 0 : index
    %c0_194 = arith.constant 0 : index
    %345 = vector.load %arg6[%c3_192, %c0_193, %c0_194] : memref<4x80x50xf32, #tpu.memory_space<vmem>>, vector<1x80x50xf32>
    %346 = vector.shape_cast %345 : vector<1x80x50xf32> to vector<80x50xf32>
    %cst_195 = arith.constant dense<0.000000e+00> : vector<8x50xf32>
    %347 = tpu.matmul %344, %346, %cst_195 {dimension_numbers = #tpu.dot_dimension_numbers<[1], [0], [0], [1], [0, 0, 1, 1], [], []>} : vector<8x80xf32>, vector<80x50xf32>, vector<8x50xf32> -> vector<8x50xf32>
    %348 = arith.addf %342, %347 : vector<8x50xf32>
    %c0_196 = arith.constant 0 : index
    %c0_197 = arith.constant 0 : index
    %349 = vector.load %arg7[%c0_196, %c0_197] : memref<1x50xf32, #tpu.memory_space<vmem>>, vector<1x50xf32>
    %350 = vector.broadcast %349 : vector<1x50xf32> to vector<8x50xf32>
    %351 = arith.addf %348, %350 : vector<8x50xf32>
    %cst_198 = arith.constant 0.000000e+00 : f32
    %352 = vector.broadcast %cst_198 : f32 to vector<8x50xf32>
    %353 = arith.maximumf %351, %352 : vector<8x50xf32>
    %c0_199 = arith.constant 0 : index
    %c0_200 = arith.constant 0 : index
    %354 = vector.load %arg8[%c0_199, %c0_200] : memref<50x128xf32, #tpu.memory_space<vmem>>, vector<50x128xf32>
    %cst_201 = arith.constant dense<0.000000e+00> : vector<8x128xf32>
    %355 = tpu.matmul %353, %354, %cst_201 {dimension_numbers = #tpu.dot_dimension_numbers<[1], [0], [0], [1], [0, 0, 1, 1], [], []>} : vector<8x50xf32>, vector<50x128xf32>, vector<8x128xf32> -> vector<8x128xf32>
    %c0_202 = arith.constant 0 : index
    %c0_203 = arith.constant 0 : index
    %356 = vector.load %arg9[%c0_202, %c0_203] : memref<1x128xf32, #tpu.memory_space<vmem>>, vector<1x128xf32>
    %357 = vector.broadcast %356 : vector<1x128xf32> to vector<8x128xf32>
    %358 = arith.addf %355, %357 : vector<8x128xf32>
    %c0_204 = arith.constant 0 : index
    %c0_205 = arith.constant 0 : index
    %359 = vector.load %arg10[%c0_204, %c0_205] : memref<8x128xf32, #tpu.memory_space<vmem>>, vector<8x128xf32>
    tpu.vector_store %arg10[%c0_204, %c0_205], %358 {strides = array<i32>} : memref<8x128xf32, #tpu.memory_space<vmem>>, vector<8x128xf32>,
    return
  }
  func.func @transform_0(%arg0: i32) -> (i32, i32, i32, i32) {
    %c0_i32 = arith.constant 0 : i32
    %c0_i32_0 = arith.constant 0 : i32
    %c0_i32_1 = arith.constant 0 : i32
    %c0_i32_2 = arith.constant 0 : i32
    return %c0_i32, %c0_i32_0, %arg0, %c0_i32_1 : i32, i32, i32, i32
  }
  func.func @transform_1(%arg0: i32) -> (i32, i32, i32, i32) {
    %c0_i32 = arith.constant 0 : i32
    %c0_i32_0 = arith.constant 0 : i32
    %c0_i32_1 = arith.constant 0 : i32
    %c0_i32_2 = arith.constant 0 : i32
    %c0_i32_3 = arith.constant 0 : i32
    return %c0_i32, %c0_i32_0, %c0_i32_1, %c0_i32_2 : i32, i32, i32, i32
  }
  func.func @transform_2(%arg0: i32) -> (i32, i32) {
    %c0_i32 = arith.constant 0 : i32
    %c0_i32_0 = arith.constant 0 : i32
    %c0_i32_1 = arith.constant 0 : i32
    return %c0_i32, %c0_i32_0 : i32, i32
  }
  func.func @transform_3(%arg0: i32) -> (i32, i32, i32, i32) {
    %c0_i32 = arith.constant 0 : i32
    %c0_i32_0 = arith.constant 0 : i32
    %c0_i32_1 = arith.constant 0 : i32
    %c0_i32_2 = arith.constant 0 : i32
    %c0_i32_3 = arith.constant 0 : i32
    return %c0_i32, %c0_i32_0, %c0_i32_1, %c0_i32_2 : i32, i32, i32, i32
  }
  func.func @transform_4(%arg0: i32) -> (i32, i32) {
    %c0_i32 = arith.constant 0 : i32
    %c0_i32_0 = arith.constant 0 : i32
    %c0_i32_1 = arith.constant 0 : i32
    return %c0_i32, %c0_i32_0 : i32, i32
  }
  func.func @transform_5(%arg0: i32) -> (i32, i32, i32) {
    %c0_i32 = arith.constant 0 : i32
    %c0_i32_0 = arith.constant 0 : i32
    %c0_i32_1 = arith.constant 0 : i32
    %c0_i32_2 = arith.constant 0 : i32
    return %c0_i32, %c0_i32_0, %c0_i32_1 : i32, i32, i32
  }
  func.func @transform_6(%arg0: i32) -> (i32, i32) {
    %c0_i32 = arith.constant 0 : i32
    %c0_i32_0 = arith.constant 0 : i32
    %c0_i32_1 = arith.constant 0 : i32
    return %c0_i32, %c0_i32_0 : i32, i32
  }
  func.func @transform_7(%arg0: i32) -> (i32, i32) {
    %c0_i32 = arith.constant 0 : i32
    %c0_i32_0 = arith.constant 0 : i32
    %c0_i32_1 = arith.constant 0 : i32
    return %c0_i32, %c0_i32_0 : i32, i32
  }
  func.func @transform_8(%arg0: i32) -> (i32, i32) {
    %c0_i32 = arith.constant 0 : i32
    %c0_i32_0 = arith.constant 0 : i32
    %c0_i32_1 = arith.constant 0 : i32
    return %c0_i32, %c0_i32_0 : i32, i32
  }
  func.func @transform_9(%arg0: i32) -> (i32, i32) {
    %c0_i32 = arith.constant 0 : i32
    %c0_i32_0 = arith.constant 0 : i32
    return %arg0, %c0_i32 : i32, i32
  }
}

</mosaic_0001>

<bundles_post_ra>
// kernel: model_forward.1
= control target key start
LH: loop header
LB: loop body
LE: loop exit
PB: predicated region body
PF: predicated region fallthrough
CT: control target
= control target key end

     0   :  { %vm152_vm0 = vcmask 1043456   ;;  %vm7073_vm1 = vmmov 1   ;;  %vm79_vm3 = vcmask 228352   ;;  %vm2498_vm4 = vcmask 982016   ;;  %s8826_s1 = inlined_call_operand.vmem [shape: f32[2,5,28,120], index: 1, kind: input, shape index: {}]   ;;  %s8827_s0 = inlined_call_operand.vmem [shape: f32[2,14,8,28], index: 0, kind: input, shape index: {}]   ;;  %s8828_s3 = inlined_call_operand.vmem [shape: f32[2,5,120,80], index: 3, kind: input, shape index: {}]   ;;  %s8829_s2 = inlined_call_operand.vmem [shape: f32[1,120], index: 2, kind: input, shape index: {}]   ;;  %s8830_s5 = inlined_call_operand.vmem [shape: f32[4,80,50], index: 5, kind: input, shape index: {}]   ;;  %s8831_s4 = inlined_call_operand.vmem [shape: f32[1,80], index: 4, kind: input, shape index: {}]   ;;  %s8832_s7 = inlined_call_operand.vmem [shape: f32[50,128], index: 7, kind: input, shape index: {}]   ;;  %s8833_s6 = inlined_call_operand.vmem [shape: f32[1,50], index: 6, kind: input, shape index: {}]   ;;  %s8834_s8 = inlined_call_operand.vmem [shape: f32[1,128], index: 8, kind: input, shape index: {}]   ;;  %s8835_s9 = inlined_call_operand.vmem [shape: f32[8,128], index: 9, kind: output, shape index: {}]  }
   0x1   :  { %v4256_v0 = vld [vmem:[%s8826_s1 + $0x20] sm:$0xff]  ;;  %v4257_v1 = vld [vmem:[%s8826_s1 + $0x28] sm:$0xff]  ;;  %v4258_v5 = vld [vmem:[%s8826_s1 + $0x30] sm:$0xff]  ;;  %vm7075_vm5 = vmmov 0   ;;  %vm3809_vm6 = vcmask 654336   ;;  %vm4153_vm7 = vcmask 1041408  }
   0x2   :  { %v4437_v2 = vld [vmem:[%s8826_s1 + $0xc0] sm:$0xff]  ;;  %v6364_v3 = vpack.c.bf16 %v4257_v1, %v4256_v0  ;;  %v4438_v4 = vld [vmem:[%s8826_s1 + $0xc8] sm:$0xff]  ;;  %v4259_v6 = vld [vmem:[%s8826_s1 + $0x38] sm:$0xf]  ;;  %vm4149_vm8 = vcmask 408576  }
   0x3   :  { %v6414_v7 = vpack.c.bf16 %v4438_v4, %v4437_v2  ;;  %v6368_v8 = vpack.c.bf16 %v4259_v6, %v4258_v5  ;;  %vm7145_vm2 = vmpackc.low %vm152_vm0, %vm7073_vm1  ;;  %v4439_v10 = vld [vmem:[%s8826_s1 + $0xd0] sm:$0xff]  ;;  %v4440_v11 = vld [vmem:[%s8826_s1 + $0xd8] sm:$0xf] }
   0x4   :  { %6365 = vmatprep.subr.bf16.mxu0 %v6364_v3  ;;  %v6418_v12 = vpack.c.bf16 %v4440_v11, %v4439_v10  ;;  %v7158_v13 = vld [vmem:[%s8827_s0 + $0x70] sm:$0xff]  ;;  %v57_v14 = vld [vmem:[%s8826_s1] sm:$0xff]  ;;  %v58_v15 = vld [vmem:[%s8826_s1 + $0x8] sm:$0xff] }
   0x5   :  { %6415 = vmatprep.subr.bf16.mxu1 %v6414_v7  ;;  %6367 = vmatpush3.bf16.msra.mxu0 %v6364_v3  ;;  %v4433_v16 = vld [vmem:[%s8826_s1 + $0xa0] sm:$0xff]  ;;  %v4434_v17 = vld [vmem:[%s8826_s1 + $0xa8] sm:$0xff]  ;;  %v6374_v18 = vpack.c.bf16 %v58_v15, %v57_v14  ;;  %v7185_v20 = vld [vmem:[%s8827_s0 + $0x78] sm:$0xff] }
   0x6   :  { %6417 = vmatpush3.bf16.msra.mxu1 %v6414_v7  ;;  %6370 = vmatprep.subr.msk.bf16.mxu0 %vm7145_vm2, %v6368_v8  ;;  %v6424_v19 = vpack.c.bf16 %v4434_v17, %v4433_v16  ;;  %v59_v21 = vld [vmem:[%s8826_s1 + $0x10] sm:$0xff]  ;;  %v60_v22 = vld [vmem:[%s8826_s1 + $0x18] sm:$0xf]  ;;  %v7201_v24 = vld [vmem:[%s8827_s0 + $0x80] sm:$0xff] }
   0x7   :  { %6420 = vmatprep.subr.msk.bf16.mxu1 %vm7145_vm2, %v6418_v12  ;;  %5403 = vmatprep.mubr.msk.f32.mxu0 %vm79_vm3, %v7158_v13  ;;  %v4435_v23 = vld [vmem:[%s8826_s1 + $0xb0] sm:$0xff]  ;;  %v6378_v25 = vpack.c.bf16 %v60_v22, %v59_v21  ;;  %v4436_v26 = vld [vmem:[%s8826_s1 + $0xb8] sm:$0xf]  ;;  %v7213_v28 = vld [vmem:[%s8827_s0 + $0x88] sm:$0xff] }
   0x8   :  { %5623 = vmatprep.mubr.msk.f32.mxu1 %vm79_vm3, %v7158_v13  ;;  %v6428_v27 = vpack.c.bf16 %v4436_v26, %v4435_v23  ;;  %v7220_v29 = vld [vmem:[%s8827_s0 + $0x90] sm:$0xff]  ;;  %v4322_v30 = vld [vmem:[%s8826_s1 + $0x40] sm:$0xff]  ;;  %v4323_v31 = vld [vmem:[%s8826_s1 + $0x48] sm:$0xff] }
   0x9   :  { %6373 = vmatpush3.bf16.msk.msra.mxu0 %vm7145_vm2, %v6368_v8  ;;  %v4491_v32 = vld [vmem:[%s8826_s1 + $0xe0] sm:$0xff]  ;;  %v7239_v33 = vpack.c.bf16 %v4323_v31, %v4322_v30  ;;  %v4492_v34 = vld [vmem:[%s8826_s1 + $0xe8] sm:$0xff]  ;;  %v7251_v35 = vld [vmem:[%s8827_s0 + $0x98] sm:$0xff] }
   0xa   :  { %6423 = vmatpush3.bf16.msk.msra.mxu1 %vm7145_vm2, %v6418_v12  ;;  %6375 = vmatprep.subr.bf16.mxu0 %v6374_v18  ;;  %v7253_v36 = vpack.c.bf16 %v4492_v34, %v4491_v32  ;;  %v7260_v37 = vld [vmem:[%s8827_s0 + $0xa0] sm:$0xff]  ;;  %v7277_v38 = vld [vmem:[%s8827_s0 + $0xa8] sm:$0xff]  ;;  %v7284_v39 = vld [vmem:[%s8827_s0 + $0xb0] sm:$0xff] }
   0xb   :  { %6425 = vmatprep.subr.bf16.mxu1 %v6424_v19  ;;  %v7295_v40 = vld [vmem:[%s8827_s0 + $0xb8] sm:$0xff]  ;;  %v7302_v41 = vld [vmem:[%s8827_s0 + $0xc0] sm:$0xff]  ;;  %v7313_v42 = vld [vmem:[%s8827_s0 + $0xc8] sm:$0xff] }
   0xc   :  { %5404 = vmatmul.mubr.msk.f32.vlgmr.msra.gmra.mrb[0].mxu0 %vm79_vm3, %v7185_v20  ;;  %v7320_v43 = vld [vmem:[%s8827_s0 + $0x8] sm:$0xff]  ;;  %v7331_v44 = vld [vmem:[%s8827_s0 + $0x10] sm:$0xff]  ;;  %v7338_v45 = vld [vmem:[%s8827_s0 + $0x18] sm:$0xff] }
   0xd   :  { %5624 = vmatmul.mubr.msk.f32.vlgmr.msra.gmra.mrb[0].mxu1 %vm79_vm3, %v7185_v20  ;;  %6377 = vmatpush3.bf16.msra.mxu0 %v6374_v18  ;;  %v7349_v46 = vld [vmem:[%s8827_s0 + $0x20] sm:$0xff]  ;;  %v7356_v47 = vld [vmem:[%s8827_s0 + $0x28] sm:$0xff]  ;;  %v7367_v48 = vld [vmem:[%s8827_s0 + $0x30] sm:$0xff] }
   0xe   :  { %6427 = vmatpush3.bf16.msra.mxu1 %v6424_v19  ;;  %5406 = vmatprep.mubr.msk.f32.mxu0 %vm79_vm3, %v7201_v24  ;;  %v7374_v49 = vld [vmem:[%s8827_s0 + $0x38] sm:$0xff]  ;;  %v7385_v50 = vld [vmem:[%s8827_s0 + $0x40] sm:$0xff]  ;;  %v7392_v51 = vld [vmem:[%s8827_s0 + $0x48] sm:$0xff] }
   0xf   :  { %5626 = vmatprep.mubr.msk.f32.mxu1 %vm79_vm3, %v7201_v24  ;;  %6380 = vmatprep.subr.msk.bf16.mxu0 %vm7145_vm2, %v6378_v25  ;;  %v7403_v52 = vld [vmem:[%s8827_s0 + $0x50] sm:$0xff]  ;;  %v7410_v53 = vld [vmem:[%s8827_s0 + $0x58] sm:$0xff]  ;;  %v7421_v54 = vld [vmem:[%s8827_s0 + $0x60] sm:$0xff] }
  0x10   :  { %5407 = vmatmul.mubr.msk.f32.gmra.mrb[2].mxu0 %vm79_vm3, %v7213_v28  ;;  %6430 = vmatprep.subr.msk.bf16.mxu1 %vm7145_vm2, %v6428_v27  ;;  %v32_v55 = vld [vmem:[%s8827_s0] sm:$0xff]  ;;  %v4324_v56 = vld [vmem:[%s8826_s1 + $0x50] sm:$0xff]  ;;  %v4325_v57 = vld [vmem:[%s8826_s1 + $0x58] sm:$0xf] }
  0x11   :  { %5627 = vmatmul.mubr.msk.f32.gmra.mrb[2].mxu1 %vm79_vm3, %v7213_v28  ;;  %5409 = vmatprep.mubr.msk.f32.mxu0 %vm79_vm3, %v7220_v29  ;;  %v4493_v58 = vld [vmem:[%s8826_s1 + $0xf0] sm:$0xff]  ;;  %v4494_v59 = vld [vmem:[%s8826_s1 + $0xf8] sm:$0xf]  ;;  %v6388_v60 = vpack.c.bf16 %v4325_v57, %v4324_v56  ;;  %v4363_v62 = vld [vmem:[%s8826_s1 + $0x60] sm:$0xff] }
  0x12   :  { %5629 = vmatprep.mubr.msk.f32.mxu1 %vm79_vm3, %v7220_v29  ;;  %6383 = vmatpush3.bf16.msk.msra.mxu0 %vm7145_vm2, %v6378_v25  ;;  %v6438_v61 = vpack.c.bf16 %v4494_v59, %v4493_v58  ;;  %v4364_v63 = vld [vmem:[%s8826_s1 + $0x68] sm:$0xff]  ;;  %v4520_v0 = vld [vmem:[%s8826_s1 + $0x100] sm:$0xff]  ;;  %v4365_v4 = vld [vmem:[%s8826_s1 + $0x70] sm:$0xff] }
  0x13   :  { %6433 = vmatpush3.bf16.msk.msra.mxu1 %vm7145_vm2, %v6428_v27  ;;  %6385 = vmatprep.subr.bf16.mxu0 %v7239_v33  ;;  %v4521_v1 = vld [vmem:[%s8826_s1 + $0x108] sm:$0xff]  ;;  %v6394_v2 = vpack.c.bf16 %v4364_v63, %v4363_v62  ;;  %v4366_v5 = vld [vmem:[%s8826_s1 + $0x78] sm:$0xf]  ;;  %v4522_v6 = vld [vmem:[%s8826_s1 + $0x110] sm:$0xff] }
  0x14   :  { %5410 = vmatmul.mubr.msk.f32.gmra.mrb[4].mxu0 %vm79_vm3, %v7251_v35  ;;  %6435 = vmatprep.subr.bf16.mxu1 %v7253_v36  ;;  %v6444_v3 = vpack.c.bf16 %v4521_v1, %v4520_v0  ;;  %v4523_v7 = vld [vmem:[%s8826_s1 + $0x118] sm:$0xf]  ;;  %v6398_v8 = vpack.c.bf16 %v4366_v5, %v4365_v4  ;;  %v4404_v11 = vld [vmem:[%s8826_s1 + $0x80] sm:$0xff]  ;;  %v4405_v12 = vld [vmem:[%s8826_s1 + $0x88] sm:$0xff] }
  0x15   :  { %5630 = vmatmul.mubr.msk.f32.gmra.mrb[4].mxu1 %vm79_vm3, %v7251_v35  ;;  %5412 = vmatprep.mubr.msk.f32.mxu0 %vm79_vm3, %v7260_v37  ;;  %v6448_v10 = vpack.c.bf16 %v4523_v7, %v4522_v6  ;;  %v4550_v14 = vld [vmem:[%s8826_s1 + $0x128] sm:$0xff]  ;;  %v7598_v15 = vpack.c.bf16 %v4405_v12, %v4404_v11  ;;  %v7688_v17 = vld [vmem:[%s8827_s0 + $0xd0] sm:$0xff]  ;;  %v4407_v19 = vld [vmem:[%s8826_s1 + $0x98] sm:$0xf] }
  0x16   :  { %5632 = vmatprep.mubr.msk.f32.mxu1 %vm79_vm3, %v7260_v37  ;;  %v4406_v18 = vld [vmem:[%s8826_s1 + $0x90] sm:$0xff]  ;;  %v4552_v22 = vld [vmem:[%s8826_s1 + $0x138] sm:$0xf]  ;;  %v4580_v27 = vld [vmem:[%s8828_s3 + $0x80] sm:$0xff] }
  0x17   :  { %v4551_v21 = vld [vmem:[%s8826_s1 + $0x130] sm:$0xff]  ;;  %v6408_v23 = vpack.c.bf16 %v4407_v19, %v4406_v18  ;;  %v4579_v26 = vld [vmem:[%s8828_s3 + $0x78] sm:$0xff]  ;;  %v4362_v9 = vld [vmem:[%s8827_s0 + $0x68] sm:$0xff] }
  0x18   :  { %5413 = vmatmul.mubr.msk.f32.gmra.mrb[6].mxu0 %vm79_vm3, %v7277_v38  ;;  %v6458_v25 = vpack.c.bf16 %v4552_v22, %v4551_v21  ;;  %v4695_v30 = vld [vmem:[%s8828_s3 + $0x2d8] sm:$0xff]  ;;  %v6464_v31 = vpack.c.bf16 %v4580_v27, %v4579_v26  ;;  %v4582_v34 = vld [vmem:[%s8828_s3 + $0x90] sm:$0xff]  ;;  %v4704_v57 = vld [vmem:[%s8828_s3 + $0x320] sm:$0xff] }
  0x19   :  { %5633 = vmatmul.mubr.msk.f32.gmra.mrb[6].mxu1 %vm79_vm3, %v7277_v38  ;;  %5415 = vmatprep.mubr.msk.f32.mxu0 %vm79_vm3, %v7284_v39  ;;  %v4705_v59 = vld [vmem:[%s8828_s3 + $0x328] sm:$0xff]  ;;  %v4592_v62 = vld [vmem:[%s8828_s3 + $0xe0] sm:$0xff]  ;;  %v4706_v0 = vld [vmem:[%s8828_s3 + $0x330] sm:$0xff] }
  0x1a   :  { %5635 = vmatprep.mubr.msk.f32.mxu1 %vm79_vm3, %v7284_v39  ;;  %v4707_v1 = vld [vmem:[%s8828_s3 + $0x338] sm:$0xff]  ;;  %v4708_v4 = vld [vmem:[%s8828_s3 + $0x340] sm:$0xff]  ;;  %v2468_v6 = vld [vmem:[%s8828_s3 + $0x8] sm:$0xff] }
  0x1b   :  { %v2467_v5 = vld [vmem:[%s8828_s3] sm:$0xff]  ;;  %v4679_v7 = vld [vmem:[%s8828_s3 + $0x258] sm:$0xff] }
  0x1c   :  { %5416 = vmatmul.mubr.msk.f32.gmra.mrb[8].mxu0 %vm79_vm3, %v7295_v40 }
  0x1d   :  { %5636 = vmatmul.mubr.msk.f32.gmra.mrb[8].mxu1 %vm79_vm3, %v7295_v40  ;;  %5418 = vmatprep.mubr.msk.f32.mxu0 %vm79_vm3, %v7302_v41 }
  0x1e   :  { %5638 = vmatprep.mubr.msk.f32.mxu1 %vm79_vm3, %v7302_v41 }
  0x20   :  { %5419 = vmatmul.mubr.msk.f32.gmra.mrb[10].mxu0 %vm79_vm3, %v7313_v42 }
  0x21   :  { %5639 = vmatmul.mubr.msk.f32.gmra.mrb[10].mxu1 %vm79_vm3, %v7313_v42  ;;  %5421 = vmatprep.mubr.msk.f32.mxu0 %vm79_vm3, %v7320_v43 }
  0x22   :  { %5641 = vmatprep.mubr.msk.f32.mxu1 %vm79_vm3, %v7320_v43 }
  0x24   :  { %5422 = vmatmul.mubr.msk.f32.gmra.mrb[12].mxu0 %vm79_vm3, %v7331_v44 }
  0x25   :  { %5642 = vmatmul.mubr.msk.f32.gmra.mrb[12].mxu1 %vm79_vm3, %v7331_v44  ;;  %5424 = vmatprep.mubr.msk.f32.mxu0 %vm79_vm3, %v7338_v45 }
  0x26   :  { %5644 = vmatprep.mubr.msk.f32.mxu1 %vm79_vm3, %v7338_v45 }
  0x28   :  { %5425 = vmatmul.mubr.msk.f32.gmra.mrb[14].mxu0 %vm79_vm3, %v7349_v46 }
  0x29   :  { %5645 = vmatmul.mubr.msk.f32.gmra.mrb[14].mxu1 %vm79_vm3, %v7349_v46  ;;  %5427 = vmatprep.mubr.msk.f32.mxu0 %vm79_vm3, %v7356_v47 }
  0x2a   :  { %5647 = vmatprep.mubr.msk.f32.mxu1 %vm79_vm3, %v7356_v47 }
  0x2c   :  { %5428 = vmatmul.mubr.msk.f32.gmra.mrb[16].mxu0 %vm79_vm3, %v7367_v48 }
  0x2d   :  { %5648 = vmatmul.mubr.msk.f32.gmra.mrb[16].mxu1 %vm79_vm3, %v7367_v48  ;;  %5430 = vmatprep.mubr.msk.f32.mxu0 %vm79_vm3, %v7374_v49 }
  0x2e   :  { %5650 = vmatprep.mubr.msk.f32.mxu1 %vm79_vm3, %v7374_v49 }
  0x30   :  { %5431 = vmatmul.mubr.msk.f32.gmra.mrb[18].mxu0 %vm79_vm3, %v7385_v50 }
  0x31   :  { %5651 = vmatmul.mubr.msk.f32.gmra.mrb[18].mxu1 %vm79_vm3, %v7385_v50  ;;  %5433 = vmatprep.mubr.msk.f32.mxu0 %vm79_vm3, %v7392_v51 }
  0x32   :  { %5653 = vmatprep.mubr.msk.f32.mxu1 %vm79_vm3, %v7392_v51 }
  0x34   :  { %5434 = vmatmul.mubr.msk.f32.gmra.mrb[20].mxu0 %vm79_vm3, %v7403_v52 }
  0x35   :  { %5654 = vmatmul.mubr.msk.f32.gmra.mrb[20].mxu1 %vm79_vm3, %v7403_v52  ;;  %5436 = vmatprep.mubr.msk.f32.mxu0 %vm79_vm3, %v7410_v53 }
  0x36   :  { %5656 = vmatprep.mubr.msk.f32.mxu1 %vm79_vm3, %v7410_v53 }
  0x38   :  { %5437 = vmatmul.mubr.msk.f32.gmra.mrb[22].mxu0 %vm79_vm3, %v7421_v54 }
  0x39   :  { %5657 = vmatmul.mubr.msk.f32.gmra.mrb[22].mxu1 %vm79_vm3, %v7421_v54  ;;  %5447 = vmatprep.mubr.msk.f32.mxu0 %vm79_vm3, %v32_v55 }
  0x3a   :  { %5667 = vmatprep.mubr.msk.f32.mxu1 %vm79_vm3, %v32_v55 }
  0x3c   :  { %5448 = vmatmul.mubr.msk.f32.vlgmr.msra.gmra.mrb[0].mxu0 %vm79_vm3, %v7320_v43 }
  0x3d   :  { %5668 = vmatmul.mubr.msk.f32.vlgmr.msra.gmra.mrb[0].mxu1 %vm79_vm3, %v7320_v43  ;;  %6387 = vmatpush3.bf16.msra.mxu0 %v7239_v33  ;;  %v4581_v33 = vld [vmem:[%s8828_s3 + $0x88] sm:$0xff] }
  0x3e   :  { %6437 = vmatpush3.bf16.msra.mxu1 %v7253_v36  ;;  %5450 = vmatprep.mubr.msk.f32.mxu0 %vm79_vm3, %v7331_v44  ;;  %v4696_v36 = vld [vmem:[%s8828_s3 + $0x2e0] sm:$0xff]  ;;  %v6468_v55 = vpack.c.bf16 %v4582_v34, %v4581_v33 }
  0x3f   :  { %5670 = vmatprep.mubr.msk.f32.mxu1 %vm79_vm3, %v7331_v44  ;;  %6390 = vmatprep.subr.msk.bf16.mxu0 %vm7145_vm2, %v6388_v60 }
  0x40   :  { %5451 = vmatmul.mubr.msk.f32.gmra.mrb[2].mxu0 %vm79_vm3, %v7338_v45  ;;  %6440 = vmatprep.subr.msk.bf16.mxu1 %vm7145_vm2, %v6438_v61 }
  0x41   :  { %5671 = vmatmul.mubr.msk.f32.gmra.mrb[2].mxu1 %vm79_vm3, %v7338_v45  ;;  %5453 = vmatprep.mubr.msk.f32.mxu0 %vm79_vm3, %v7349_v46 }
  0x42   :  { %5673 = vmatprep.mubr.msk.f32.mxu1 %vm79_vm3, %v7349_v46  ;;  %6393 = vmatpush3.bf16.msk.msra.mxu0 %vm7145_vm2, %v6388_v60  ;;  %v6624_v60 = vpack.c.bf16 %v4705_v59, %v4704_v57 }
  0x43   :  { %6443 = vmatpush3.bf16.msk.msra.mxu1 %vm7145_vm2, %v6438_v61  ;;  %6395 = vmatprep.subr.bf16.mxu0 %v6394_v2  ;;  %v4591_v61 = vld [vmem:[%s8828_s3 + $0xd8] sm:$0xff] }
  0x44   :  { %5454 = vmatmul.mubr.msk.f32.gmra.mrb[4].mxu0 %vm79_vm3, %v7356_v47  ;;  %6445 = vmatprep.subr.bf16.mxu1 %v6444_v3  ;;  %v6488_v63 = vpack.c.bf16 %v4592_v62, %v4591_v61 }
  0x45   :  { %5674 = vmatmul.mubr.msk.f32.gmra.mrb[4].mxu1 %vm79_vm3, %v7356_v47  ;;  %5456 = vmatprep.mubr.msk.f32.mxu0 %vm79_vm3, %v7367_v48 }
  0x46   :  { %5676 = vmatprep.mubr.msk.f32.mxu1 %vm79_vm3, %v7367_v48 }
  0x48   :  { %5457 = vmatmul.mubr.msk.f32.gmra.mrb[6].mxu0 %vm79_vm3, %v7374_v49 }
  0x49   :  { %5677 = vmatmul.mubr.msk.f32.gmra.mrb[6].mxu1 %vm79_vm3, %v7374_v49  ;;  %5459 = vmatprep.mubr.msk.f32.mxu0 %vm79_vm3, %v7385_v50 }
  0x4a   :  { %5679 = vmatprep.mubr.msk.f32.mxu1 %vm79_vm3, %v7385_v50 }
  0x4c   :  { %5460 = vmatmul.mubr.msk.f32.gmra.mrb[8].mxu0 %vm79_vm3, %v7392_v51 }
  0x4d   :  { %5680 = vmatmul.mubr.msk.f32.gmra.mrb[8].mxu1 %vm79_vm3, %v7392_v51  ;;  %5462 = vmatprep.mubr.msk.f32.mxu0 %vm79_vm3, %v7403_v52 }
  0x4e   :  { %5682 = vmatprep.mubr.msk.f32.mxu1 %vm79_vm3, %v7403_v52 }
  0x50   :  { %5463 = vmatmul.mubr.msk.f32.gmra.mrb[10].mxu0 %vm79_vm3, %v7410_v53 }
  0x51   :  { %5683 = vmatmul.mubr.msk.f32.gmra.mrb[10].mxu1 %vm79_vm3, %v7410_v53  ;;  %5465 = vmatprep.mubr.msk.f32.mxu0 %vm79_vm3, %v7158_v13 }
  0x52   :  { %5685 = vmatprep.mubr.msk.f32.mxu1 %vm79_vm3, %v7158_v13  ;;  %v4549_v13 = vld [vmem:[%s8826_s1 + $0x120] sm:$0xff] }
  0x53   :  { %v6454_v16 = vpack.c.bf16 %v4550_v14, %v4549_v13 }
  0x54   :  { %5466 = vmatmul.mubr.msk.f32.gmra.mrb[12].mxu0 %vm79_vm3, %v7185_v20 }
  0x55   :  { %5686 = vmatmul.mubr.msk.f32.gmra.mrb[12].mxu1 %vm79_vm3, %v7185_v20  ;;  %5468 = vmatprep.mubr.msk.f32.mxu0 %vm79_vm3, %v7201_v24 }
  0x56   :  { %5688 = vmatprep.mubr.msk.f32.mxu1 %vm79_vm3, %v7201_v24 }
  0x58   :  { %5469 = vmatmul.mubr.msk.f32.gmra.mrb[14].mxu0 %vm79_vm3, %v7213_v28 }
  0x59   :  { %5689 = vmatmul.mubr.msk.f32.gmra.mrb[14].mxu1 %vm79_vm3, %v7213_v28  ;;  %5471 = vmatprep.mubr.msk.f32.mxu0 %vm79_vm3, %v7220_v29 }
  0x5a   :  { %5691 = vmatprep.mubr.msk.f32.mxu1 %vm79_vm3, %v7220_v29 }
  0x5c   :  { %5472 = vmatmul.mubr.msk.f32.gmra.mrb[16].mxu0 %vm79_vm3, %v7251_v35 }
  0x5d   :  { %5692 = vmatmul.mubr.msk.f32.gmra.mrb[16].mxu1 %vm79_vm3, %v7251_v35  ;;  %5474 = vmatprep.mubr.msk.f32.mxu0 %vm79_vm3, %v7260_v37 }
  0x5e   :  { %5694 = vmatprep.mubr.msk.f32.mxu1 %vm79_vm3, %v7260_v37 }
  0x60   :  { %5475 = vmatmul.mubr.msk.f32.gmra.mrb[18].mxu0 %vm79_vm3, %v7277_v38 }
  0x61   :  { %5695 = vmatmul.mubr.msk.f32.gmra.mrb[18].mxu1 %vm79_vm3, %v7277_v38  ;;  %5477 = vmatprep.mubr.msk.f32.mxu0 %vm79_vm3, %v7284_v39 }
  0x62   :  { %5697 = vmatprep.mubr.msk.f32.mxu1 %vm79_vm3, %v7284_v39 }
  0x64   :  { %5478 = vmatmul.mubr.msk.f32.gmra.mrb[20].mxu0 %vm79_vm3, %v7295_v40 }
  0x65   :  { %5698 = vmatmul.mubr.msk.f32.gmra.mrb[20].mxu1 %vm79_vm3, %v7295_v40  ;;  %5480 = vmatprep.mubr.msk.f32.mxu0 %vm79_vm3, %v7302_v41 }
  0x66   :  { %5700 = vmatprep.mubr.msk.f32.mxu1 %vm79_vm3, %v7302_v41 }
  0x68   :  { %5481 = vmatmul.mubr.msk.f32.gmra.mrb[22].mxu0 %vm79_vm3, %v7313_v42 }
  0x69   :  { %5701 = vmatmul.mubr.msk.f32.gmra.mrb[22].mxu1 %vm79_vm3, %v7313_v42  ;;  %5491 = vmatprep.mubr.msk.f32.mxu0 %vm79_vm3, %v7320_v43 }
  0x6a   :  { %5711 = vmatprep.mubr.msk.f32.mxu1 %vm79_vm3, %v7320_v43  ;;  %v4697_v43 = vld [vmem:[%s8828_s3 + $0x2e8] sm:$0xff] }
  0x6b   :  { %v6608_v56 = vpack.c.bf16 %v4697_v43, %v4696_v36 }
  0x6c   :  { %5492 = vmatmul.mubr.msk.f32.vlgmr.msra.gmra.mrb[0].mxu0 %vm79_vm3, %v7331_v44 }
  0x6d   :  { %5712 = vmatmul.mubr.msk.f32.vlgmr.msra.gmra.mrb[0].mxu1 %vm79_vm3, %v7331_v44  ;;  %6397 = vmatpush3.bf16.msra.mxu0 %v6394_v2  ;;  %v6628_v2 = vpack.c.bf16 %v4707_v1, %v4706_v0 }
  0x6e   :  { %6447 = vmatpush3.bf16.msra.mxu1 %v6444_v3  ;;  %5494 = vmatprep.mubr.msk.f32.mxu0 %vm79_vm3, %v7338_v45  ;;  %v4593_v3 = vld [vmem:[%s8828_s3 + $0xe8] sm:$0xff] }
  0x6f   :  { %5714 = vmatprep.mubr.msk.f32.mxu1 %vm79_vm3, %v7338_v45  ;;  %6400 = vmatprep.subr.msk.bf16.mxu0 %vm7145_vm2, %v6398_v8 }
  0x70   :  { %5495 = vmatmul.mubr.msk.f32.gmra.mrb[2].mxu0 %vm79_vm3, %v7349_v46  ;;  %6450 = vmatprep.subr.msk.bf16.mxu1 %vm7145_vm2, %v6448_v10 }
  0x71   :  { %5715 = vmatmul.mubr.msk.f32.gmra.mrb[2].mxu1 %vm79_vm3, %v7349_v46  ;;  %5497 = vmatprep.mubr.msk.f32.mxu0 %vm79_vm3, %v7356_v47 }
  0x72   :  { %5717 = vmatprep.mubr.msk.f32.mxu1 %vm79_vm3, %v7356_v47  ;;  %6403 = vmatpush3.bf16.msk.msra.mxu0 %vm7145_vm2, %v6398_v8  ;;  %v4680_v8 = vld [vmem:[%s8828_s3 + $0x260] sm:$0xff] }
  0x73   :  { %6453 = vmatpush3.bf16.msk.msra.mxu1 %vm7145_vm2, %v6448_v10  ;;  %6405 = vmatprep.subr.bf16.mxu0 %v7598_v15  ;;  %v8011_v10 = vpack.c.bf16 %v2468_v6, %v2467_v5  ;;  %v8013_v11 = vpack.c.bf16 %v4680_v8, %v4679_v7  ;;  %v2470_v6 = vld [vmem:[%s8828_s3 + $0x18] sm:$0xff]  ;;  %v4681_v7 = vld [vmem:[%s8828_s3 + $0x268] sm:$0xff]  ;;  %v4682_v8 = vld [vmem:[%s8828_s3 + $0x270] sm:$0xff] }
  0x74   :  { %5498 = vmatmul.mubr.msk.f32.gmra.mrb[4].mxu0 %vm79_vm3, %v7367_v48  ;;  %6455 = vmatprep.subr.bf16.mxu1 %v6454_v16 }
  0x75   :  { %5718 = vmatmul.mubr.msk.f32.gmra.mrb[4].mxu1 %vm79_vm3, %v7367_v48  ;;  %5500 = vmatprep.mubr.msk.f32.mxu0 %vm79_vm3, %v7374_v49 }
  0x76   :  { %5720 = vmatprep.mubr.msk.f32.mxu1 %vm79_vm3, %v7374_v49 }
  0x78   :  { %5501 = vmatmul.mubr.msk.f32.gmra.mrb[6].mxu0 %vm79_vm3, %v7385_v50 }
  0x79   :  { %5721 = vmatmul.mubr.msk.f32.gmra.mrb[6].mxu1 %vm79_vm3, %v7385_v50  ;;  %5503 = vmatprep.mubr.msk.f32.mxu0 %vm79_vm3, %v7392_v51 }
  0x7a   :  { %5723 = vmatprep.mubr.msk.f32.mxu1 %vm79_vm3, %v7392_v51 }
  0x7c   :  { %5504 = vmatmul.mubr.msk.f32.gmra.mrb[8].mxu0 %vm79_vm3, %v7403_v52 }
  0x7d   :  { %5724 = vmatmul.mubr.msk.f32.gmra.mrb[8].mxu1 %vm79_vm3, %v7403_v52  ;;  %5506 = vmatprep.mubr.msk.f32.mxu0 %vm79_vm3, %v7410_v53 }
  0x7e   :  { %5726 = vmatprep.mubr.msk.f32.mxu1 %vm79_vm3, %v7410_v53 }
  0x80   :  { %5507 = vmatmul.mubr.msk.f32.gmra.mrb[10].mxu0 %vm79_vm3, %v7421_v54 }
  0x81   :  { %5727 = vmatmul.mubr.msk.f32.gmra.mrb[10].mxu1 %vm79_vm3, %v7421_v54  ;;  %5509 = vmatprep.mubr.msk.f32.mxu0 %vm79_vm3, %v7185_v20 }
  0x82   :  { %5729 = vmatprep.mubr.msk.f32.mxu1 %vm79_vm3, %v7185_v20 }
  0x84   :  { %5510 = vmatmul.mubr.msk.f32.gmra.mrb[12].mxu0 %vm79_vm3, %v7201_v24 }
  0x85   :  { %5730 = vmatmul.mubr.msk.f32.gmra.mrb[12].mxu1 %vm79_vm3, %v7201_v24  ;;  %5512 = vmatprep.mubr.msk.f32.mxu0 %vm79_vm3, %v7213_v28 }
  0x86   :  { %5732 = vmatprep.mubr.msk.f32.mxu1 %vm79_vm3, %v7213_v28 }
  0x88   :  { %5513 = vmatmul.mubr.msk.f32.gmra.mrb[14].mxu0 %vm79_vm3, %v7220_v29 }
  0x89   :  { %5733 = vmatmul.mubr.msk.f32.gmra.mrb[14].mxu1 %vm79_vm3, %v7220_v29  ;;  %5515 = vmatprep.mubr.msk.f32.mxu0 %vm79_vm3, %v7251_v35 }
  0x8a   :  { %5735 = vmatprep.mubr.msk.f32.mxu1 %vm79_vm3, %v7251_v35 }
  0x8c   :  { %5516 = vmatmul.mubr.msk.f32.gmra.mrb[16].mxu0 %vm79_vm3, %v7260_v37 }
  0x8d   :  { %5736 = vmatmul.mubr.msk.f32.gmra.mrb[16].mxu1 %vm79_vm3, %v7260_v37  ;;  %5518 = vmatprep.mubr.msk.f32.mxu0 %vm79_vm3, %v7277_v38 }
  0x8e   :  { %5738 = vmatprep.mubr.msk.f32.mxu1 %vm79_vm3, %v7277_v38 }
  0x90   :  { %5519 = vmatmul.mubr.msk.f32.gmra.mrb[18].mxu0 %vm79_vm3, %v7284_v39 }
  0x91   :  { %5739 = vmatmul.mubr.msk.f32.gmra.mrb[18].mxu1 %vm79_vm3, %v7284_v39  ;;  %5521 = vmatprep.mubr.msk.f32.mxu0 %vm79_vm3, %v7295_v40 }
  0x92   :  { %5741 = vmatprep.mubr.msk.f32.mxu1 %vm79_vm3, %v7295_v40 }
  0x94   :  { %5522 = vmatmul.mubr.msk.f32.gmra.mrb[20].mxu0 %vm79_vm3, %v7302_v41 }
  0x95   :  { %5742 = vmatmul.mubr.msk.f32.gmra.mrb[20].mxu1 %vm79_vm3, %v7302_v41  ;;  %5524 = vmatprep.mubr.msk.f32.mxu0 %vm79_vm3, %v7313_v42 }
  0x96   :  { %5744 = vmatprep.mubr.msk.f32.mxu1 %vm79_vm3, %v7313_v42 }
  0x98   :  { %5525 = vmatmul.mubr.msk.f32.gmra.mrb[22].mxu0 %vm79_vm3, %v7688_v17 }
  0x99   :  { %5745 = vmatmul.mubr.msk.f32.gmra.mrb[22].mxu1 %vm79_vm3, %v7688_v17  ;;  %5535 = vmatprep.mubr.msk.f32.mxu0 %vm79_vm3, %v7185_v20 }
  0x9a   :  { %5755 = vmatprep.mubr.msk.f32.mxu1 %vm79_vm3, %v7185_v20  ;;  %v4694_v20 = vld [vmem:[%s8828_s3 + $0x2d0] sm:$0xff] }
  0x9b   :  { %v6604_v32 = vpack.c.bf16 %v4695_v30, %v4694_v20 }
  0x9c   :  { %5536 = vmatmul.mubr.msk.f32.vlgmr.msra.gmra.mrb[0].mxu0 %vm79_vm3, %v7201_v24 }
  0x9d   :  { %5756 = vmatmul.mubr.msk.f32.vlgmr.msra.gmra.mrb[0].mxu1 %vm79_vm3, %v7201_v24  ;;  %6407 = vmatpush3.bf16.msra.mxu0 %v7598_v15 }
  0x9e   :  { %6457 = vmatpush3.bf16.msra.mxu1 %v6454_v16  ;;  %5538 = vmatprep.mubr.msk.f32.mxu0 %vm79_vm3, %v7213_v28 }
  0x9f   :  { %5758 = vmatprep.mubr.msk.f32.mxu1 %vm79_vm3, %v7213_v28  ;;  %6410 = vmatprep.subr.msk.bf16.mxu0 %vm7145_vm2, %v6408_v23 }
  0xa0   :  { %5539 = vmatmul.mubr.msk.f32.gmra.mrb[2].mxu0 %vm79_vm3, %v7220_v29  ;;  %6460 = vmatprep.subr.msk.bf16.mxu1 %vm7145_vm2, %v6458_v25 }
  0xa1   :  { %5759 = vmatmul.mubr.msk.f32.gmra.mrb[2].mxu1 %vm79_vm3, %v7220_v29  ;;  %5541 = vmatprep.mubr.msk.f32.mxu0 %vm79_vm3, %v7251_v35 }
  0xa2   :  { %5761 = vmatprep.mubr.msk.f32.mxu1 %vm79_vm3, %v7251_v35  ;;  %6413 = vmatpush3.bf16.msk.msra.mxu0 %vm7145_vm2, %v6408_v23 }
  0xa3   :  { %6463 = vmatpush3.bf16.msk.msra.mxu1 %vm7145_vm2, %v6458_v25  ;;  %6465 = vmatprep.subr.bf16.mxu0 %v6464_v31 }
  0xa4   :  { %5542 = vmatmul.mubr.msk.f32.gmra.mrb[4].mxu0 %vm79_vm3, %v7260_v37  ;;  %6605 = vmatprep.subr.bf16.mxu1 %v6604_v32 }
  0xa5   :  { %5762 = vmatmul.mubr.msk.f32.gmra.mrb[4].mxu1 %vm79_vm3, %v7260_v37  ;;  %5544 = vmatprep.mubr.msk.f32.mxu0 %vm79_vm3, %v7277_v38 }
  0xa6   :  { %5764 = vmatprep.mubr.msk.f32.mxu1 %vm79_vm3, %v7277_v38 }
  0xa8   :  { %5545 = vmatmul.mubr.msk.f32.gmra.mrb[6].mxu0 %vm79_vm3, %v7284_v39 }
  0xa9   :  { %5765 = vmatmul.mubr.msk.f32.gmra.mrb[6].mxu1 %vm79_vm3, %v7284_v39  ;;  %5547 = vmatprep.mubr.msk.f32.mxu0 %vm79_vm3, %v7295_v40 }
  0xaa   :  { %5767 = vmatprep.mubr.msk.f32.mxu1 %vm79_vm3, %v7295_v40 }
  0xac   :  { %5548 = vmatmul.mubr.msk.f32.gmra.mrb[8].mxu0 %vm79_vm3, %v7302_v41 }
  0xad   :  { %5768 = vmatmul.mubr.msk.f32.gmra.mrb[8].mxu1 %vm79_vm3, %v7302_v41  ;;  %5550 = vmatprep.mubr.msk.f32.mxu0 %vm79_vm3, %v7313_v42 }
  0xae   :  { %5770 = vmatprep.mubr.msk.f32.mxu1 %vm79_vm3, %v7313_v42 }
  0xb0   :  { %5551 = vmatmul.mubr.msk.f32.gmra.mrb[10].mxu0 %vm79_vm3, %v7688_v17 }
  0xb1   :  { %5771 = vmatmul.mubr.msk.f32.gmra.mrb[10].mxu1 %vm79_vm3, %v7688_v17  ;;  %5553 = vmatprep.mubr.msk.f32.mxu0 %vm79_vm3, %v7331_v44 }
  0xb2   :  { %5773 = vmatprep.mubr.msk.f32.mxu1 %vm79_vm3, %v7331_v44 }
  0xb4   :  { %5554 = vmatmul.mubr.msk.f32.gmra.mrb[12].mxu0 %vm79_vm3, %v7338_v45 }
  0xb5   :  { %5774 = vmatmul.mubr.msk.f32.gmra.mrb[12].mxu1 %vm79_vm3, %v7338_v45  ;;  %5556 = vmatprep.mubr.msk.f32.mxu0 %vm79_vm3, %v7349_v46 }
  0xb6   :  { %5776 = vmatprep.mubr.msk.f32.mxu1 %vm79_vm3, %v7349_v46 }
  0xb8   :  { %5557 = vmatmul.mubr.msk.f32.gmra.mrb[14].mxu0 %vm79_vm3, %v7356_v47 }
  0xb9   :  { %5777 = vmatmul.mubr.msk.f32.gmra.mrb[14].mxu1 %vm79_vm3, %v7356_v47  ;;  %5559 = vmatprep.mubr.msk.f32.mxu0 %vm79_vm3, %v7367_v48 }
  0xba   :  { %5779 = vmatprep.mubr.msk.f32.mxu1 %vm79_vm3, %v7367_v48 }
  0xbc   :  { %5560 = vmatmul.mubr.msk.f32.gmra.mrb[16].mxu0 %vm79_vm3, %v7374_v49 }
  0xbd   :  { %5780 = vmatmul.mubr.msk.f32.gmra.mrb[16].mxu1 %vm79_vm3, %v7374_v49  ;;  %5562 = vmatprep.mubr.msk.f32.mxu0 %vm79_vm3, %v7385_v50 }
  0xbe   :  { %5782 = vmatprep.mubr.msk.f32.mxu1 %vm79_vm3, %v7385_v50 }
  0xc0   :  { %5563 = vmatmul.mubr.msk.f32.gmra.mrb[18].mxu0 %vm79_vm3, %v7392_v51 }
  0xc1   :  { %5783 = vmatmul.mubr.msk.f32.gmra.mrb[18].mxu1 %vm79_vm3, %v7392_v51  ;;  %5565 = vmatprep.mubr.msk.f32.mxu0 %vm79_vm3, %v7403_v52 }
  0xc2   :  { %5785 = vmatprep.mubr.msk.f32.mxu1 %vm79_vm3, %v7403_v52 }
  0xc4   :  { %5566 = vmatmul.mubr.msk.f32.gmra.mrb[20].mxu0 %vm79_vm3, %v7410_v53 }
  0xc5   :  { %5786 = vmatmul.mubr.msk.f32.gmra.mrb[20].mxu1 %vm79_vm3, %v7410_v53  ;;  %5568 = vmatprep.mubr.msk.f32.mxu0 %vm79_vm3, %v7421_v54 }
  0xc6   :  { %5788 = vmatprep.mubr.msk.f32.mxu1 %vm79_vm3, %v7421_v54 }
  0xc8   :  { %5569 = vmatmul.mubr.msk.f32.gmra.mrb[22].mxu0 %vm79_vm3, %v4362_v9 }
  0xc9   :  { %5789 = vmatmul.mubr.msk.f32.gmra.mrb[22].mxu1 %vm79_vm3, %v4362_v9  ;;  %5579 = vmatprep.mubr.msk.f32.mxu0 %vm79_vm3, %v7331_v44 }
  0xca   :  { %5799 = vmatprep.mubr.msk.f32.mxu1 %vm79_vm3, %v7331_v44 }
  0xcc   :  { %5580 = vmatmul.mubr.msk.f32.vlgmr.msra.gmra.mrb[0].mxu0 %vm79_vm3, %v7338_v45 }
  0xcd   :  { %5800 = vmatmul.mubr.msk.f32.vlgmr.msra.gmra.mrb[0].mxu1 %vm79_vm3, %v7338_v45  ;;  %5582 = vmatprep.mubr.msk.f32.mxu0 %vm79_vm3, %v7349_v46  ;;  %v4701_v45 = vld [vmem:[%s8828_s3 + $0x308] sm:$0xff] }
  0xce   :  { %5802 = vmatprep.mubr.msk.f32.mxu1 %vm79_vm3, %v7349_v46  ;;  %6467 = vmatpush3.bf16.msra.mxu0 %v6464_v31 }
  0xcf   :  { %6607 = vmatpush3.bf16.msra.mxu1 %v6604_v32  ;;  %6469 = vmatprep.subr.bf16.mxu0 %v6468_v55 }
  0xd0   :  { %5583 = vmatmul.mubr.msk.f32.gmra.mrb[2].mxu0 %vm79_vm3, %v7356_v47  ;;  %6609 = vmatprep.subr.bf16.mxu1 %v6608_v56 }
  0xd1   :  { %5803 = vmatmul.mubr.msk.f32.gmra.mrb[2].mxu1 %vm79_vm3, %v7356_v47  ;;  %5585 = vmatprep.mubr.msk.f32.mxu0 %vm79_vm3, %v7367_v48  ;;  %v4587_v47 = vld [vmem:[%s8828_s3 + $0xb8] sm:$0xff] }
  0xd2   :  { %5805 = vmatprep.mubr.msk.f32.mxu1 %vm79_vm3, %v7367_v48  ;;  %6471 = vmatpush3.bf16.msra.mxu0 %v6468_v55  ;;  %v4588_v48 = vld [vmem:[%s8828_s3 + $0xc0] sm:$0xff] }
  0xd3   :  { %6611 = vmatpush3.bf16.msra.mxu1 %v6608_v56 }
  0xd4   :  { %5586 = vmatmul.mubr.msk.f32.gmra.mrb[4].mxu0 %vm79_vm3, %v7374_v49 }
  0xd5   :  { %5806 = vmatmul.mubr.msk.f32.gmra.mrb[4].mxu1 %vm79_vm3, %v7374_v49  ;;  %5588 = vmatprep.mubr.msk.f32.mxu0 %vm79_vm3, %v7385_v50  ;;  %v4702_v49 = vld [vmem:[%s8828_s3 + $0x310] sm:$0xff] }
  0xd6   :  { %5808 = vmatprep.mubr.msk.f32.mxu1 %vm79_vm3, %v7385_v50  ;;  %v6480_v50 = vpack.c.bf16 %v4588_v48, %v4587_v47 }
  0xd8   :  { %5589 = vmatmul.mubr.msk.f32.gmra.mrb[6].mxu0 %vm79_vm3, %v7392_v51 }
  0xd9   :  { %5809 = vmatmul.mubr.msk.f32.gmra.mrb[6].mxu1 %vm79_vm3, %v7392_v51  ;;  %5591 = vmatprep.mubr.msk.f32.mxu0 %vm79_vm3, %v7403_v52  ;;  %v4703_v51 = vld [vmem:[%s8828_s3 + $0x318] sm:$0xff] }
  0xda   :  { %5811 = vmatprep.mubr.msk.f32.mxu1 %vm79_vm3, %v7403_v52  ;;  %v6620_v52 = vpack.c.bf16 %v4703_v51, %v4702_v49 }
  0xdc   :  { %5592 = vmatmul.mubr.msk.f32.gmra.mrb[8].mxu0 %vm79_vm3, %v7410_v53 }
  0xdd   :  { %5812 = vmatmul.mubr.msk.f32.gmra.mrb[8].mxu1 %vm79_vm3, %v7410_v53  ;;  %5594 = vmatprep.mubr.msk.f32.mxu0 %vm79_vm3, %v7421_v54  ;;  %v4589_v53 = vld [vmem:[%s8828_s3 + $0xc8] sm:$0xff] }
  0xde   :  { %5814 = vmatprep.mubr.msk.f32.mxu1 %vm79_vm3, %v7421_v54  ;;  %v4590_v54 = vld [vmem:[%s8828_s3 + $0xd0] sm:$0xff] }
  0xdf   :  { %v6484_v58 = vpack.c.bf16 %v4590_v54, %v4589_v53 }
  0xe0   :  { %5595 = vmatmul.mubr.msk.f32.gmra.mrb[10].mxu0 %vm79_vm3, %v4362_v9 }
  0xe1   :  { %5815 = vmatmul.mubr.msk.f32.gmra.mrb[10].mxu1 %vm79_vm3, %v4362_v9  ;;  %5597 = vmatprep.mubr.msk.f32.mxu0 %vm79_vm3, %v7201_v24 }
  0xe2   :  { %5817 = vmatprep.mubr.msk.f32.mxu1 %vm79_vm3, %v7201_v24  ;;  %v4403_v24 = vld [vmem:[%s8827_s0 + $0xd8] sm:$0xff] }
  0xe4   :  { %5598 = vmatmul.mubr.msk.f32.gmra.mrb[12].mxu0 %vm79_vm3, %v7213_v28 }
  0xe5   :  { %5818 = vmatmul.mubr.msk.f32.gmra.mrb[12].mxu1 %vm79_vm3, %v7213_v28  ;;  %5600 = vmatprep.mubr.msk.f32.mxu0 %vm79_vm3, %v7220_v29  ;;  %v4583_v28 = vld [vmem:[%s8828_s3 + $0x98] sm:$0xff] }
  0xe6   :  { %5820 = vmatprep.mubr.msk.f32.mxu1 %vm79_vm3, %v7220_v29  ;;  %v4584_v29 = vld [vmem:[%s8828_s3 + $0xa0] sm:$0xff] }
  0xe8   :  { %5601 = vmatmul.mubr.msk.f32.gmra.mrb[14].mxu0 %vm79_vm3, %v7251_v35 }
  0xe9   :  { %5821 = vmatmul.mubr.msk.f32.gmra.mrb[14].mxu1 %vm79_vm3, %v7251_v35  ;;  %5603 = vmatprep.mubr.msk.f32.mxu0 %vm79_vm3, %v7260_v37  ;;  %v4698_v35 = vld [vmem:[%s8828_s3 + $0x2f0] sm:$0xff] }
  0xea   :  { %5823 = vmatprep.mubr.msk.f32.mxu1 %vm79_vm3, %v7260_v37  ;;  %v6472_v37 = vpack.c.bf16 %v4584_v29, %v4583_v28 }
  0xec   :  { %5604 = vmatmul.mubr.msk.f32.gmra.mrb[16].mxu0 %vm79_vm3, %v7277_v38  ;;  %6473 = vmatprep.subr.bf16.mxu0 %v6472_v37 }
  0xed   :  { %5824 = vmatmul.mubr.msk.f32.gmra.mrb[16].mxu1 %vm79_vm3, %v7277_v38  ;;  %5606 = vmatprep.mubr.msk.f32.mxu0 %vm79_vm3, %v7284_v39  ;;  %v4699_v38 = vld [vmem:[%s8828_s3 + $0x2f8] sm:$0xff] }
  0xee   :  { %5826 = vmatprep.mubr.msk.f32.mxu1 %vm79_vm3, %v7284_v39  ;;  %v6612_v39 = vpack.c.bf16 %v4699_v38, %v4698_v35  ;;  %6475 = vmatpush3.bf16.msra.mxu0 %v6472_v37 }
  0xf0   :  { %5607 = vmatmul.mubr.msk.f32.gmra.mrb[18].mxu0 %vm79_vm3, %v7295_v40  ;;  %6613 = vmatprep.subr.bf16.mxu1 %v6612_v39 }
  0xf1   :  { %5827 = vmatmul.mubr.msk.f32.gmra.mrb[18].mxu1 %vm79_vm3, %v7295_v40  ;;  %5609 = vmatprep.mubr.msk.f32.mxu0 %vm79_vm3, %v7302_v41  ;;  %v4585_v40 = vld [vmem:[%s8828_s3 + $0xa8] sm:$0xff] }
  0xf2   :  { %5829 = vmatprep.mubr.msk.f32.mxu1 %vm79_vm3, %v7302_v41  ;;  %v4586_v41 = vld [vmem:[%s8828_s3 + $0xb0] sm:$0xff]  ;;  %6615 = vmatpush3.bf16.msra.mxu1 %v6612_v39 }
  0xf3   :  { %v6476_v44 = vpack.c.bf16 %v4586_v41, %v4585_v40 }
  0xf4   :  { %5610 = vmatmul.mubr.msk.f32.gmra.mrb[20].mxu0 %vm79_vm3, %v7313_v42 }
  0xf5   :  { %5830 = vmatmul.mubr.msk.f32.gmra.mrb[20].mxu1 %vm79_vm3, %v7313_v42  ;;  %5612 = vmatprep.mubr.msk.f32.mxu0 %vm79_vm3, %v7688_v17  ;;  %v4700_v42 = vld [vmem:[%s8828_s3 + $0x300] sm:$0xff] }
  0xf6   :  { %5832 = vmatprep.mubr.msk.f32.mxu1 %vm79_vm3, %v7688_v17  ;;  %v6616_v46 = vpack.c.bf16 %v4701_v45, %v4700_v42  ;;  %6477 = vmatprep.subr.bf16.mxu0 %v6476_v44 }
  0xf7   :  { %6479 = vmatpush3.bf16.msra.mxu0 %v6476_v44 }
  0xf8   :  { %5613 = vmatmul.mubr.msk.f32.gmra.mrb[22].mxu0 %vm79_vm3, %v4403_v24  ;;  %6617 = vmatprep.subr.bf16.mxu1 %v6616_v46 }
  0xf9   :  { %5833 = vmatmul.mubr.msk.f32.gmra.mrb[22].mxu1 %vm79_vm3, %v4403_v24  ;;  %6481 = vmatprep.subr.bf16.mxu0 %v6480_v50 }
  0xfa   :  { %6619 = vmatpush3.bf16.msra.mxu1 %v6616_v46 }
  0xfb   :  { %6621 = vmatprep.subr.bf16.mxu1 %v6620_v52  ;;  %6483 = vmatpush3.bf16.msra.mxu0 %v6480_v50  ;;  %v8059_v50 = vld [vmem:[%s8829_s2] ss:$0 sm:$0xff] }
  0xfc   :  { %6485 = vmatprep.subr.bf16.mxu0 %v6484_v58 }
  0xfe   :  { %6623 = vmatpush3.bf16.msra.mxu1 %v6620_v52 }
  0xff   :  { %6625 = vmatprep.subr.bf16.mxu1 %v6624_v60  ;;  %6487 = vmatpush3.bf16.msra.mxu0 %v6484_v58 }
 0x100   :  { %6489 = vmatprep.subr.bf16.mxu0 %v6488_v63 }
 0x102   :  { %6627 = vmatpush3.bf16.msra.mxu1 %v6624_v60 }
 0x103   :  { %6629 = vmatprep.subr.bf16.mxu1 %v6628_v2  ;;  %6491 = vmatpush3.bf16.msra.mxu0 %v6488_v63 }
 0x104   :  { %5863 = vmatprep.subr.mxu0 %v4593_v3 }
 0x106   :  { %6631 = vmatpush3.bf16.msra.mxu1 %v6628_v2  ;;  %v2469_v2 = vld [vmem:[%s8828_s3 + $0x10] sm:$0xff] }
 0x107   :  { %6073 = vmatprep.subr.mxu1 %v4708_v4  ;;  %5864 = vmatpush3.msra.mxu0 %v4593_v3 }
 0x108   :  { %6493 = vmatprep.subr.bf16.mxu0 %v8011_v10 }
 0x10a   :  { %6074 = vmatpush3.msra.mxu1 %v4708_v4 }
 0x10b   :  { %6633 = vmatprep.subr.bf16.mxu1 %v8013_v11 }
 0x19f   :  { %v5581_v12 = vpop.f32.mrb[0].mxu0 }
 0x1a0   :  { %v5801_v13 = vpop.f32.mrb[0].mxu1  ;;  %v1220_v14 = vpop.f32.mrb[1].mxu0 }
 0x1a1   :  { %v2401_v15 = vmax.f32 %v5581_v12, %v5801_v13  ;;  %v2257_v16 = vpop.f32.mrb[1].mxu1 }
 0x1a2   :  { %v2400_v17 = vmax.f32 %v1220_v14, %v2257_v16 }
 0x1a3   :  { %v5584_v18 = vpop.f32.mrb[2].mxu0 }
 0x1a4   :  { %v5804_v19 = vpop.f32.mrb[2].mxu1  ;;  %v1230_v21 = vpop.f32.mrb[3].mxu0 }
 0x1a5   :  { %v2403_v22 = vmax.f32 %v5584_v18, %v5804_v19  ;;  %v2267_v23 = vpop.f32.mrb[3].mxu1  ;;  %v6496_v19 = vpack.c.bf16 %v2470_v6, %v2469_v2  ;;  %v2475_v6 = vld [vmem:[%s8828_s3 + $0x40] sm:$0xff] }
 0x1a6   :  { %v2402_v25 = vmax.f32 %v1230_v21, %v2267_v23  ;;  %v6636_v21 = vpack.c.bf16 %v4682_v8, %v4681_v7 }
 0x1a7   :  { %v5587_v26 = vpop.f32.mrb[4].mxu0 }
 0x1a8   :  { %v5807_v27 = vpop.f32.mrb[4].mxu1  ;;  %v8017_v20 = vpop.f32.mrb[5].mxu0 }
 0x1a9   :  { %v2405_v30 = vmax.f32 %v5587_v26, %v5807_v27  ;;  %v2277_v31 = vpop.f32.mrb[5].mxu1  ;;  %v2472_v27 = vld [vmem:[%s8828_s3 + $0x28] sm:$0xff] }
 0x1aa   :  { %v2404_v32 = vmax.f32 %v8017_v20, %v2277_v31  ;;  %v4683_v20 = vld [vmem:[%s8828_s3 + $0x278] sm:$0xff] }
 0x1ab   :  { %v8020_v9 = vpop.f32.mrb[6].mxu0 }
 0x1ac   :  { %v8022_v33 = vpop.f32.mrb[6].mxu1  ;;  %v8024_v34 = vpop.f32.mrb[7].mxu0 }
 0x1ad   :  { %v2407_v36 = vmax.f32 %v8020_v9, %v8022_v33  ;;  %v8028_v43 = vpop.f32.mrb[7].mxu1 }
 0x1ae   :  { %v2406_v55 = vmax.f32 %v8024_v34, %v8028_v43  ;;  %v2474_v34 = vld [vmem:[%s8828_s3 + $0x38] sm:$0xff]  ;;  %v4685_v43 = vld [vmem:[%s8828_s3 + $0x288] sm:$0xff] }
 0x1af   :  { %v8032_v56 = vpop.f32.mrb[8].mxu0 }
 0x1b0   :  { %v8034_v24 = vpop.f32.mrb[8].mxu1  ;;  %v8036_v28 = vpop.f32.mrb[9].mxu0 }
 0x1b1   :  { %v2409_v29 = vmax.f32 %v8032_v56, %v8034_v24  ;;  %v8040_v35 = vpop.f32.mrb[9].mxu1 }
 0x1b2   :  { %v2408_v37 = vmax.f32 %v8036_v28, %v8040_v35  ;;  %v2476_v28 = vld [vmem:[%s8828_s3 + $0x48] sm:$0xff]  ;;  %v4687_v35 = vld [vmem:[%s8828_s3 + $0x298] sm:$0xff] }
 0x1b3   :  { %v8044_v38 = vpop.f32.mrb[10].mxu0 }
 0x1b4   :  { %v8046_v39 = vpop.f32.mrb[10].mxu1  ;;  %v8048_v40 = vpop.f32.mrb[11].mxu0 }
 0x1b5   :  { %v2411_v41 = vmax.f32 %v8044_v38, %v8046_v39  ;;  %v8052_v42 = vpop.f32.mrb[11].mxu1 }
 0x1b6   :  { %v2410_v44 = vmax.f32 %v8048_v40, %v8052_v42  ;;  %v2478_v40 = vld [vmem:[%s8828_s3 + $0x58] sm:$0xff]  ;;  %v4689_v42 = vld [vmem:[%s8828_s3 + $0x2a8] sm:$0xff] }
 0x1b7   :  { %v5599_v45 = vpop.f32.mrb[12].mxu0 }
 0x1b8   :  { %v5819_v46 = vpop.f32.mrb[12].mxu1  ;;  %v1280_v47 = vpop.f32.mrb[13].mxu0 }
 0x1b9   :  { %v2413_v48 = vmax.f32 %v5599_v45, %v5819_v46  ;;  %v2317_v49 = vpop.f32.mrb[13].mxu1 }
 0x1ba   :  { %v2412_v51 = vmax.f32 %v1280_v47, %v2317_v49 }
 0x1bb   :  { %v2425_v52 = vmax.f32 %v2401_v15, %v2413_v48  ;;  %v5602_v53 = vpop.f32.mrb[14].mxu0 }
 0x1bc   :  { %v8061_v54 = vmax.f32 %v2400_v17, %v2412_v51  ;;  %v5822_v57 = vpop.f32.mrb[14].mxu1  ;;  %v1290_v58 = vpop.f32.mrb[15].mxu0 }
 0x1bd   :  { %v2444_v59 = vadd.f32 %v8059_v50, %v2425_v52  ;;  %v2415_v60 = vmax.f32 %v5602_v53, %v5822_v57  ;;  %v2327_v61 = vpop.f32.mrb[15].mxu1 }
 0x1be   :  { %v2414_v62 = vmax.f32 %v1290_v58, %v2327_v61  ;;  %v2443_v38 = vadd.f32 %v8059_v50, %v8061_v54 }
 0x1bf   :  { %v8064_v63 = vmax.f32 %v2444_v59, 0.0  ;;  %v2427_v0 = vmax.f32 %v2403_v22, %v2415_v60  ;;  %v5605_v1 = vpop.f32.mrb[16].mxu0  ;;  %v2471_v22 = vld [vmem:[%s8828_s3 + $0x20] sm:$0xff] }
 0x1c0   :  { %v2426_v3 = vmax.f32 %v2402_v25, %v2414_v62  ;;  %v5825_v4 = vpop.f32.mrb[16].mxu1  ;;  %v1300_v5 = vpop.f32.mrb[17].mxu0  ;;  %v6500_v51 = vpack.c.bf16 %v2472_v27, %v2471_v22  ;;  %v4691_v27 = vld [vmem:[%s8828_s3 + $0x2b8] sm:$0xff] }
 0x1c1   :  { %v2446_v12 = vadd.f32 %v8059_v50, %v2427_v0  ;;  %v2417_v13 = vmax.f32 %v5605_v1, %v5825_v4  ;;  %v2337_v14 = vpop.f32.mrb[17].mxu1  ;;  %5865 = vmatprep.mubr.msk.f32.mxu0 %vm2498_vm4, %v8064_v63  ;;  %6075 = vmatprep.mubr.msk.f32.mxu1 %vm2498_vm4, %v8064_v63 }
 0x1c2   :  { %v2416_v15 = vmax.f32 %v1300_v5, %v2337_v14 }
 0x1c3   :  { %v8083_v16 = vmax.f32 %v2446_v12, 0.0  ;;  %v2429_v17 = vmax.f32 %v2405_v30, %v2417_v13  ;;  %v5608_v18 = vpop.f32.mrb[18].mxu0  ;;  %v4684_v30 = vld [vmem:[%s8828_s3 + $0x280] sm:$0xff] }
 0x1c4   :  { %v2428_v23 = vmax.f32 %v2404_v32, %v2416_v15  ;;  %v5828_v25 = vpop.f32.mrb[18].mxu1  ;;  %v1310_v26 = vpop.f32.mrb[19].mxu0  ;;  %v6640_v52 = vpack.c.bf16 %v4684_v30, %v4683_v20  ;;  %v4692_v20 = vld [vmem:[%s8828_s3 + $0x2c0] sm:$0xff]  ;;  %v2455_v30 = vmax.f32 %v2443_v38, 0.0 }
 0x1c5   :  { %v2448_v31 = vadd.f32 %v8059_v50, %v2429_v17  ;;  %v2419_v45 = vmax.f32 %v5608_v18, %v5828_v25  ;;  %v2347_v46 = vpop.f32.mrb[19].mxu1  ;;  %5866 = vmatmul.mubr.msk.f32.vlgmr.msra.gmra.mrb[24].mxu0 %vm2498_vm4, %v8083_v16  ;;  %6076 = vmatmul.mubr.msk.f32.vlgmr.msra.gmra.mrb[24].mxu1 %vm2498_vm4, %v8083_v16  ;;  %v6508_v18 = vpack.c.bf16 %v2476_v28, %v2475_v6 }
 0x1c6   :  { %v2418_v32 = vmax.f32 %v1310_v26, %v2347_v46  ;;  %6495 = vmatpush3.bf16.msra.mxu0 %v8011_v10  ;;  %6635 = vmatpush3.bf16.msra.mxu1 %v8013_v11  ;;  %v2473_v10 = vld [vmem:[%s8828_s3 + $0x30] sm:$0xff]  ;;  %v2445_v11 = vadd.f32 %v8059_v50, %v2426_v3  ;;  %v2447_v60 = vadd.f32 %v8059_v50, %v2428_v23  ;;  %v2479_v23 = vld [vmem:[%s8828_s3 + $0x60] sm:$0xff] }
 0x1c7   :  { %v8104_v47 = vmax.f32 %v2448_v31, 0.0  ;;  %v2431_v48 = vmax.f32 %v2407_v36, %v2419_v45  ;;  %v5611_v49 = vpop.f32.mrb[20].mxu0  ;;  %6497 = vmatprep.subr.bf16.mxu0 %v6496_v19  ;;  %6637 = vmatprep.subr.bf16.mxu1 %v6636_v21  ;;  %v6504_v4 = vpack.c.bf16 %v2474_v34, %v2473_v10  ;;  %v6656_v45 = vpack.c.bf16 %v4692_v20, %v4691_v27  ;;  %v2481_v46 = vld [vmem:[%s8828_s3 + $0x70] sm:$0xff]  ;;  %v4613_v10 = vld [vmem:[%s8828_s3 + $0x108] sm:$0xff] }
 0x1c8   :  { %v2430_v53 = vmax.f32 %v2406_v55, %v2418_v32  ;;  %v5831_v57 = vpop.f32.mrb[20].mxu1  ;;  %v1320_v58 = vpop.f32.mrb[21].mxu0  ;;  %v4686_v55 = vld [vmem:[%s8828_s3 + $0x290] sm:$0xff]  ;;  %v8142_v7 = vmax.f32 %v2445_v11, 0.0  ;;  %v8161_v13 = vmax.f32 %v2447_v60, 0.0  ;;  %v4693_v32 = vld [vmem:[%s8828_s3 + $0x2c8] sm:$0xff] }
 0x1c9   :  { %v2450_v9 = vadd.f32 %v8059_v50, %v2431_v48  ;;  %v2421_v33 = vmax.f32 %v5611_v49, %v5831_v57  ;;  %v2357_v36 = vpop.f32.mrb[21].mxu1  ;;  %5868 = vmatprep.mubr.msk.f32.mxu0 %vm2498_vm4, %v8104_v47  ;;  %6078 = vmatprep.mubr.msk.f32.mxu1 %vm2498_vm4, %v8104_v47  ;;  %v6644_v5 = vpack.c.bf16 %v4686_v55, %v4685_v43  ;;  %v4610_v48 = vld [vmem:[%s8828_s3 + $0xf0] sm:$0xff]  ;;  %v4611_v49 = vld [vmem:[%s8828_s3 + $0xf8] sm:$0xff]  ;;  %v4729_v55 = vld [vmem:[%s8828_s3 + $0x368] sm:$0xff] }
 0x1ca   :  { %v2420_v59 = vmax.f32 %v1320_v58, %v2357_v36  ;;  %6499 = vmatpush3.bf16.msra.mxu0 %v6496_v19  ;;  %6639 = vmatpush3.bf16.msra.mxu1 %v6636_v21  ;;  %v2449_v56 = vadd.f32 %v8059_v50, %v2430_v53  ;;  %v2477_v21 = vld [vmem:[%s8828_s3 + $0x50] sm:$0xff]  ;;  %v6520_v53 = vpack.c.bf16 %v4611_v49, %v4610_v48  ;;  %v4612_v58 = vld [vmem:[%s8828_s3 + $0x100] sm:$0xff]  ;;  %v4727_v11 = vld [vmem:[%s8828_s3 + $0x358] sm:$0xff] }
 0x1cb   :  { %v8131_v61 = vmax.f32 %v2450_v9, 0.0  ;;  %v2433_v62 = vmax.f32 %v2409_v29, %v2421_v33  ;;  %v5614_v0 = vpop.f32.mrb[22].mxu0  ;;  %6501 = vmatprep.subr.bf16.mxu0 %v6500_v51  ;;  %6641 = vmatprep.subr.bf16.mxu1 %v6640_v52  ;;  %v6512_v25 = vpack.c.bf16 %v2478_v40, %v2477_v21  ;;  %v4728_v9 = vld [vmem:[%s8828_s3 + $0x360] sm:$0xff]  ;;  %v6524_v33 = vpack.c.bf16 %v4613_v10, %v4612_v58  ;;  %v4614_v34 = vld [vmem:[%s8828_s3 + $0x110] sm:$0xff]  ;;  %v4615_v43 = vld [vmem:[%s8828_s3 + $0x118] sm:$0xff] }
 0x1cc   :  { %v2432_v1 = vmax.f32 %v2408_v37, %v2420_v59  ;;  %v5834_v2 = vpop.f32.mrb[22].mxu1  ;;  %v1330_v3 = vpop.f32.mrb[23].mxu0  ;;  %v4688_v37 = vld [vmem:[%s8828_s3 + $0x2a0] sm:$0xff]  ;;  %v8179_v39 = vmax.f32 %v2449_v56, 0.0  ;;  %v6664_v36 = vpack.c.bf16 %v4728_v9, %v4727_v11  ;;  %v4730_v59 = vld [vmem:[%s8828_s3 + $0x370] sm:$0xff]  ;;  %v6528_v60 = vpack.c.bf16 %v4615_v43, %v4614_v34  ;;  %v4619_v56 = vld [vmem:[%s8828_s3 + $0x138] sm:$0xff] }
 0x1cd   :  { %v8146_v24 = vadd.f32 %v8059_v50, %v2433_v62  ;;  %v2423_v29 = vmax.f32 %v5614_v0, %v5834_v2  ;;  %v2367_v8 = vpop.f32.mrb[23].mxu1  ;;  %5869 = vmatmul.mubr.msk.f32.gmra.mrb[26].mxu0 %vm2498_vm4, %v8131_v61  ;;  %6079 = vmatmul.mubr.msk.f32.gmra.mrb[26].mxu1 %vm2498_vm4, %v8131_v61  ;;  %v6648_v19 = vpack.c.bf16 %v4688_v37, %v4687_v35  ;;  %v4616_v0 = vld [vmem:[%s8828_s3 + $0x120] sm:$0xff]  ;;  %v4731_v2 = vld [vmem:[%s8828_s3 + $0x378] sm:$0xff]  ;;  %v4621_v37 = vld [vmem:[%s8828_s3 + $0x148] sm:$0xff] }
 0x1ce   :  { %v2422_v12 = vmax.f32 %v1330_v3, %v2367_v8  ;;  %6503 = vmatpush3.bf16.msra.mxu0 %v6500_v51  ;;  %6643 = vmatpush3.bf16.msra.mxu1 %v6640_v52  ;;  %v2451_v14 = vadd.f32 %v8059_v50, %v2432_v1  ;;  %v4725_v51 = vld [vmem:[%s8828_s3 + $0x348] sm:$0xff]  ;;  %v4726_v52 = vld [vmem:[%s8828_s3 + $0x350] sm:$0xff]  ;;  %v6668_v62 = vpack.c.bf16 %v4730_v59, %v4729_v55  ;;  %v4732_v3 = vld [vmem:[%s8828_s3 + $0x380] sm:$0xff] }
 0x1cf   :  { %v2435_v15 = vmax.f32 %v2411_v41, %v2423_v29  ;;  %5871 = vmatprep.mubr.msk.f32.mxu0 %vm2498_vm4, %v8142_v7  ;;  %6081 = vmatprep.mubr.msk.f32.mxu1 %vm2498_vm4, %v8142_v7  ;;  %v6660_v57 = vpack.c.bf16 %v4726_v52, %v4725_v51  ;;  %v4617_v1 = vld [vmem:[%s8828_s3 + $0x128] sm:$0xff]  ;;  %v6672_v6 = vpack.c.bf16 %v4732_v3, %v4731_v2  ;;  %v4734_v29 = vld [vmem:[%s8828_s3 + $0x390] sm:$0xff]  ;;  %v4620_v35 = vld [vmem:[%s8828_s3 + $0x140] sm:$0xff]  ;;  %v8427_v55 = vmax.f32 %v8146_v24, 0.0 }
 0x1d0   :  { %v2434_v17 = vmax.f32 %v2410_v44, %v2422_v12  ;;  %6505 = vmatprep.subr.bf16.mxu0 %v6504_v4  ;;  %6645 = vmatprep.subr.bf16.mxu1 %v6644_v5  ;;  %v4690_v44 = vld [vmem:[%s8828_s3 + $0x2b0] sm:$0xff]  ;;  %v8200_v22 = vmax.f32 %v2451_v14, 0.0  ;;  %v4735_v12 = vld [vmem:[%s8828_s3 + $0x398] sm:$0xff]  ;;  %v4736_v14 = vld [vmem:[%s8828_s3 + $0x3a0] sm:$0xff] }
 0x1d1   :  { %v8182_v41 = vadd.f32 %v8059_v50, %v2435_v15  ;;  %5872 = vmatmul.mubr.msk.f32.gmra.mrb[28].mxu0 %vm2498_vm4, %v8161_v13  ;;  %6082 = vmatmul.mubr.msk.f32.gmra.mrb[28].mxu1 %vm2498_vm4, %v8161_v13  ;;  %v6652_v26 = vpack.c.bf16 %v4690_v44, %v4689_v42  ;;  %v6540_v15 = vpack.c.bf16 %v4621_v37, %v4620_v35  ;;  %v4737_v21 = vld [vmem:[%s8828_s3 + $0x3a8] sm:$0xff]  ;;  %v4624_v42 = vld [vmem:[%s8828_s3 + $0x160] sm:$0xff]  ;;  %v4739_v44 = vld [vmem:[%s8828_s3 + $0x3b8] sm:$0xff] }
 0x1d2   :  { %v8198_v54 = vadd.f32 %v8059_v50, %v2434_v17  ;;  %6507 = vmatpush3.bf16.msra.mxu0 %v6504_v4  ;;  %6647 = vmatpush3.bf16.msra.mxu1 %v6644_v5  ;;  %v2480_v50 = vld [vmem:[%s8828_s3 + $0x68] sm:$0xff]  ;;  %v6532_v4 = vpack.c.bf16 %v4617_v1, %v4616_v0  ;;  %v4618_v5 = vld [vmem:[%s8828_s3 + $0x130] sm:$0xff]  ;;  %v6680_v17 = vpack.c.bf16 %v4736_v14, %v4735_v12  ;;  %v4752_v52 = vld [vmem:[%s8828_s3 + $0x3e0] sm:$0xff] }
 0x1d3   :  { %5874 = vmatprep.mubr.msk.f32.mxu0 %vm2498_vm4, %v8179_v39  ;;  %6084 = vmatprep.mubr.msk.f32.mxu1 %vm2498_vm4, %v8179_v39  ;;  %v6516_v31 = vpack.c.bf16 %v2480_v50, %v2479_v23  ;;  %v6536_v8 = vpack.c.bf16 %v4619_v56, %v4618_v5  ;;  %v4633_v23 = vld [vmem:[%s8828_s3 + $0x168] sm:$0xff]  ;;  %v4638_v51 = vld [vmem:[%s8828_s3 + $0x190] sm:$0xff]  ;;  %v4639_v10 = vld [vmem:[%s8828_s3 + $0x198] sm:$0xff] }
 0x1d4   :  { %6509 = vmatprep.subr.bf16.mxu0 %v6508_v18  ;;  %6649 = vmatprep.subr.bf16.mxu1 %v6648_v19  ;;  %v4749_v50 = vld [vmem:[%s8828_s3 + $0x3c8] sm:$0xff]  ;;  %v4640_v11 = vld [vmem:[%s8828_s3 + $0x1a0] sm:$0xff]  ;;  %v4754_v9 = vld [vmem:[%s8828_s3 + $0x3f0] sm:$0xff] }
 0x1d5   :  { %5875 = vmatmul.mubr.msk.f32.gmra.mrb[30].mxu0 %vm2498_vm4, %v8200_v22  ;;  %6085 = vmatmul.mubr.msk.f32.gmra.mrb[30].mxu1 %vm2498_vm4, %v8200_v22  ;;  %v4637_v49 = vld [vmem:[%s8828_s3 + $0x188] sm:$0xff]  ;;  %v4642_v43 = vld [vmem:[%s8828_s3 + $0x1b0] sm:$0xff]  ;;  %v4643_v1 = vld [vmem:[%s8828_s3 + $0x1b8] sm:$0xff] }
 0x1d6   :  { %6511 = vmatpush3.bf16.msra.mxu0 %v6508_v18  ;;  %6651 = vmatpush3.bf16.msra.mxu1 %v6648_v19  ;;  %v4622_v18 = vld [vmem:[%s8828_s3 + $0x150] sm:$0xff]  ;;  %v4623_v19 = vld [vmem:[%s8828_s3 + $0x158] sm:$0xff]  ;;  %v4641_v34 = vld [vmem:[%s8828_s3 + $0x1a8] sm:$0xff] }
 0x1d7   :  { %5907 = vmatprep.mubr.msk.f32.mxu0 %vm2498_vm4, %v2455_v30  ;;  %6117 = vmatprep.mubr.msk.f32.mxu1 %vm2498_vm4, %v2455_v30  ;;  %v6544_v38 = vpack.c.bf16 %v4623_v19, %v4622_v18  ;;  %v4635_v30 = vld [vmem:[%s8828_s3 + $0x178] sm:$0xff]  ;;  %v6564_v24 = vpack.c.bf16 %v4642_v43, %v4641_v34  ;;  %v4644_v2 = vld [vmem:[%s8828_s3 + $0x1c0] sm:$0xff]  ;;  %v4758_v3 = vld [vmem:[%s8828_s3 + $0x410] sm:$0xff] }
 0x1d8   :  { %6513 = vmatprep.subr.bf16.mxu0 %v6512_v25  ;;  %6653 = vmatprep.subr.bf16.mxu1 %v6652_v26  ;;  %v6568_v5 = vpack.c.bf16 %v4644_v2, %v4643_v1  ;;  %v4645_v56 = vld [vmem:[%s8828_s3 + $0x1c8] sm:$0xff]  ;;  %v4647_v35 = vld [vmem:[%s8828_s3 + $0x1d8] sm:$0xff]  ;;  %v4762_v37 = vld [vmem:[%s8828_s3 + $0x430] sm:$0xff] }
 0x1d9   :  { %v4656_v12 = vld [vmem:[%s8828_s3 + $0x1e0] sm:$0xff]  ;;  %v4657_v14 = vld [vmem:[%s8828_s3 + $0x1e8] sm:$0xff]  ;;  %v4795_v2 = vld [vmem:[%s8830_s5 + $0x50] sm:$0xff] }
 0x1da   :  { %6515 = vmatpush3.bf16.msra.mxu0 %v6512_v25  ;;  %6655 = vmatpush3.bf16.msra.mxu1 %v6652_v26  ;;  %v4634_v25 = vld [vmem:[%s8828_s3 + $0x170] sm:$0xff]  ;;  %v4748_v26 = vld [vmem:[%s8828_s3 + $0x3c0] sm:$0xff]  ;;  %v6576_v18 = vpack.c.bf16 %v4657_v14, %v4656_v12  ;;  %v4785_v1 = vld [vmem:[%s8828_s3 + $0x4a8] sm:$0xff] }
 0x1db   :  { %6517 = vmatprep.subr.bf16.mxu0 %v6516_v31  ;;  %6657 = vmatprep.subr.bf16.mxu1 %v6656_v45  ;;  %v6548_v27 = vpack.c.bf16 %v4634_v25, %v4633_v23  ;;  %v6688_v20 = vpack.c.bf16 %v4749_v50, %v4748_v26  ;;  %v4660_v23 = vld [vmem:[%s8828_s3 + $0x200] sm:$0xff]  ;;  %v4661_v25 = vld [vmem:[%s8828_s3 + $0x208] sm:$0xff]  ;;  %v4775_v26 = vld [vmem:[%s8828_s3 + $0x458] sm:$0xff] }
 0x1dc   :  { %v4776_v50 = vld [vmem:[%s8828_s3 + $0x460] sm:$0xff] }
 0x1dd   :  { %v4668_v43 = vld [vmem:[%s8828_s3 + $0x240] sm:$0xff] }
 0x1de   :  { %6519 = vmatpush3.bf16.msra.mxu0 %v6516_v31  ;;  %6659 = vmatpush3.bf16.msra.mxu1 %v6656_v45  ;;  %v4636_v31 = vld [vmem:[%s8828_s3 + $0x180] sm:$0xff]  ;;  %v4750_v45 = vld [vmem:[%s8828_s3 + $0x3d0] sm:$0xff] }
 0x1df   :  { %5905 = vmatprep.subr.mxu0 %v2481_v46  ;;  %6115 = vmatprep.subr.mxu1 %v4693_v32  ;;  %v4801_v14 = vld [vmem:[%s8830_s5 + $0x80] sm:$0xff] }
 0x1e2   :  { %5906 = vmatpush3.msra.mxu0 %v2481_v46  ;;  %6116 = vmatpush3.msra.mxu1 %v4693_v32  ;;  %v4751_v46 = vld [vmem:[%s8828_s3 + $0x3d8] sm:$0xff]  ;;  %v6552_v32 = vpack.c.bf16 %v4636_v31, %v4635_v30  ;;  %v4662_v30 = vld [vmem:[%s8828_s3 + $0x210] sm:$0xff] }
 0x1e3   :  { %5908 = vmatmul.mubr.msk.f32.vlgmr.msra.gmra.mrb[24].mxu0 %vm2498_vm4, %v8142_v7  ;;  %6521 = vmatprep.subr.bf16.mxu0 %v6520_v53  ;;  %v6692_v48 = vpack.c.bf16 %v4751_v46, %v4750_v45  ;;  %v4663_v31 = vld [vmem:[%s8828_s3 + $0x218] sm:$0xff]  ;;  %v4777_v45 = vld [vmem:[%s8828_s3 + $0x468] sm:$0xff]  ;;  %v4778_v46 = vld [vmem:[%s8828_s3 + $0x470] sm:$0xff] }
 0x1e4   :  { %6118 = vmatmul.mubr.msk.f32.vlgmr.msra.gmra.mrb[24].mxu1 %vm2498_vm4, %v8142_v7  ;;  %6661 = vmatprep.subr.bf16.mxu1 %v6660_v57 }
 0x1e5   :  { %5910 = vmatprep.mubr.msk.f32.mxu0 %vm2498_vm4, %v8161_v13  ;;  %6523 = vmatpush3.bf16.msra.mxu0 %v6520_v53  ;;  %v4753_v53 = vld [vmem:[%s8828_s3 + $0x3e8] sm:$0xff] }
 0x1e6   :  { %6120 = vmatprep.mubr.msk.f32.mxu1 %vm2498_vm4, %v8161_v13  ;;  %6663 = vmatpush3.bf16.msra.mxu1 %v6660_v57  ;;  %v6556_v57 = vpack.c.bf16 %v4638_v51, %v4637_v49  ;;  %v6696_v58 = vpack.c.bf16 %v4753_v53, %v4752_v52  ;;  %v4665_v49 = vld [vmem:[%s8828_s3 + $0x228] sm:$0xff]  ;;  %v8552_v51 = vmax.f32 %v8198_v54, 0.0  ;;  %v6728_v52 = vpack.c.bf16 %v4778_v46, %v4777_v45  ;;  %v4779_v53 = vld [vmem:[%s8828_s3 + $0x478] sm:$0xff] }
 0x1e7   :  { %5911 = vmatmul.mubr.msk.f32.gmra.mrb[26].mxu0 %vm2498_vm4, %v8179_v39  ;;  %6525 = vmatprep.subr.bf16.mxu0 %v6524_v33 }
 0x1e8   :  { %6121 = vmatmul.mubr.msk.f32.gmra.mrb[26].mxu1 %vm2498_vm4, %v8179_v39  ;;  %6665 = vmatprep.subr.bf16.mxu1 %v6664_v36 }
 0x1e9   :  { %5913 = vmatprep.mubr.msk.f32.mxu0 %vm2498_vm4, %v8064_v63  ;;  %6527 = vmatpush3.bf16.msra.mxu0 %v6524_v33  ;;  %v4755_v33 = vld [vmem:[%s8828_s3 + $0x3f8] sm:$0xff] }
 0x1ea   :  { %6123 = vmatprep.mubr.msk.f32.mxu1 %vm2498_vm4, %v8064_v63  ;;  %6667 = vmatpush3.bf16.msra.mxu1 %v6664_v36  ;;  %v4733_v63 = vld [vmem:[%s8828_s3 + $0x388] sm:$0xff]  ;;  %v6560_v36 = vpack.c.bf16 %v4640_v11, %v4639_v10  ;;  %v6700_v59 = vpack.c.bf16 %v4755_v33, %v4754_v9  ;;  %v4666_v10 = vld [vmem:[%s8828_s3 + $0x230] sm:$0xff]  ;;  %v4667_v11 = vld [vmem:[%s8828_s3 + $0x238] sm:$0xff] }
 0x1eb   :  { %5914 = vmatmul.mubr.msk.f32.gmra.mrb[28].mxu0 %vm2498_vm4, %v8083_v16  ;;  %6529 = vmatprep.subr.bf16.mxu0 %v6528_v60  ;;  %v6676_v28 = vpack.c.bf16 %v4734_v29, %v4733_v63  ;;  %v4646_v63 = vld [vmem:[%s8828_s3 + $0x1d0] sm:$0xff]  ;;  %v4760_v29 = vld [vmem:[%s8828_s3 + $0x420] sm:$0xff]  ;;  %v4781_v9 = vld [vmem:[%s8828_s3 + $0x488] sm:$0xff] }
 0x1ec   :  { %6124 = vmatmul.mubr.msk.f32.gmra.mrb[28].mxu1 %vm2498_vm4, %v8083_v16  ;;  %6669 = vmatprep.subr.bf16.mxu1 %v6668_v62  ;;  %v4782_v33 = vld [vmem:[%s8828_s3 + $0x490] sm:$0xff] }
 0x1ed   :  { %5916 = vmatprep.mubr.msk.f32.mxu0 %vm2498_vm4, %v8104_v47  ;;  %6531 = vmatpush3.bf16.msra.mxu0 %v6528_v60  ;;  %v4756_v60 = vld [vmem:[%s8828_s3 + $0x400] sm:$0xff]  ;;  %v6736_v34 = vpack.c.bf16 %v4782_v33, %v4781_v9 }
 0x1ee   :  { %6126 = vmatprep.mubr.msk.f32.mxu1 %vm2498_vm4, %v8104_v47  ;;  %6671 = vmatpush3.bf16.msra.mxu1 %v6668_v62  ;;  %v4757_v62 = vld [vmem:[%s8828_s3 + $0x408] sm:$0xff] }
 0x1ef   :  { %5917 = vmatmul.mubr.msk.f32.gmra.mrb[30].mxu0 %vm2498_vm4, %v8131_v61  ;;  %6533 = vmatprep.subr.bf16.mxu0 %v6532_v4  ;;  %v6704_v0 = vpack.c.bf16 %v4757_v62, %v4756_v60  ;;  %v4783_v60 = vld [vmem:[%s8828_s3 + $0x498] sm:$0xff] }
 0x1f0   :  { %6127 = vmatmul.mubr.msk.f32.gmra.mrb[30].mxu1 %vm2498_vm4, %v8131_v61  ;;  %6673 = vmatprep.subr.bf16.mxu1 %v6672_v6 }
 0x1f1   :  { %6535 = vmatpush3.bf16.msra.mxu0 %v6532_v4  ;;  %5949 = vmatprep.mubr.msk.f32.mxu0 %vm2498_vm4, %v8142_v7  ;;  %v4759_v4 = vld [vmem:[%s8828_s3 + $0x418] sm:$0xff] }
 0x1f2   :  { %6675 = vmatpush3.bf16.msra.mxu1 %v6672_v6  ;;  %6159 = vmatprep.mubr.msk.f32.mxu1 %vm2498_vm4, %v8142_v7  ;;  %v4738_v7 = vld [vmem:[%s8828_s3 + $0x3b0] sm:$0xff]  ;;  %v6708_v6 = vpack.c.bf16 %v4759_v4, %v4758_v3  ;;  %v4796_v3 = vld [vmem:[%s8830_s5 + $0x58] sm:$0xff]  ;;  %v3788_v4 = vld [vmem:[%s8830_s5] sm:$0xff] }
 0x1f3   :  { %6537 = vmatprep.subr.bf16.mxu0 %v6536_v8  ;;  %6677 = vmatprep.subr.bf16.mxu1 %v6676_v28  ;;  %v6684_v40 = vpack.c.bf16 %v4738_v7, %v4737_v21  ;;  %v4658_v21 = vld [vmem:[%s8828_s3 + $0x1f0] sm:$0xff]  ;;  %v4659_v7 = vld [vmem:[%s8828_s3 + $0x1f8] sm:$0xff] }
 0x1f5   :  { %6539 = vmatpush3.bf16.msra.mxu0 %v6536_v8  ;;  %v6572_v8 = vpack.c.bf16 %v4646_v63, %v4645_v56  ;;  %v7074_v63 = vmov 0.0|0.0  }
 0x1f6   :  { %6679 = vmatpush3.bf16.msra.mxu1 %v6676_v28  ;;  %6541 = vmatprep.subr.bf16.mxu0 %v6540_v15 }
 0x1f7   :  { %6681 = vmatprep.subr.bf16.mxu1 %v6680_v17 }
 0x1f9   :  { %6543 = vmatpush3.bf16.msra.mxu0 %v6540_v15  ;;  %v4771_v15 = vld [vmem:[%s8828_s3 + $0x438] sm:$0xff] }
 0x1fa   :  { %6683 = vmatpush3.bf16.msra.mxu1 %v6680_v17  ;;  %6545 = vmatprep.subr.bf16.mxu0 %v6544_v38  ;;  %v4772_v17 = vld [vmem:[%s8828_s3 + $0x440] sm:$0xff] }
 0x1fb   :  { %6685 = vmatprep.subr.bf16.mxu1 %v6684_v40  ;;  %v6716_v19 = vpack.c.bf16 %v4772_v17, %v4771_v15  ;;  %v4802_v15 = vld [vmem:[%s8830_s5 + $0x88] sm:$0xff] }
 0x1fc   :  { %v6754_v17 = vpack.c.bf16 %v4802_v15, %v4801_v14  ;;  %v4813_v15 = vld [vmem:[%s8830_s5 + $0xd0] sm:$0xff] }
 0x1fd   :  { %6547 = vmatpush3.bf16.msra.mxu0 %v6544_v38  ;;  %v4773_v38 = vld [vmem:[%s8828_s3 + $0x448] sm:$0xff] }
 0x1fe   :  { %6687 = vmatpush3.bf16.msra.mxu1 %v6684_v40  ;;  %5947 = vmatprep.subr.mxu0 %v4624_v42  ;;  %v4774_v40 = vld [vmem:[%s8828_s3 + $0x450] sm:$0xff] }
 0x1ff   :  { %6157 = vmatprep.subr.mxu1 %v4739_v44 }
 0x201   :  { %5948 = vmatpush3.msra.mxu0 %v4624_v42  ;;  %v6580_v42 = vpack.c.bf16 %v4659_v7, %v4658_v21  ;;  %v4803_v7 = vld [vmem:[%s8830_s5 + $0x90] sm:$0xff] }
 0x202   :  { %6158 = vmatpush3.msra.mxu1 %v4739_v44  ;;  %5950 = vmatmul.mubr.msk.f32.vlgmr.msra.gmra.mrb[24].mxu0 %vm2498_vm4, %v8161_v13  ;;  %v6720_v44 = vpack.c.bf16 %v4774_v40, %v4773_v38  ;;  %v4804_v38 = vld [vmem:[%s8830_s5 + $0x98] sm:$0xff] }
 0x203   :  { %6549 = vmatprep.subr.bf16.mxu0 %v6548_v27  ;;  %6160 = vmatmul.mubr.msk.f32.vlgmr.msra.gmra.mrb[24].mxu1 %vm2498_vm4, %v8161_v13  ;;  %v6757_v40 = vpack.c.bf16 %v4804_v38, %v4803_v7  ;;  %v4815_v38 = vld [vmem:[%s8830_s5 + $0xe0] sm:$0xff] }
 0x204   :  { %6689 = vmatprep.subr.bf16.mxu1 %v6688_v20  ;;  %5952 = vmatprep.mubr.msk.f32.mxu0 %vm2498_vm4, %v8179_v39 }
 0x205   :  { %6551 = vmatpush3.bf16.msra.mxu0 %v6548_v27  ;;  %6162 = vmatprep.mubr.msk.f32.mxu1 %vm2498_vm4, %v8179_v39  ;;  %v6584_v27 = vpack.c.bf16 %v4661_v25, %v4660_v23  ;;  %v7076_v25 = vmov 0.0  }
 0x206   :  { %6691 = vmatpush3.bf16.msra.mxu1 %v6688_v20  ;;  %5953 = vmatmul.mubr.msk.f32.gmra.mrb[26].mxu0 %vm2498_vm4, %v8200_v22  ;;  %v6724_v20 = vpack.c.bf16 %v4776_v50, %v4775_v26 }
 0x207   :  { %6553 = vmatprep.subr.bf16.mxu0 %v6552_v32  ;;  %6163 = vmatmul.mubr.msk.f32.gmra.mrb[26].mxu1 %vm2498_vm4, %v8200_v22 }
 0x208   :  { %6693 = vmatprep.subr.bf16.mxu1 %v6692_v48  ;;  %5955 = vmatprep.mubr.msk.f32.mxu0 %vm2498_vm4, %v8083_v16 }
 0x209   :  { %6555 = vmatpush3.bf16.msra.mxu0 %v6552_v32  ;;  %6165 = vmatprep.mubr.msk.f32.mxu1 %vm2498_vm4, %v8083_v16  ;;  %v6588_v32 = vpack.c.bf16 %v4663_v31, %v4662_v30 }
 0x20a   :  { %6695 = vmatpush3.bf16.msra.mxu1 %v6692_v48  ;;  %5956 = vmatmul.mubr.msk.f32.gmra.mrb[28].mxu0 %vm2498_vm4, %v8104_v47  ;;  %v4664_v48 = vld [vmem:[%s8828_s3 + $0x220] sm:$0xff] }
 0x20b   :  { %6557 = vmatprep.subr.bf16.mxu0 %v6556_v57  ;;  %6166 = vmatmul.mubr.msk.f32.gmra.mrb[28].mxu1 %vm2498_vm4, %v8104_v47  ;;  %v6592_v54 = vpack.c.bf16 %v4665_v49, %v4664_v48 }
 0x20c   :  { %6697 = vmatprep.subr.bf16.mxu1 %v6696_v58  ;;  %5958 = vmatprep.mubr.msk.f32.mxu0 %vm2498_vm4, %v8131_v61 }
 0x20d   :  { %6559 = vmatpush3.bf16.msra.mxu0 %v6556_v57  ;;  %6168 = vmatprep.mubr.msk.f32.mxu1 %vm2498_vm4, %v8131_v61  ;;  %v4780_v57 = vld [vmem:[%s8828_s3 + $0x480] sm:$0xff] }
 0x20e   :  { %6699 = vmatpush3.bf16.msra.mxu1 %v6696_v58  ;;  %5959 = vmatmul.mubr.msk.f32.gmra.mrb[30].mxu0 %vm2498_vm4, %v8427_v55  ;;  %v6732_v58 = vpack.c.bf16 %v4780_v57, %v4779_v53 }
 0x20f   :  { %6561 = vmatprep.subr.bf16.mxu0 %v6560_v36  ;;  %6169 = vmatmul.mubr.msk.f32.gmra.mrb[30].mxu1 %vm2498_vm4, %v8427_v55 }
 0x210   :  { %6701 = vmatprep.subr.bf16.mxu1 %v6700_v59  ;;  %5991 = vmatprep.mubr.msk.f32.mxu0 %vm2498_vm4, %v8083_v16 }
 0x211   :  { %6563 = vmatpush3.bf16.msra.mxu0 %v6560_v36  ;;  %6201 = vmatprep.mubr.msk.f32.mxu1 %vm2498_vm4, %v8083_v16  ;;  %v4761_v16 = vld [vmem:[%s8828_s3 + $0x428] sm:$0xff]  ;;  %v6596_v36 = vpack.c.bf16 %v4667_v11, %v4666_v10  ;;  %v8708_v10 = vld [vmem:[%s8831_s4] ss:$0 sm:$0xff] }
 0x212   :  { %6703 = vmatpush3.bf16.msra.mxu1 %v6700_v59  ;;  %6565 = vmatprep.subr.bf16.mxu0 %v6564_v24  ;;  %v6712_v28 = vpack.c.bf16 %v4761_v16, %v4760_v29  ;;  %v4669_v59 = vld [vmem:[%s8828_s3 + $0x248] sm:$0xff]  ;;  %v4799_v16 = vld [vmem:[%s8830_s5 + $0x70] sm:$0xff] }
 0x213   :  { %6705 = vmatprep.subr.bf16.mxu1 %v6704_v0  ;;  %v6600_v62 = vpack.c.bf16 %v4669_v59, %v4668_v43 }
 0x215   :  { %6567 = vmatpush3.bf16.msra.mxu0 %v6564_v24 }
 0x216   :  { %6707 = vmatpush3.bf16.msra.mxu1 %v6704_v0  ;;  %6569 = vmatprep.subr.bf16.mxu0 %v6568_v5  ;;  %v4670_v0 = vld [vmem:[%s8828_s3 + $0x250] sm:$0xff] }
 0x217   :  { %6709 = vmatprep.subr.bf16.mxu1 %v6708_v6 }
 0x219   :  { %6571 = vmatpush3.bf16.msra.mxu0 %v6568_v5  ;;  %v3789_v5 = vld [vmem:[%s8830_s5 + $0x8] sm:$0xff] }
 0x21a   :  { %6711 = vmatpush3.bf16.msra.mxu1 %v6708_v6  ;;  %6573 = vmatprep.subr.bf16.mxu0 %v6572_v8  ;;  %v6745_v6 = vpack.c.bf16 %v4796_v3, %v4795_v2  ;;  %v6760_v56 = vpack.c.bf16 %v3789_v5, %v3788_v4 }
 0x21b   :  { %6713 = vmatprep.subr.bf16.mxu1 %v6712_v28 }
 0x21d   :  { %6575 = vmatpush3.bf16.msra.mxu0 %v6572_v8  ;;  %v4800_v8 = vld [vmem:[%s8830_s5 + $0x78] sm:$0xff] }
 0x21e   :  { %6715 = vmatpush3.bf16.msra.mxu1 %v6712_v28  ;;  %5989 = vmatprep.subr.mxu0 %v4647_v35  ;;  %v6751_v28 = vpack.c.bf16 %v4800_v8, %v4799_v16  ;;  %v4811_v8 = vld [vmem:[%s8830_s5 + $0xc0] sm:$0xff] }
 0x21f   :  { %6199 = vmatprep.subr.mxu1 %v4762_v37 }
 0x221   :  { %5990 = vmatpush3.msra.mxu0 %v4647_v35  ;;  %v3792_v35 = vld [vmem:[%s8830_s5 + $0x20] sm:$0xff] }
 0x222   :  { %6200 = vmatpush3.msra.mxu1 %v4762_v37  ;;  %5992 = vmatmul.mubr.msk.f32.vlgmr.msra.gmra.mrb[24].mxu0 %vm2498_vm4, %v8104_v47  ;;  %v3793_v37 = vld [vmem:[%s8830_s5 + $0x28] sm:$0xff] }
 0x223   :  { %6577 = vmatprep.subr.bf16.mxu0 %v6576_v18  ;;  %6202 = vmatmul.mubr.msk.f32.vlgmr.msra.gmra.mrb[24].mxu1 %vm2498_vm4, %v8104_v47  ;;  %v6766_v12 = vpack.c.bf16 %v3793_v37, %v3792_v35  ;;  %v4822_v35 = vld [vmem:[%s8830_s5 + $0x110] sm:$0xff]  ;;  %v4823_v37 = vld [vmem:[%s8830_s5 + $0x118] sm:$0xff] }
 0x224   :  { %6717 = vmatprep.subr.bf16.mxu1 %v6716_v19  ;;  %5994 = vmatprep.mubr.msk.f32.mxu0 %vm2498_vm4, %v8131_v61  ;;  %v6796_v14 = vpack.c.bf16 %v4823_v37, %v4822_v35 }
 0x225   :  { %6579 = vmatpush3.bf16.msra.mxu0 %v6576_v18  ;;  %6204 = vmatprep.mubr.msk.f32.mxu1 %vm2498_vm4, %v8131_v61  ;;  %v3794_v18 = vld [vmem:[%s8830_s5 + $0x30] sm:$0xff] }
 0x226   :  { %6719 = vmatpush3.bf16.msra.mxu1 %v6716_v19  ;;  %5995 = vmatmul.mubr.msk.f32.gmra.mrb[26].mxu0 %vm2498_vm4, %v8427_v55  ;;  %v3795_v19 = vld [vmem:[%s8830_s5 + $0x38] sm:$0xff] }
 0x227   :  { %6581 = vmatprep.subr.bf16.mxu0 %v6580_v42  ;;  %6205 = vmatmul.mubr.msk.f32.gmra.mrb[26].mxu1 %vm2498_vm4, %v8427_v55  ;;  %v6769_v21 = vpack.c.bf16 %v3795_v19, %v3794_v18  ;;  %v4824_v18 = vld [vmem:[%s8830_s5 + $0x120] sm:$0xff]  ;;  %v4825_v19 = vld [vmem:[%s8830_s5 + $0x128] sm:$0xff] }
 0x228   :  { %6721 = vmatprep.subr.bf16.mxu1 %v6720_v44  ;;  %5997 = vmatprep.mubr.msk.f32.mxu0 %vm2498_vm4, %v8161_v13  ;;  %v6799_v7 = vpack.c.bf16 %v4825_v19, %v4824_v18 }
 0x229   :  { %6583 = vmatpush3.bf16.msra.mxu0 %v6580_v42  ;;  %6207 = vmatprep.mubr.msk.f32.mxu1 %vm2498_vm4, %v8161_v13  ;;  %v3796_v42 = vld [vmem:[%s8830_s5 + $0x40] sm:$0xff] }
 0x22a   :  { %6723 = vmatpush3.bf16.msra.mxu1 %v6720_v44  ;;  %5998 = vmatmul.mubr.msk.f32.gmra.mrb[28].mxu0 %vm2498_vm4, %v8179_v39  ;;  %v3797_v44 = vld [vmem:[%s8830_s5 + $0x48] sm:$0xff] }
 0x22b   :  { %6585 = vmatprep.subr.bf16.mxu0 %v6584_v27  ;;  %6208 = vmatmul.mubr.msk.f32.gmra.mrb[28].mxu1 %vm2498_vm4, %v8179_v39  ;;  %v6772_v23 = vpack.c.bf16 %v3797_v44, %v3796_v42  ;;  %v4826_v42 = vld [vmem:[%s8830_s5 + $0x130] sm:$0xff]  ;;  %v4827_v44 = vld [vmem:[%s8830_s5 + $0x138] sm:$0xff] }
 0x22c   :  { %6725 = vmatprep.subr.bf16.mxu1 %v6724_v20  ;;  %6000 = vmatprep.mubr.msk.f32.mxu0 %vm2498_vm4, %v8200_v22 }
 0x22d   :  { %6587 = vmatpush3.bf16.msra.mxu0 %v6584_v27  ;;  %6210 = vmatprep.mubr.msk.f32.mxu1 %vm2498_vm4, %v8200_v22 }
 0x22e   :  { %6727 = vmatpush3.bf16.msra.mxu1 %v6724_v20  ;;  %6001 = vmatmul.mubr.msk.f32.gmra.mrb[30].mxu0 %vm2498_vm4, %v8552_v51 }
 0x22f   :  { %6589 = vmatprep.subr.bf16.mxu0 %v6588_v32  ;;  %6211 = vmatmul.mubr.msk.f32.gmra.mrb[30].mxu1 %vm2498_vm4, %v8552_v51 }
 0x230   :  { %6729 = vmatprep.subr.bf16.mxu1 %v6728_v52  ;;  %6033 = vmatprep.mubr.msk.f32.mxu0 %vm2498_vm4, %v8161_v13 }
 0x231   :  { %6591 = vmatpush3.bf16.msra.mxu0 %v6588_v32  ;;  %6243 = vmatprep.mubr.msk.f32.mxu1 %vm2498_vm4, %v8161_v13  ;;  %v4784_v13 = vld [vmem:[%s8828_s3 + $0x4a0] sm:$0xff] }
 0x232   :  { %6731 = vmatpush3.bf16.msra.mxu1 %v6728_v52  ;;  %6593 = vmatprep.subr.bf16.mxu0 %v6592_v54  ;;  %v6740_v24 = vpack.c.bf16 %v4784_v13, %v4783_v60  ;;  %v4818_v13 = vld [vmem:[%s8830_s5 + $0xf0] sm:$0xff] }
 0x233   :  { %6733 = vmatprep.subr.bf16.mxu1 %v6732_v58 }
 0x235   :  { %6595 = vmatpush3.bf16.msra.mxu0 %v6592_v54 }
 0x236   :  { %6735 = vmatpush3.bf16.msra.mxu1 %v6732_v58  ;;  %6597 = vmatprep.subr.bf16.mxu0 %v6596_v36 }
 0x237   :  { %6737 = vmatprep.subr.bf16.mxu1 %v6736_v34 }
 0x239   :  { %6599 = vmatpush3.bf16.msra.mxu0 %v6596_v36  ;;  %v4807_v36 = vld [vmem:[%s8830_s5 + $0xa0] sm:$0xff] }
 0x23a   :  { %6739 = vmatpush3.bf16.msra.mxu1 %v6736_v34  ;;  %6601 = vmatprep.subr.bf16.mxu0 %v6600_v62  ;;  %v4808_v34 = vld [vmem:[%s8830_s5 + $0xa8] sm:$0xff] }
 0x23b   :  { %6741 = vmatprep.subr.bf16.mxu1 %v6740_v24  ;;  %v6775_v4 = vpack.c.bf16 %v4808_v34, %v4807_v36 }
 0x23d   :  { %6603 = vmatpush3.bf16.msra.mxu0 %v6600_v62  ;;  %v4819_v62 = vld [vmem:[%s8830_s5 + $0xf8] sm:$0xff] }
 0x23e   :  { %6743 = vmatpush3.bf16.msra.mxu1 %v6740_v24  ;;  %6031 = vmatprep.subr.mxu0 %v4670_v0 }
 0x23f   :  { %6241 = vmatprep.subr.mxu1 %v4785_v1 }
 0x241   :  { %6032 = vmatpush3.msra.mxu0 %v4670_v0 }
 0x242   :  { %6242 = vmatpush3.msra.mxu1 %v4785_v1  ;;  %6034 = vmatmul.mubr.msk.f32.vlgmr.msra.gmra.mrb[24].mxu0 %vm2498_vm4, %v8179_v39 }
 0x243   :  { %6244 = vmatmul.mubr.msk.f32.vlgmr.msra.gmra.mrb[24].mxu1 %vm2498_vm4, %v8179_v39  ;;  %6036 = vmatprep.mubr.msk.f32.mxu0 %vm2498_vm4, %v8200_v22  ;;  %v2466_v39 = vmax.f32 %v8182_v41, 0.0  ;;  %v3790_v41 = vld [vmem:[%s8830_s5 + $0x10] sm:$0xff] }
 0x244   :  { %6246 = vmatprep.mubr.msk.f32.mxu1 %vm2498_vm4, %v8200_v22  ;;  %6744 = vmatprep.subr.bf16.mxu0 %v7074_v63 }
 0x245   :  { %6746 = vmatpush3.bf16.msra.mxu0 %v6745_v6  ;;  %6759 = vmatprep.subr.bf16.mxu1 %v7074_v63 }
 0x246   :  { %6037 = vmatmul.mubr.msk.f32.gmra.mrb[26].mxu0 %vm2498_vm4, %v8552_v51  ;;  %6761 = vmatpush3.bf16.msra.mxu1 %v6760_v56  ;;  %v6790_v56 = vpack.c.bf16 %v4819_v62, %v4818_v13  ;;  %v4830_v62 = vld [vmem:[%s8834_s8] ss:$0 sm:$0xff] }
 0x247   :  { %6247 = vmatmul.mubr.msk.f32.gmra.mrb[26].mxu1 %vm2498_vm4, %v8552_v51  ;;  %6039 = vmatprep.mubr.msk.f32.mxu0 %vm2498_vm4, %v8104_v47 }
 0x248   :  { %6249 = vmatprep.mubr.msk.f32.mxu1 %vm2498_vm4, %v8104_v47  ;;  %6747 = vmatprep.subr.bf16.mxu0 %v7074_v63  ;;  %v4797_v47 = vld [vmem:[%s8830_s5 + $0x60] sm:$0xff] }
 0x249   :  { %6762 = vmatprep.subr.bf16.mxu1 %v7074_v63 }
 0x24a   :  { %6040 = vmatmul.mubr.msk.f32.gmra.mrb[28].mxu0 %vm2498_vm4, %v8131_v61 }
 0x24b   :  { %6250 = vmatmul.mubr.msk.f32.gmra.mrb[28].mxu1 %vm2498_vm4, %v8131_v61  ;;  %6042 = vmatprep.mubr.msk.f32.mxu0 %vm2498_vm4, %v8427_v55  ;;  %v4798_v61 = vld [vmem:[%s8830_s5 + $0x68] sm:$0xff] }
 0x24c   :  { %6252 = vmatprep.mubr.msk.f32.mxu1 %vm2498_vm4, %v8427_v55  ;;  %v6748_v22 = vpack.c.bf16 %v4798_v61, %v4797_v47  ;;  %v3791_v55 = vld [vmem:[%s8830_s5 + $0x18] sm:$0xff] }
 0x24d   :  { %v6763_v29 = vpack.c.bf16 %v3791_v55, %v3790_v41  ;;  %v4810_v47 = vld [vmem:[%s8830_s5 + $0xb8] sm:$0xff]  ;;  %v4820_v41 = vld [vmem:[%s8830_s5 + $0x100] sm:$0xff]  ;;  %v4821_v55 = vld [vmem:[%s8830_s5 + $0x108] sm:$0xff] }
 0x24e   :  { %6043 = vmatmul.mubr.msk.f32.gmra.mrb[30].mxu0 %vm2498_vm4, %v2466_v39  ;;  %v6793_v16 = vpack.c.bf16 %v4821_v55, %v4820_v41 }
 0x24f   :  { %6253 = vmatmul.mubr.msk.f32.gmra.mrb[30].mxu1 %vm2498_vm4, %v2466_v39  ;;  %6749 = vmatpush3.bf16.msra.mxu0 %v6748_v22  ;;  %v4809_v39 = vld [vmem:[%s8830_s5 + $0xb0] sm:$0xff] }
 0x250   :  { %6764 = vmatpush3.bf16.msra.mxu1 %v6763_v29  ;;  %6750 = vmatprep.subr.bf16.mxu0 %v7074_v63  ;;  %v6778_v29 = vpack.c.bf16 %v4810_v47, %v4809_v39 }
 0x251   :  { %6765 = vmatprep.subr.bf16.mxu1 %v7074_v63  ;;  %6275 = vmatprep.mubr.msk.f32.mxu0 %vm7075_vm5, %v7076_v25 }
 0x252   :  { %6298 = vmatprep.mubr.msk.f32.mxu1 %vm7075_vm5, %v7076_v25 }
 0x253   :  { %6752 = vmatpush3.bf16.msra.mxu0 %v6751_v28  ;;  %v4812_v28 = vld [vmem:[%s8830_s5 + $0xc8] sm:$0xff] }
 0x254   :  { %6767 = vmatpush3.bf16.msra.mxu1 %v6766_v12  ;;  %6753 = vmatprep.subr.bf16.mxu0 %v7074_v63  ;;  %v6781_v12 = vpack.c.bf16 %v4812_v28, %v4811_v8 }
 0x255   :  { %6768 = vmatprep.subr.bf16.mxu1 %v7074_v63 }
 0x257   :  { %6755 = vmatpush3.bf16.msra.mxu0 %v6754_v17  ;;  %v4814_v17 = vld [vmem:[%s8830_s5 + $0xd8] sm:$0xff] }
 0x258   :  { %6770 = vmatpush3.bf16.msra.mxu1 %v6769_v21  ;;  %6756 = vmatprep.subr.bf16.mxu0 %v7074_v63  ;;  %v6784_v21 = vpack.c.bf16 %v4814_v17, %v4813_v15 }
 0x259   :  { %6771 = vmatprep.subr.bf16.mxu1 %v7074_v63 }
 0x25b   :  { %6758 = vmatpush3.bf16.msra.mxu0 %v6757_v40  ;;  %v4816_v40 = vld [vmem:[%s8830_s5 + $0xe8] sm:$0xff] }
 0x25c   :  { %6773 = vmatpush3.bf16.msra.mxu1 %v6772_v23  ;;  %6774 = vmatprep.subr.bf16.mxu0 %v7074_v63  ;;  %v6787_v23 = vpack.c.bf16 %v4816_v40, %v4815_v38 }
 0x25d   :  { %6789 = vmatprep.subr.bf16.mxu1 %v7074_v63 }
 0x315   :  { %v6035_v26 = vpop.f32.mrb[24].mxu0 }
 0x316   :  { %v6245_v50 = vpop.f32.mrb[24].mxu1  ;;  %v3085_v27 = vpop.f32.mrb[25].mxu0 }
 0x317   :  { %v3762_v20 = vmax.f32 %v6035_v26, %v6245_v50  ;;  %v3714_v30 = vpop.f32.mrb[25].mxu1  ;;  %v6802_v50 = vpack.c.bf16 %v4827_v44, %v4826_v42 }
 0x318   :  { %v3761_v31 = vmax.f32 %v3085_v27, %v3714_v30 }
 0x319   :  { %v6038_v45 = vpop.f32.mrb[26].mxu0 }
 0x31a   :  { %v6248_v46 = vpop.f32.mrb[26].mxu1  ;;  %v3095_v32 = vpop.f32.mrb[27].mxu0 }
 0x31b   :  { %v3764_v48 = vmax.f32 %v6038_v45, %v6248_v46  ;;  %v3724_v49 = vpop.f32.mrb[27].mxu1  ;;  %v4136_v45 = vld [vmem:[%s8832_s7 + $0x8] sm:$0xff] }
 0x31c   :  { %v3763_v51 = vmax.f32 %v3095_v32, %v3724_v49  ;;  %v4137_v32 = vld [vmem:[%s8832_s7 + $0x10] sm:$0xff] }
 0x31d   :  { %v6041_v52 = vpop.f32.mrb[28].mxu0 }
 0x31e   :  { %v6251_v53 = vpop.f32.mrb[28].mxu1  ;;  %v3105_v57 = vpop.f32.mrb[29].mxu0 }
 0x31f   :  { %v3766_v54 = vmax.f32 %v6041_v52, %v6251_v53  ;;  %v3734_v58 = vpop.f32.mrb[29].mxu1  ;;  %v4140_v52 = vld [vmem:[%s8832_s7 + $0x28] sm:$0xff] }
 0x320   :  { %v3765_v11 = vmax.f32 %v3105_v57, %v3734_v58  ;;  %v4141_v57 = vld [vmem:[%s8832_s7 + $0x30] sm:$0x3] }
 0x321   :  { %v3770_v9 = vmax.f32 %v3762_v20, %v3766_v54  ;;  %v6044_v33 = vpop.f32.mrb[30].mxu0 }
 0x322   :  { %v3769_v43 = vmax.f32 %v3761_v31, %v3765_v11  ;;  %v6254_v59 = vpop.f32.mrb[30].mxu1  ;;  %v3115_v60 = vpop.f32.mrb[31].mxu0  ;;  %v4135_v31 = vld [vmem:[%s8832_s7] sm:$0xff] }
 0x323   :  { %v3781_v24 = vadd.f32 %v8708_v10, %v3770_v9  ;;  %v3768_v0 = vmax.f32 %v6044_v33, %v6254_v59  ;;  %v3744_v1 = vpop.f32.mrb[31].mxu1  ;;  %v6805_v46 = vpack.c.bf16 %v4136_v45, %v4135_v31 }
 0x324   :  { %v3780_v2 = vadd.f32 %v8708_v10, %v3769_v43  ;;  %v3767_v3 = vmax.f32 %v3115_v60, %v3744_v1  ;;  %v4829_v43 = vld [vmem:[%s8833_s6] ss:$0 sm:$0xff] }
 0x325   :  { %v3785_v5 = vmax.f32 %v3781_v24, 0.0  ;;  %v3772_v6 = vmax.f32 %v3764_v48, %v3768_v0  ;;  %v4138_v48 = vld [vmem:[%s8832_s7 + $0x18] sm:$0xff] }
 0x326   :  { %v3784_v61 = vmax.f32 %v3780_v2, 0.0  ;;  %v3771_v22 = vmax.f32 %v3763_v51, %v3767_v3  ;;  %v6808_v49 = vpack.c.bf16 %v4138_v48, %v4137_v32  ;;  %v4139_v51 = vld [vmem:[%s8832_s7 + $0x20] sm:$0xff] }
 0x327   :  { %6276 = vmatmul.mubr.msk.f32.vlgmr.msra.gmra.mrb[32].mxu0 %vm3809_vm6, %v3785_v5  ;;  %v3783_v27 = vadd.f32 %v8708_v10, %v3772_v6  ;;  %v6811_v53 = vpack.c.bf16 %v4140_v52, %v4139_v51 }
 0x328   :  { %6776 = vmatpush3.bf16.msra.mxu0 %v6775_v4  ;;  %6299 = vmatmul.mubr.msk.f32.vlgmr.msra.gmra.mrb[32].mxu1 %vm3809_vm6, %v3784_v61  ;;  %v3782_v26 = vadd.f32 %v8708_v10, %v3771_v22 }
 0x329   :  { %6791 = vmatpush3.bf16.msra.mxu1 %v6790_v56  ;;  %6777 = vmatprep.subr.bf16.mxu0 %v7074_v63  ;;  %v3787_v30 = vmax.f32 %v3783_v27, 0.0 }
 0x32a   :  { %6792 = vmatprep.subr.bf16.mxu1 %v7074_v63  ;;  %6321 = vmatprep.mubr.msk.f32.mxu0 %vm7075_vm5, %v7076_v25  ;;  %v3786_v20 = vmax.f32 %v3782_v26, 0.0 }
 0x32b   :  { %6344 = vmatprep.mubr.msk.f32.mxu1 %vm7075_vm5, %v7076_v25 }
 0x32c   :  { %6779 = vmatpush3.bf16.msra.mxu0 %v6778_v29 }
 0x32d   :  { %6794 = vmatpush3.bf16.msra.mxu1 %v6793_v16  ;;  %6780 = vmatprep.subr.bf16.mxu0 %v7074_v63 }
 0x32e   :  { %6795 = vmatprep.subr.bf16.mxu1 %v7074_v63 }
 0x330   :  { %6782 = vmatpush3.bf16.msra.mxu0 %v6781_v12 }
 0x331   :  { %6797 = vmatpush3.bf16.msra.mxu1 %v6796_v14  ;;  %6783 = vmatprep.subr.bf16.mxu0 %v7074_v63 }
 0x332   :  { %6798 = vmatprep.subr.bf16.mxu1 %v7074_v63 }
 0x334   :  { %6785 = vmatpush3.bf16.msra.mxu0 %v6784_v21 }
 0x335   :  { %6800 = vmatpush3.bf16.msra.mxu1 %v6799_v7  ;;  %6786 = vmatprep.subr.bf16.mxu0 %v7074_v63 }
 0x336   :  { %6801 = vmatprep.subr.bf16.mxu1 %v7074_v63 }
 0x338   :  { %6788 = vmatpush3.bf16.msra.mxu0 %v6787_v23 }
 0x339   :  { %6803 = vmatpush3.bf16.msra.mxu1 %v6802_v50  ;;  %6804 = vmatprep.subr.bf16.mxu0 %v7074_v63 }
 0x33b   :  { %6322 = vmatmul.mubr.msk.f32.vlgmr.msra.gmra.mrb[34].mxu0 %vm3809_vm6, %v3786_v20 }
 0x33c   :  { %6345 = vmatmul.mubr.msk.f32.vlgmr.msra.gmra.mrb[34].mxu1 %vm3809_vm6, %v3787_v30  ;;  %6361 = vmatprep.mubr.msk.f32.mxu0 %vm7075_vm5, %v7076_v25 }
 0x33d   :  { %6806 = vmatpush3.bf16.msra.mxu0 %v6805_v46 }
 0x33e   :  { %6807 = vmatprep.subr.bf16.mxu0 %v7074_v63 }
 0x341   :  { %6809 = vmatpush3.bf16.msra.mxu0 %v6808_v49 }
 0x342   :  { %6810 = vmatprep.subr.bf16.mxu0 %v7074_v63 }
 0x345   :  { %6812 = vmatpush3.bf16.msra.mxu0 %v6811_v53 }
 0x346   :  { %6359 = vmatprep.subr.mxu0 %v7076_v25 }
 0x349   :  { %6360 = vmatpush3.msk.msra.mxu0 %vm4153_vm7, %v4141_v57 }
 0x3fa   :  { %v3879_v54 = vpop.f32.mrb[32].mxu0 }
 0x3fb   :  { %v6277_v63 = vpop.f32.mrb[33].mxu0  ;;  %v3952_v58 = vpop.f32.mrb[32].mxu1 }
 0x3fc   :  { %v3953_v10 = vadd.f32 %v3952_v58, %v3879_v54  ;;  %v6300_v11 = vpop.f32.mrb[33].mxu1 }
 0x40e   :  { %v4036_v9 = vpop.f32.mrb[34].mxu0 }
 0x40f   :  { %v4040_v33 = vadd.f32 %v4036_v9, %v3953_v10  ;;  %v6323_v36 = vpop.f32.mrb[35].mxu0  ;;  %v4121_v34 = vpop.f32.mrb[34].mxu1 }
 0x410   :  { %v6346_v25 = vpop.f32.mrb[35].mxu1 }
 0x411   :  { %v4125_v59 = vadd.f32 %v4121_v34, %v4040_v33 }
 0x413   :  { %v4133_v60 = vadd.f32 %v4829_v43, %v4125_v59 }
 0x415   :  { %v4134_v13 = vmax.f32 %v4133_v60, 0.0 }
 0x417   :  { %6362 = vmatmul.mubr.msk.f32.vlgmr.msra.gmra.mrb[36].mxu0 %vm4149_vm8, %v4134_v13 }
 0x4ea   :  { %v4223_v24 = vpop.f32.mrb[36].mxu0 }
 0x4eb   :  { %v4224_v0 = vadd.f32 %v4830_v62, %v4223_v24  ;;  %v6363_v1 = vpop.f32.mrb[37].mxu0 }
 0x4ed   :  { %4227 = vst [vmem:[%s8835_s9] sm:$0xff] %v4224_v0 }

</bundles_post_ra>
